<compile_context>
chip_gen: v7x
topology: tpu7x:2x2x1
jax: 0.10.0
libtpu: 0.0.40
codegen_flags: <defaults>
</compile_context>

<pallas_src>
import math

import numpy as np
import jax
import jax.numpy as jnp
from jax.experimental import pallas as pl
from jax.experimental.pallas import tpu as pltpu

KSIZE = 5
PAD = 2
LEAKY_ALPHA = 0.01


# ----------------------------- fused kernel ---------------------------------

def _encoder_kernel(xcols_ref, in_w_ref, in_b_ref, p5_ref, rw_ref, rb_ref,
                    r_ref, bn_w_ref, o_ref, h_ref, res_ref):
    # Grid: (batch_groups, n_convs).  Conv axis is serial ("arbitrary"); the
    # activation h and the ResBlock residual are carried in VMEM scratch.
    #
    # xcols_ref: (1, M, 5*cin)   f32   host-side im2col of the input (per group)
    # in_w_ref : (5*cin, C)      bf16  input conv weights (im2col layout)
    # in_b_ref : (1, C)          f32
    # p5_ref   : (5*M, M)        bf16  stacked block-diag shifted reflect-pad
    #                                  selection matrices (tap k = rows k*M..)
    # rw_ref   : (1, 5, C, C)    bf16  THIS conv's per-tap weights (streamed)
    # rb_ref   : (1, 1, C)       f32   THIS conv's bias (streamed)
    # r_ref    : (M, M)          bf16  block-diag (resample @ centering) matrix
    # bn_w_ref : (C, Cb)         bf16  bottleneck 1x1 weights
    # o_ref    : (1, M, Cb)      f32
    # h_ref, res_ref: (M, C)     f32   VMEM scratch (activation / residual)
    l = pl.program_id(1)
    n_l = pl.num_programs(1)
    M, C = h_ref.shape

    # ---- stage 0 (fused into the first conv step): input conv, K = 5*cin ----
    @pl.when(l == 0)
    def _():
        cols = xcols_ref[0].astype(jnp.bfloat16)                   # (M, 5*cin)
        h_ref[...] = (jnp.dot(cols, in_w_ref[...],
                              preferred_element_type=jnp.float32)
                      + in_b_ref[...])

    # ---- one ResBlock conv per grid step ----
    h = h_ref[...]                                                 # (M, C) f32
    h_bf = h.astype(jnp.bfloat16)
    # 5 shifted (reflect-padded) copies of h via one 0/1 selection matmul.
    # Each output row is an exact copy of one bf16 row of h (rows of p5 have a
    # single 1), so the single bf16 cast below is exact.
    sh = jnp.dot(p5_ref[...], h_bf, preferred_element_type=jnp.float32)
    sh_bf = sh.astype(jnp.bfloat16)                                # (5*M, C)

    acc = jnp.zeros((M, C), jnp.float32)
    for k in range(KSIZE):                                         # 5 K=C MXU matmuls
        acc = acc + jnp.dot(sh_bf[k * M:(k + 1) * M, :], rw_ref[0, k],
                            preferred_element_type=jnp.float32)
    conv_out = acc + rb_ref[0]                                     # (M, C)

    is_c1 = (l % 2) == 0                                           # first conv of a ResBlock

    @pl.when(is_c1)
    def _():
        res_ref[...] = h                                           # save residual
        # LeakyReLU; dropout p=0 is identity.
        h_ref[...] = jnp.where(conv_out > 0, conv_out, LEAKY_ALPHA * conv_out)

    @pl.when(jnp.logical_not(is_c1))
    def _():
        h_ref[...] = conv_out + res_ref[...]                       # residual add

    # ---- final stage (fused into the last conv step) ----
    # r_ref already contains per-sample mean-centering (bias cancels exactly),
    # so the epilogue is: (R' @ h) @ W_bottleneck.
    @pl.when(l == n_l - 1)
    def _():
        hb = h_ref[...].astype(jnp.bfloat16)
        big = jnp.dot(r_ref[...], hb, preferred_element_type=jnp.float32)  # (M, C)
        out = jnp.dot(big.astype(jnp.bfloat16), bn_w_ref[...],
                      preferred_element_type=jnp.float32)          # (M, Cb)
        o_ref[0] = out.astype(o_ref.dtype)


# ----------------------------- host-side constant matrices -------------------

def _reflect_pad_matrix(T, pad):
    """(T+2*pad, T) 0/1 matrix: P @ x == reflect-pad(x, pad) along time."""
    assert T > pad
    src = np.concatenate([np.arange(pad, 0, -1),
                          np.arange(T),
                          np.arange(T - 2, T - 2 - pad, -1)])
    Pm = np.zeros((T + 2 * pad, T), np.float32)
    Pm[np.arange(T + 2 * pad), src] = 1.0
    return Pm


def _resample_matrix(T, blur):
    """(T, T) matrix == F.interpolate(nearest, T//blur) then
    F.interpolate(linear, T, align_corners=False)  [PyTorch semantics]."""
    L = max(T // blur, 1)
    down_src = np.minimum(np.floor(np.arange(L) * (T / L)).astype(np.int64), T - 1)
    j = np.arange(T)
    real = (j + 0.5) * (L / T) - 0.5
    src = np.maximum(real, 0.0)
    i0 = np.minimum(np.floor(src).astype(np.int64), L - 1)
    i1 = np.where(i0 < L - 1, i0 + 1, i0)
    w1 = (src - i0).astype(np.float32)
    w0 = (1.0 - w1).astype(np.float32)
    Rm = np.zeros((T, T), np.float32)
    np.add.at(Rm, (j, down_src[i0]), w0)
    np.add.at(Rm, (j, down_src[i1]), w1)
    return Rm


# ----------------------------- params ---------------------------------------

def init_params(key, n_fft=32, num_layers=2, bottleneck=4, channels=256):
    """Deterministic synthetic weights (uniform, fan-in scaled), f32, natural layout."""
    cin = n_fft // 2 + 1

    def conv_wb(k, ci, co, ksize):
        bound = 1.0 / math.sqrt(ci * ksize)
        kw, kb = jax.random.split(k)
        w = jax.random.uniform(kw, (ksize, ci, co), jnp.float32, -bound, bound)
        b = jax.random.uniform(kb, (co,), jnp.float32, -bound, bound)
        return w, b

    keys = jax.random.split(key, 2 + 2 * num_layers)
    in_w, in_b = conv_wb(keys[0], cin, channels, KSIZE)
    res_w, res_b = [], []
    for i in range(num_layers):
        w1, b1 = conv_wb(keys[1 + 2 * i], channels, channels, KSIZE)
        w2, b2 = conv_wb(keys[2 + 2 * i], channels, channels, KSIZE)
        res_w += [w1, w2]
        res_b += [b1, b2]
    bn_w, bn_b = conv_wb(keys[-1], channels, bottleneck, 1)
    return {
        "in_w": in_w, "in_b": in_b,                        # (5, cin, C), (C,)
        "res_w": jnp.stack(res_w), "res_b": jnp.stack(res_b),  # (2nl,5,C,C), (2nl,C)
        "bn_w": bn_w[0], "bn_b": bn_b,                     # (C, Cb), (Cb,)
    }


# ----------------------------- wrapper ---------------------------------------

def bottleneck_encoder_forward(x_ncw, params, blur=16):
    """x_ncw: (B, Cin, T) like PyTorch; returns (B, bottleneck, T)."""
    B, cin, T = x_ncw.shape
    C = params["in_w"].shape[-1]
    Cb = params["bn_w"].shape[-1]
    n_convs = params["res_w"].shape[0]
    assert n_convs >= 1 and n_convs % 2 == 0

    # Fold G samples into the matmul M dim (targets 128 MXU rows on v5e; also
    # fills more of v6e/v7x's 256 rows).  On v7x, batch *groups* still map to
    # both TensorCores via the "parallel" grid axis whenever B > G.
    G = 1
    for cand in range(1, B + 1):
        if B % cand == 0 and cand * T <= 128:
            G = cand
    nb = B // G
    M = G * T

    # ---- host-side constants (selection matrices, exact in bf16) ----
    P = _reflect_pad_matrix(T, PAD)                                   # (T+4, T)
    eyeG = np.eye(G, dtype=np.float32)
    P5 = np.concatenate([np.kron(eyeG, P[k:k + T, :]) for k in range(KSIZE)],
                        axis=0)                                       # (5M, M)
    R = _resample_matrix(T, blur)                                     # (T, T)
    Rc = R - R.sum(axis=1, keepdims=True) / T                         # fold per-sample
    Rbd = np.kron(eyeG, Rc)                                           # centering into R

    p5 = jnp.asarray(P5, jnp.bfloat16)
    rbd = jnp.asarray(Rbd, jnp.bfloat16)

    # ---- host-side im2col of the tiny input (one K=5*cin matmul in-kernel) ----
    xt = jnp.transpose(x_ncw, (0, 2, 1)).astype(jnp.float32)          # (B, T, cin)
    xp = jnp.pad(xt, ((0, 0), (PAD, PAD), (0, 0)), mode="reflect")
    cols = jnp.concatenate([xp[:, k:k + T, :] for k in range(KSIZE)], axis=2)
    cols = cols.reshape(nb, M, KSIZE * cin)                           # (nb, M, 5*cin)

    in_w = params["in_w"].reshape(KSIZE * cin, C).astype(jnp.bfloat16)
    in_b = params["in_b"].reshape(1, C).astype(jnp.float32)
    res_w = params["res_w"].astype(jnp.bfloat16)                      # (n_convs,5,C,C)
    res_b = params["res_b"].reshape(n_convs, 1, C).astype(jnp.float32)
    bn_w = params["bn_w"].astype(jnp.bfloat16)                        # (C, Cb)
    # bn_b cancels exactly under the mean-centering folded into Rbd.

    flops_conv = 2 * (KSIZE * M) * M * C + KSIZE * 2 * M * C * C
    flops = nb * (2 * M * (KSIZE * cin) * C + n_convs * flops_conv
                  + 2 * M * M * C + 2 * M * C * Cb)
    bytes_accessed = int(cols.size * 4 + in_w.size * 2 + in_b.size * 4
                         + p5.size * 2 + nb * (res_w.size * 2 + res_b.size * 4)
                         + rbd.size * 2 + bn_w.size * 2 + nb * M * Cb * 4)

    # NOTE: constant-index-map inputs could use pipeline_mode=pl.Buffered(1) to
    # halve their resident VMEM on v7x; skipped here (total footprint ~2.5 MB).
    out = pl.pallas_call(
        _encoder_kernel,
        out_shape=jax.ShapeDtypeStruct((nb, M, Cb), jnp.float32),
        grid=(nb, n_convs),
        in_specs=[
            pl.BlockSpec((1, M, KSIZE * cin), lambda b, l: (b, 0, 0)),   # x im2col
            pl.BlockSpec((KSIZE * cin, C), lambda b, l: (0, 0)),         # in_w (resident)
            pl.BlockSpec((1, C), lambda b, l: (0, 0)),                   # in_b
            pl.BlockSpec((KSIZE * M, M), lambda b, l: (0, 0)),           # P5 (resident)
            pl.BlockSpec((1, KSIZE, C, C), lambda b, l: (l, 0, 0, 0)),   # res_w (streamed)
            pl.BlockSpec((1, 1, C), lambda b, l: (l, 0, 0)),             # res_b (streamed)
            pl.BlockSpec((M, M), lambda b, l: (0, 0)),                   # R' (resident)
            pl.BlockSpec((C, Cb), lambda b, l: (0, 0)),                  # bn_w
        ],
        out_specs=pl.BlockSpec((1, M, Cb), lambda b, l: (b, 0, 0)),
        scratch_shapes=[pltpu.VMEM((M, C), jnp.float32),                 # h carry
                        pltpu.VMEM((M, C), jnp.float32)],                # residual
        compiler_params=pltpu.CompilerParams(
            dimension_semantics=("parallel", "arbitrary")),
        cost_estimate=pl.CostEstimate(flops=int(flops), transcendentals=0,
                                      bytes_accessed=bytes_accessed),
    )(cols, in_w, in_b, p5, res_w, res_b, rbd, bn_w)

    # TODO(synk): final (B,T,Cb)->(B,Cb,T) transpose left to XLA; output is tiny
    # so the lane-dense-store optimization is not worth the complexity here.
    out = out.reshape(B, T, Cb)
    return jnp.transpose(out, (0, 2, 1))                                # (B, Cb, T)


# ----------------------------- pure-JAX reference ----------------------------

def encoder_reference(x_ncw, params, blur):
    """Straightforward f32 port of the PyTorch module (for correctness check)."""
    B, cin, T = x_ncw.shape
    hi = jax.lax.Precision.HIGHEST
    a = jnp.transpose(x_ncw, (0, 2, 1)).astype(jnp.float32)             # (B, T, cin)

    def conv5(a, w, b):
        ap = jnp.pad(a, ((0, 0), (PAD, PAD), (0, 0)), mode="reflect")
        s = jnp.zeros(a.shape[:2] + (w.shape[-1],), jnp.float32)
        for k in range(KSIZE):
            s = s + jnp.einsum("btc,co->bto", ap[:, k:k + a.shape[1], :], w[k],
                               precision=hi)
        return s + b

    h = conv5(a, params["in_w"], params["in_b"])
    for i in range(params["res_w"].shape[0] // 2):
        res = h
        a1 = conv5(h, params["res_w"][2 * i], params["res_b"][2 * i])
        a1 = jnp.where(a1 > 0, a1, LEAKY_ALPHA * a1)
        h = conv5(a1, params["res_w"][2 * i + 1], params["res_b"][2 * i + 1]) + res

    out = jnp.einsum("btc,co->bto", h, params["bn_w"], precision=hi) + params["bn_b"]
    out = out - out.mean(axis=1, keepdims=True)

    L = max(T // blur, 1)
    down_idx = np.minimum(np.floor(np.arange(L) * (T / L)).astype(np.int64), T - 1)
    down = out[:, down_idx, :]                                           # nearest
    src = np.maximum((np.arange(T) + 0.5) * (L / T) - 0.5, 0.0)
    i0 = np.minimum(np.floor(src).astype(np.int64), L - 1)
    i1 = np.minimum(i0 + 1, L - 1)
    w1 = jnp.asarray((src - i0).astype(np.float32))[None, :, None]
    up = down[:, i0, :] * (1.0 - w1) + down[:, i1, :] * w1               # linear
    return jnp.transpose(up, (0, 2, 1))                                  # (B, Cb, T)


# ----------------------------- main ------------------------------------------

if __name__ == "__main__":
    n_fft, num_layers, bottleneck, blur = 32, 2, 4, 16
    B, T = 2, 64
    cin = n_fft // 2 + 1

    key = jax.random.PRNGKey(0)
    kx, kp = jax.random.split(key)
    x = jax.random.normal(kx, (B, cin, T), jnp.float32)
    params = init_params(kp, n_fft=n_fft, num_layers=num_layers, bottleneck=bottleneck)

    out = jax.block_until_ready(bottleneck_encoder_forward(x, params, blur=blur))
    assert out.shape == (B, bottleneck, T), out.shape

    ref = jax.block_until_ready(encoder_reference(x, params, blur))
    err = float(jnp.max(jnp.abs(out - ref)))
    scale = float(jnp.max(jnp.abs(ref)))
    assert err <= 1e-2 + 5e-2 * max(scale, 1e-3), (err, scale)

    print("KERNEL_OK")
</pallas_src>

<mosaic_0001>
module attributes {stable_mosaic.version = 11 : i64} {
  func.func @_encoder_kernel(%arg0: i32, %arg1: i32, %arg2: memref<1x128x85xf32, #tpu.memory_space<vmem>>, %arg3: memref<85x256xbf16, #tpu.memory_space<vmem>>, %arg4: memref<1x256xf32, #tpu.memory_space<vmem>>, %arg5: memref<640x128xbf16, #tpu.memory_space<vmem>>, %arg6: memref<1x5x256x256xbf16, #tpu.memory_space<vmem>>, %arg7: memref<1x1x256xf32, #tpu.memory_space<vmem>>, %arg8: memref<128x128xbf16, #tpu.memory_space<vmem>>, %arg9: memref<256x4xbf16, #tpu.memory_space<vmem>>, %arg10: memref<1x128x4xf32, #tpu.memory_space<vmem>>, %arg11: memref<128x256xf32, #tpu.memory_space<vmem>>, %arg12: memref<128x256xf32, #tpu.memory_space<vmem>>) attributes {dimension_semantics = [#tpu.dimension_semantics<parallel>, #tpu.dimension_semantics<arbitrary>], iteration_bounds = array<i64: 1, 4>, scalar_prefetch = 0 : i64, scratch_operands = 2 : i64, tpu.core_type = #tpu.core_type<tc>, window_params = [{transform_indices = @transform_0, window_bounds = array<i64: 1, 128, 85>}, {pipeline_mode = #tpu.pipeline_mode<synchronous>, transform_indices = @transform_1, window_bounds = array<i64: 85, 256>}, {pipeline_mode = #tpu.pipeline_mode<synchronous>, transform_indices = @transform_2, window_bounds = array<i64: 1, 256>}, {pipeline_mode = #tpu.pipeline_mode<synchronous>, transform_indices = @transform_3, window_bounds = array<i64: 640, 128>}, {transform_indices = @transform_4, window_bounds = array<i64: 1, 5, 256, 256>}, {transform_indices = @transform_5, window_bounds = array<i64: 1, 1, 256>}, {pipeline_mode = #tpu.pipeline_mode<synchronous>, transform_indices = @transform_6, window_bounds = array<i64: 128, 128>}, {pipeline_mode = #tpu.pipeline_mode<synchronous>, transform_indices = @transform_7, window_bounds = array<i64: 256, 4>}, {transform_indices = @transform_8, window_bounds = array<i64: 1, 128, 4>}]} {
    %c0_i32 = arith.constant 0 : i32
    %0 = arith.cmpi eq, %arg1, %c0_i32 : i32
    %1 = arith.extui %0 : i1 to i32
    %c0_i32_0 = arith.constant 0 : i32
    %2 = arith.cmpi ne, %1, %c0_i32_0 : i32
    scf.if %2 {
      %c0_37 = arith.constant 0 : index
      %c0_38 = arith.constant 0 : index
      %c0_39 = arith.constant 0 : index
      %57 = vector.load %arg2[%c0_37, %c0_38, %c0_39] : memref<1x128x85xf32, #tpu.memory_space<vmem>>, vector<1x128x85xf32>
      %58 = vector.shape_cast %57 : vector<1x128x85xf32> to vector<128x85xf32>
      %59 = arith.truncf %58 : vector<128x85xf32> to vector<128x85xbf16>
      %c0_40 = arith.constant 0 : index
      %c0_41 = arith.constant 0 : index
      %60 = vector.load %arg3[%c0_40, %c0_41] : memref<85x256xbf16, #tpu.memory_space<vmem>>, vector<85x256xbf16>
      %cst_42 = arith.constant dense<0.000000e+00> : vector<128x256xf32>
      %61 = tpu.matmul %59, %60, %cst_42 {dimension_numbers = #tpu.dot_dimension_numbers<[1], [0], [0], [1], [0, 0, 1, 1], [], []>} : vector<128x85xbf16>, vector<85x256xbf16>, vector<128x256xf32> -> vector<128x256xf32>
      %c0_43 = arith.constant 0 : index
      %c0_44 = arith.constant 0 : index
      %62 = vector.load %arg4[%c0_43, %c0_44] : memref<1x256xf32, #tpu.memory_space<vmem>>, vector<1x256xf32>
      %63 = vector.broadcast %62 : vector<1x256xf32> to vector<128x256xf32>
      %64 = arith.addf %61, %63 : vector<128x256xf32>
      %c0_45 = arith.constant 0 : index
      %c0_46 = arith.constant 0 : index
      %65 = vector.load %arg11[%c0_45, %c0_46] : memref<128x256xf32, #tpu.memory_space<vmem>>, vector<128x256xf32>
      tpu.vector_store %arg11[%c0_45, %c0_46], %64 {strides = array<i32>} : memref<128x256xf32, #tpu.memory_space<vmem>>, vector<128x256xf32>,
    } else {
    }
    %c0 = arith.constant 0 : index
    %c0_1 = arith.constant 0 : index
    %3 = vector.load %arg11[%c0, %c0_1] : memref<128x256xf32, #tpu.memory_space<vmem>>, vector<128x256xf32>
    %4 = arith.truncf %3 : vector<128x256xf32> to vector<128x256xbf16>
    %c0_2 = arith.constant 0 : index
    %c0_3 = arith.constant 0 : index
    %5 = vector.load %arg5[%c0_2, %c0_3] : memref<640x128xbf16, #tpu.memory_space<vmem>>, vector<640x128xbf16>
    %cst = arith.constant dense<0.000000e+00> : vector<640x256xf32>
    %6 = tpu.matmul %5, %4, %cst {dimension_numbers = #tpu.dot_dimension_numbers<[1], [0], [0], [1], [0, 0, 1, 1], [], []>} : vector<640x128xbf16>, vector<128x256xbf16>, vector<640x256xf32> -> vector<640x256xf32>
    %7 = arith.truncf %6 : vector<640x256xf32> to vector<640x256xbf16>
    %cst_4 = arith.constant 0.000000e+00 : f32
    %8 = vector.broadcast %cst_4 : f32 to vector<128x256xf32>
    %9 = vector.extract_strided_slice %7 {offsets = [0, 0], sizes = [128, 256], strides = [1, 1]} : vector<640x256xbf16> to vector<128x256xbf16>
    %c0_5 = arith.constant 0 : index
    %c0_6 = arith.constant 0 : index
    %c0_7 = arith.constant 0 : index
    %c0_8 = arith.constant 0 : index
    %10 = vector.load %arg6[%c0_5, %c0_6, %c0_7, %c0_8] : memref<1x5x256x256xbf16, #tpu.memory_space<vmem>>, vector<1x1x256x256xbf16>
    %11 = vector.shape_cast %10 : vector<1x1x256x256xbf16> to vector<256x256xbf16>
    %cst_9 = arith.constant dense<0.000000e+00> : vector<128x256xf32>
    %12 = tpu.matmul %9, %11, %cst_9 {dimension_numbers = #tpu.dot_dimension_numbers<[1], [0], [0], [1], [0, 0, 1, 1], [], []>} : vector<128x256xbf16>, vector<256x256xbf16>, vector<128x256xf32> -> vector<128x256xf32>
    %13 = arith.addf %8, %12 : vector<128x256xf32>
    %14 = vector.extract_strided_slice %7 {offsets = [128, 0], sizes = [128, 256], strides = [1, 1]} : vector<640x256xbf16> to vector<128x256xbf16>
    %c0_10 = arith.constant 0 : index
    %c1 = arith.constant 1 : index
    %c0_11 = arith.constant 0 : index
    %c0_12 = arith.constant 0 : index
    %15 = vector.load %arg6[%c0_10, %c1, %c0_11, %c0_12] : memref<1x5x256x256xbf16, #tpu.memory_space<vmem>>, vector<1x1x256x256xbf16>
    %16 = vector.shape_cast %15 : vector<1x1x256x256xbf16> to vector<256x256xbf16>
    %cst_13 = arith.constant dense<0.000000e+00> : vector<128x256xf32>
    %17 = tpu.matmul %14, %16, %cst_13 {dimension_numbers = #tpu.dot_dimension_numbers<[1], [0], [0], [1], [0, 0, 1, 1], [], []>} : vector<128x256xbf16>, vector<256x256xbf16>, vector<128x256xf32> -> vector<128x256xf32>
    %18 = arith.addf %13, %17 : vector<128x256xf32>
    %19 = vector.extract_strided_slice %7 {offsets = [256, 0], sizes = [128, 256], strides = [1, 1]} : vector<640x256xbf16> to vector<128x256xbf16>
    %c0_14 = arith.constant 0 : index
    %c2 = arith.constant 2 : index
    %c0_15 = arith.constant 0 : index
    %c0_16 = arith.constant 0 : index
    %20 = vector.load %arg6[%c0_14, %c2, %c0_15, %c0_16] : memref<1x5x256x256xbf16, #tpu.memory_space<vmem>>, vector<1x1x256x256xbf16>
    %21 = vector.shape_cast %20 : vector<1x1x256x256xbf16> to vector<256x256xbf16>
    %cst_17 = arith.constant dense<0.000000e+00> : vector<128x256xf32>
    %22 = tpu.matmul %19, %21, %cst_17 {dimension_numbers = #tpu.dot_dimension_numbers<[1], [0], [0], [1], [0, 0, 1, 1], [], []>} : vector<128x256xbf16>, vector<256x256xbf16>, vector<128x256xf32> -> vector<128x256xf32>
    %23 = arith.addf %18, %22 : vector<128x256xf32>
    %24 = vector.extract_strided_slice %7 {offsets = [384, 0], sizes = [128, 256], strides = [1, 1]} : vector<640x256xbf16> to vector<128x256xbf16>
    %c0_18 = arith.constant 0 : index
    %c3 = arith.constant 3 : index
    %c0_19 = arith.constant 0 : index
    %c0_20 = arith.constant 0 : index
    %25 = vector.load %arg6[%c0_18, %c3, %c0_19, %c0_20] : memref<1x5x256x256xbf16, #tpu.memory_space<vmem>>, vector<1x1x256x256xbf16>
    %26 = vector.shape_cast %25 : vector<1x1x256x256xbf16> to vector<256x256xbf16>
    %cst_21 = arith.constant dense<0.000000e+00> : vector<128x256xf32>
    %27 = tpu.matmul %24, %26, %cst_21 {dimension_numbers = #tpu.dot_dimension_numbers<[1], [0], [0], [1], [0, 0, 1, 1], [], []>} : vector<128x256xbf16>, vector<256x256xbf16>, vector<128x256xf32> -> vector<128x256xf32>
    %28 = arith.addf %23, %27 : vector<128x256xf32>
    %29 = vector.extract_strided_slice %7 {offsets = [512, 0], sizes = [128, 256], strides = [1, 1]} : vector<640x256xbf16> to vector<128x256xbf16>
    %c0_22 = arith.constant 0 : index
    %c4 = arith.constant 4 : index
    %c0_23 = arith.constant 0 : index
    %c0_24 = arith.constant 0 : index
    %30 = vector.load %arg6[%c0_22, %c4, %c0_23, %c0_24] : memref<1x5x256x256xbf16, #tpu.memory_space<vmem>>, vector<1x1x256x256xbf16>
    %31 = vector.shape_cast %30 : vector<1x1x256x256xbf16> to vector<256x256xbf16>
    %cst_25 = arith.constant dense<0.000000e+00> : vector<128x256xf32>
    %32 = tpu.matmul %29, %31, %cst_25 {dimension_numbers = #tpu.dot_dimension_numbers<[1], [0], [0], [1], [0, 0, 1, 1], [], []>} : vector<128x256xbf16>, vector<256x256xbf16>, vector<128x256xf32> -> vector<128x256xf32>
    %33 = arith.addf %28, %32 : vector<128x256xf32>
    %c0_26 = arith.constant 0 : index
    %c0_27 = arith.constant 0 : index
    %c0_28 = arith.constant 0 : index
    %34 = vector.load %arg7[%c0_26, %c0_27, %c0_28] : memref<1x1x256xf32, #tpu.memory_space<vmem>>, vector<1x1x256xf32>
    %35 = vector.shape_cast %34 : vector<1x1x256xf32> to vector<1x256xf32>
    %36 = vector.broadcast %35 : vector<1x256xf32> to vector<128x256xf32>
    %37 = arith.addf %33, %36 : vector<128x256xf32>
    %c2_i32 = arith.constant 2 : i32
    %c0_i32_29 = arith.constant 0 : i32
    %38 = arith.cmpi eq, %c2_i32, %c0_i32_29 : i32
    %c1_i32 = arith.constant 1 : i32
    %39 = arith.select %38, %c1_i32, %c2_i32 : i32
    %40 = arith.remsi %arg1, %39 : i32
    %c0_i32_30 = arith.constant 0 : i32
    %41 = arith.cmpi ne, %40, %c0_i32_30 : i32
    %c0_i32_31 = arith.constant 0 : i32
    %42 = arith.cmpi slt, %40, %c0_i32_31 : i32
    %c0_i32_32 = arith.constant 0 : i32
    %43 = arith.cmpi slt, %39, %c0_i32_32 : i32
    %44 = arith.xori %42, %43 : i1
    %45 = arith.andi %44, %41 : i1
    %46 = arith.addi %40, %39 : i32
    %47 = arith.select %45, %46, %40 : i32
    %c0_i32_33 = arith.constant 0 : i32
    %48 = arith.cmpi eq, %47, %c0_i32_33 : i32
    %49 = arith.extui %48 : i1 to i32
    %c0_i32_34 = arith.constant 0 : i32
    %50 = arith.cmpi ne, %49, %c0_i32_34 : i32
    scf.if %50 {
      %c0_37 = arith.constant 0 : index
      %c0_38 = arith.constant 0 : index
      %57 = vector.load %arg12[%c0_37, %c0_38] : memref<128x256xf32, #tpu.memory_space<vmem>>, vector<128x256xf32>
      tpu.vector_store %arg12[%c0_37, %c0_38], %3 {strides = array<i32>} : memref<128x256xf32, #tpu.memory_space<vmem>>, vector<128x256xf32>,
      %cst_39 = arith.constant 0.000000e+00 : f32
      %58 = vector.broadcast %cst_39 : f32 to vector<128x256xf32>
      %59 = arith.cmpf ogt, %37, %58 : vector<128x256xf32>
      %cst_40 = arith.constant 0.00999999977 : f32
      %60 = vector.broadcast %cst_40 : f32 to vector<128x256xf32>
      %61 = arith.mulf %60, %37 : vector<128x256xf32>
      %62 = arith.select %59, %37, %61 : vector<128x256xi1>, vector<128x256xf32>
      %c0_41 = arith.constant 0 : index
      %c0_42 = arith.constant 0 : index
      %63 = vector.load %arg11[%c0_41, %c0_42] : memref<128x256xf32, #tpu.memory_space<vmem>>, vector<128x256xf32>
      tpu.vector_store %arg11[%c0_41, %c0_42], %62 {strides = array<i32>} : memref<128x256xf32, #tpu.memory_space<vmem>>, vector<128x256xf32>,
    } else {
    }
    %true = arith.constant true
    %51 = arith.xori %48, %true : i1
    %52 = arith.extui %51 : i1 to i32
    %c0_i32_35 = arith.constant 0 : i32
    %53 = arith.cmpi ne, %52, %c0_i32_35 : i32
    scf.if %53 {
      %c0_37 = arith.constant 0 : index
      %c0_38 = arith.constant 0 : index
      %57 = vector.load %arg12[%c0_37, %c0_38] : memref<128x256xf32, #tpu.memory_space<vmem>>, vector<128x256xf32>
      %58 = arith.addf %37, %57 : vector<128x256xf32>
      %c0_39 = arith.constant 0 : index
      %c0_40 = arith.constant 0 : index
      %59 = vector.load %arg11[%c0_39, %c0_40] : memref<128x256xf32, #tpu.memory_space<vmem>>, vector<128x256xf32>
      tpu.vector_store %arg11[%c0_39, %c0_40], %58 {strides = array<i32>} : memref<128x256xf32, #tpu.memory_space<vmem>>, vector<128x256xf32>,
    } else {
    }
    %c3_i32 = arith.constant 3 : i32
    %54 = arith.cmpi eq, %arg1, %c3_i32 : i32
    %55 = arith.extui %54 : i1 to i32
    %c0_i32_36 = arith.constant 0 : i32
    %56 = arith.cmpi ne, %55, %c0_i32_36 : i32
    scf.if %56 {
      %c0_37 = arith.constant 0 : index
      %c0_38 = arith.constant 0 : index
      %57 = vector.load %arg11[%c0_37, %c0_38] : memref<128x256xf32, #tpu.memory_space<vmem>>, vector<128x256xf32>
      %58 = arith.truncf %57 : vector<128x256xf32> to vector<128x256xbf16>
      %c0_39 = arith.constant 0 : index
      %c0_40 = arith.constant 0 : index
      %59 = vector.load %arg8[%c0_39, %c0_40] : memref<128x128xbf16, #tpu.memory_space<vmem>>, vector<128x128xbf16>
      %cst_41 = arith.constant dense<0.000000e+00> : vector<128x256xf32>
      %60 = tpu.matmul %59, %58, %cst_41 {dimension_numbers = #tpu.dot_dimension_numbers<[1], [0], [0], [1], [0, 0, 1, 1], [], []>} : vector<128x128xbf16>, vector<128x256xbf16>, vector<128x256xf32> -> vector<128x256xf32>
      %61 = arith.truncf %60 : vector<128x256xf32> to vector<128x256xbf16>
      %c0_42 = arith.constant 0 : index
      %c0_43 = arith.constant 0 : index
      %62 = vector.load %arg9[%c0_42, %c0_43] : memref<256x4xbf16, #tpu.memory_space<vmem>>, vector<256x4xbf16>
      %cst_44 = arith.constant dense<0.000000e+00> : vector<128x4xf32>
      %63 = tpu.matmul %61, %62, %cst_44 {dimension_numbers = #tpu.dot_dimension_numbers<[1], [0], [0], [1], [0, 0, 1, 1], [], []>} : vector<128x256xbf16>, vector<256x4xbf16>, vector<128x4xf32> -> vector<128x4xf32>
      %c0_45 = arith.constant 0 : index
      %c0_46 = arith.constant 0 : index
      %c0_47 = arith.constant 0 : index
      %64 = vector.load %arg10[%c0_45, %c0_46, %c0_47] : memref<1x128x4xf32, #tpu.memory_space<vmem>>, vector<1x128x4xf32>
      %65 = vector.shape_cast %64 : vector<1x128x4xf32> to vector<128x4xf32>
      %66 = vector.shape_cast %63 : vector<128x4xf32> to vector<1x128x4xf32>
      tpu.vector_store %arg10[%c0_45, %c0_46, %c0_47], %66 {strides = array<i32>} : memref<1x128x4xf32, #tpu.memory_space<vmem>>, vector<1x128x4xf32>,
    } else {
    }
    return
  }
  func.func @transform_0(%arg0: i32, %arg1: i32) -> (i32, i32, i32) {
    %c0_i32 = arith.constant 0 : i32
    %c0_i32_0 = arith.constant 0 : i32
    %c0_i32_1 = arith.constant 0 : i32
    return %arg0, %c0_i32, %c0_i32_0 : i32, i32, i32
  }
  func.func @transform_1(%arg0: i32, %arg1: i32) -> (i32, i32) {
    %c0_i32 = arith.constant 0 : i32
    %c0_i32_0 = arith.constant 0 : i32
    %c0_i32_1 = arith.constant 0 : i32
    return %c0_i32, %c0_i32_0 : i32, i32
  }
  func.func @transform_2(%arg0: i32, %arg1: i32) -> (i32, i32) {
    %c0_i32 = arith.constant 0 : i32
    %c0_i32_0 = arith.constant 0 : i32
    %c0_i32_1 = arith.constant 0 : i32
    return %c0_i32, %c0_i32_0 : i32, i32
  }
  func.func @transform_3(%arg0: i32, %arg1: i32) -> (i32, i32) {
    %c0_i32 = arith.constant 0 : i32
    %c0_i32_0 = arith.constant 0 : i32
    %c0_i32_1 = arith.constant 0 : i32
    return %c0_i32, %c0_i32_0 : i32, i32
  }
  func.func @transform_4(%arg0: i32, %arg1: i32) -> (i32, i32, i32, i32) {
    %c0_i32 = arith.constant 0 : i32
    %c0_i32_0 = arith.constant 0 : i32
    %c0_i32_1 = arith.constant 0 : i32
    %c0_i32_2 = arith.constant 0 : i32
    return %arg1, %c0_i32, %c0_i32_0, %c0_i32_1 : i32, i32, i32, i32
  }
  func.func @transform_5(%arg0: i32, %arg1: i32) -> (i32, i32, i32) {
    %c0_i32 = arith.constant 0 : i32
    %c0_i32_0 = arith.constant 0 : i32
    %c0_i32_1 = arith.constant 0 : i32
    return %arg1, %c0_i32, %c0_i32_0 : i32, i32, i32
  }
  func.func @transform_6(%arg0: i32, %arg1: i32) -> (i32, i32) {
    %c0_i32 = arith.constant 0 : i32
    %c0_i32_0 = arith.constant 0 : i32
    %c0_i32_1 = arith.constant 0 : i32
    return %c0_i32, %c0_i32_0 : i32, i32
  }
  func.func @transform_7(%arg0: i32, %arg1: i32) -> (i32, i32) {
    %c0_i32 = arith.constant 0 : i32
    %c0_i32_0 = arith.constant 0 : i32
    %c0_i32_1 = arith.constant 0 : i32
    return %c0_i32, %c0_i32_0 : i32, i32
  }
  func.func @transform_8(%arg0: i32, %arg1: i32) -> (i32, i32, i32) {
    %c0_i32 = arith.constant 0 : i32
    %c0_i32_0 = arith.constant 0 : i32
    %c0_i32_1 = arith.constant 0 : i32
    return %arg0, %c0_i32, %c0_i32_0 : i32, i32, i32
  }
}

</mosaic_0001>

<bundles_post_ra>
// kernel: tpu_custom_call.1
= control target key start
LH: loop header
LB: loop body
LE: loop exit
PB: predicated region body
PF: predicated region fallthrough
CT: control target
= control target key end

     0   :  { %s7171_s0 = inlined_call_operand.vmem [shape: f32[1,128,85], index: 0, kind: input, shape index: {}]   ;;  %s7172_s1 = inlined_call_operand.hbm [shape: bf16[85,256], index: 1, kind: input, shape index: {}]   ;;  %s7173_s2 = inlined_call_operand.hbm [shape: f32[1,256], index: 2, kind: input, shape index: {}]   ;;  %s7174_s3 = inlined_call_operand.hbm [shape: bf16[640,128], index: 3, kind: input, shape index: {}]   ;;  %s7175_s4 = inlined_call_operand.hbm [shape: bf16[4,5,256,256], index: 4, kind: input, shape index: {}]   ;;  %s7176_s5 = inlined_call_operand.hbm [shape: f32[4,1,256], index: 5, kind: input, shape index: {}]   ;;  %s7177_s6 = inlined_call_operand.hbm [shape: bf16[128,128], index: 6, kind: input, shape index: {}]   ;;  %s7178_s7 = inlined_call_operand.vmem [shape: bf16[256,4], index: 7, kind: input, shape index: {}]   ;;  %s7179_s8 = inlined_call_operand.vmem [shape: f32[1,128,4], index: 8, kind: output, shape index: {}]  }
   0x1   :  { %7229 = sst [smem:[#allocation52_spill]] %s7171_s0 }
   0x2   :  { %7230 = sst [smem:[#allocation53_spill]] %s7172_s1 }
   0x3   :  { %7231 = sst [smem:[#allocation54_spill]] %s7173_s2 }
   0x4   :  { %7232 = sst [smem:[#allocation55_spill]] %s7175_s4 }
   0x5   :  { %7233 = sst [smem:[#allocation56_spill]] %s7178_s7 }
   0x6   :  { %7234 = sst [smem:[#allocation57_spill]] %s7179_s8 }
   0x7   :  { %13 = vsyncpa [#allocation5], 0 }
   0x8   :  { %14 = vsyncpa [#allocation7], 0 }
   0x9   :  { %15 = vsyncpa [#allocation10], 0 }
   0xa   :  { %17 = vsyncpa [#allocation10 + $0x1], 0 }
   0xb   :  { %18 = vsyncpa [#allocation13], 0  ;;  %s5577_s27 = smov 0   ;;  %s5579_s28 = smov 0  }
   0xc   :  { %s5581_s29 = smov 0   ;;  %s5583_s30 = smov 0  }
   0xd   :  { %s5585_s9 = smov 0   ;;  %s5587_s10 = smov 0  }
   0xe LB: > { %s7184_s11 = sadd.s32 4294967295, %s5516_s10   ;;  %p145_p0 = scmp.ne.s32.totalorder %s5500_s28, %s5496_s27  ;;  %s5516_s10 = sphi %s5587_s10, %s24_s10   ;;  %s5512_s9 = sphi %s5585_s9, %s7379_s9   ;;  %s5508_s30 = sphi %s5583_s30, %s7378_s30   ;;  %s5504_s29 = sphi %s5581_s29, %s7377_s29   ;;  %s5500_s28 = sphi %s5579_s28, %s7376_s28   ;;  %s5496_s27 = sphi %s5577_s27, %s7375_s27  }
   0xf   : > { %p5609_p1 = scmp.eq.s32.totalorder %s7184_s11, 0  ;;  %p4199_p2 = scmp.ge.s32.totalorder %s5516_s10, 1 }
  0x10   : > { %p250_p3 = scmp.lt.s32.totalorder %s5516_s10, 5  ;;  %s5518_s15 = smov [#allocation6]  }
  0x11   : > { %s7235_s12 = scalar_select %p5609_p1, 1, 0 }
  0x12   : > { %p5617_p4 = por %p5609_p1, %p145_p0  ;;  %p5621_p5 = pnand %p4199_p2, %p250_p3 }
  0x13   : > { %s284_s16 = sshll.u32 %s5518_s15, 4  ;;  %s33_s18 = sadd.s32 1, %s5512_s9  ;;  %s285_s16 = int_to_ptr.vmem [resolvable:$true] %s284_s16 }
  0x14   : > { %s7236_s13 = scalar_select %p5617_p4, 1, 0 }
  0x15   : > { %s7237_s14 = scalar_select %p5621_p5, 1, 0 }
  0x16   : > { %p4858_p6 = pneg %p5621_p5  ;;  %s132_s19 = sadd.s32 1, %s5504_s29 }
  0x17   : > { %p5635_p8 = scmp.ge.s32.totalorder %s33_s18, 4  ;;  %s7240_s2 = sld [smem:[#allocation54_spill]] }
  0x18   : > { %p5629_p7 = pnand %p4858_p6, %p5609_p1 }
  0x19   : > { %s7239_s20 = scalar_select %p5635_p8, 1, 0 }
  0x1a   : > { %s7238_s17 = scalar_select %p5629_p7, 1, 0 }
  0x1b   : > { %p5647_p10 = pneg %p5629_p7 }
  0x1d   : > { %s5282_s23 = scalar_lea.hbm %s7240_s2, 32 }
  0x1e   : > { %p5283_p9 = scmp.ne.s32.totalorder %s7240_s2, %s5282_s23  ;;  %p5289_p13 = scmp.lt.u32.totalorder %s5282_s23, %s7240_s2 }
  0x20   : > { %p5285_p11 = pnand %p5647_p10, %p5283_p9 }
  0x22   : > { %p5286_p12 = pneg %p5285_p11 }
  0x24   : > { %p5291_p0 = pnand %p5289_p13, %p5286_p12 }
  0x26   : > { %5294 = shalt.err (!%p5291_p0)
}
  0x27   : > { %s5295_s21 = scalar_lea.vmem %s285_s16, 32  ;;  %p5303_p4 = scmp.lt.s32.totalorder %s285_s16, %s285_s16 }
  0x28   : > { %p5296_p2 = scmp.ne.s32.totalorder %s285_s16, %s5295_s21  ;;  %p5304_p1 = scmp.lt.s32.totalorder %s5295_s21, %s5295_s21 }
  0x2a   : > { %p5298_p3 = pnand %p5296_p2, %p5647_p10  ;;  %p5305_p5 = por %p5304_p1, %p5303_p4 }
  0x2c   : > { %p5299_p6 = pneg %p5298_p3 }
  0x2e   : > { %p5306_p8 = pnand %p5305_p5, %p5299_p6 }
  0x30   : > { %5309 = shalt.err (!%p5306_p8)
}
  0x31   : > { %4864 = dma.hbm_to_vmem [thread:$0]  (!%p5629_p7), %s7240_s2, 32, %s285_s16, [#allocation7]  }
  0x32   : > { %p7242_p1 = scmp.ne.s32.totalorder %s7239_s20, 0  ;;  %p139_p4 = scmp.ne.s32.totalorder %s5504_s29, %s5500_s28 }
  0x33   : > { %p140_p5 = scmp.eq.s32.totalorder %s5516_s10, 0  ;;  %p4882_p11 = scmp.lt.s32.totalorder %s5516_s10, 4 }
  0x34   : > { %s7381_s18 = smov (%p7242_p1, %s33_s18), 0  ;;  %s324_s27 = sand.u32 1, %s5516_s10  }
  0x35   : > { %7243 = sst [smem:[#allocation18_spill]] %s7381_s18  ;;  %s129_s23 = ssub.s32 %s5512_s9, %s7381_s18 }
  0x36   : > { %p130_p8 = scmp.eq.s32.totalorder %s129_s23, 0  ;;  %p141_p9 = por %p140_p5, %p139_p4 }
  0x37   : > { %s7185_s15 = sand.u32 1, %s5504_s29   ;;  %s4836_s22 = smul.u32 20480, %s5512_s9 }
  0x38   : > { %s5674_s25 = scalar_select %p130_p8, %s5504_s29, %s132_s19  }
  0x39   : > { %s4835_s21 = smul.u32 1280, %s7185_s15  ;;  %p5681_p12 = pnand %p4882_p11, %p141_p9 }
  0x3a   : > { %7244 = sst [smem:[#allocation19_spill]] %s5674_s25  ;;  %s7246_s4 = sld [smem:[#allocation55_spill]] }
  0x3b   : > { %s7245_s24 = scalar_select %p5681_p12, 1, 0 }
  0x3c   : > { %s328_s19 = scalar_lea.vmem [#allocation9], %s4835_s21  ;;  %s5692_s15 = scalar_lea.sflag [#allocation10], %s324_s27 }
  0x3d   : > { %s335_s23 = sshll.u32 %s328_s19, 4  ;;  %p7192_p0 = pneg %p5681_p12  ;;  %s5690_s23 = int_to_ptr.vmem [resolvable:$true] %s335_s23 }
  0x40   : > { %s5688_s11 = scalar_lea.hbm %s7246_s4, %s4836_s22  ;;  %s5315_s20 = scalar_lea.hbm %s7246_s4, 81920 }
  0x41   : > { %s5310_s2 = scalar_lea.hbm %s5688_s11, 20480  ;;  %p5316_p6 = scmp.lt.u32.totalorder %s5688_s11, %s7246_s4 }
  0x42   : > { %p5311_p13 = scmp.ne.s32.totalorder %s5688_s11, %s5310_s2  ;;  %p5317_p1 = scmp.lt.u32.totalorder %s5315_s20, %s5310_s2 }
  0x43   : > { %p5319_p5 = scmp.lt.u32.totalorder %s5310_s2, %s5688_s11 }
  0x44   : > { %p5313_p2 = pnand %p7192_p0, %p5311_p13  ;;  %p5318_p4 = por %p5317_p1, %p5316_p6 }
  0x46   : > { %p5314_p3 = pneg %p5313_p2  ;;  %p5320_p8 = por %p5319_p5, %p5318_p4 }
  0x48   : > { %p5321_p9 = pnand %p5320_p8, %p5314_p3 }
  0x4a   : > { %5324 = shalt.err (!%p5321_p9)
}
  0x4b   : > { %s5325_s27 = scalar_lea.vmem %s5690_s23, 20480  ;;  %s5519_s21 = smov [#allocation9]  }
  0x4c   : > { %p5326_p11 = scmp.ne.s32.totalorder %s5690_s23, %s5325_s27  ;;  %s5330_s19 = sshll.u32 %s5519_s21, 4  ;;  %s5331_s19 = int_to_ptr.vmem [resolvable:$false] %s5330_s19 }
  0x4d   : > { %s5332_s18 = scalar_lea.vmem %s5331_s19, 40960  ;;  %p5333_p7 = scmp.lt.s32.totalorder %s5690_s23, %s5331_s19 }
  0x4e   : > { %p5328_p13 = pnand %p5326_p11, %p7192_p0  ;;  %p5334_p6 = scmp.lt.s32.totalorder %s5332_s18, %s5325_s27 }
  0x50   : > { %p5329_p2 = pneg %p5328_p13  ;;  %p5335_p1 = por %p5334_p6, %p5333_p7 }
  0x52   : > { %p5336_p4 = pnand %p5335_p1, %p5329_p2 }
  0x54   : > { %5339 = shalt.err (!%p5336_p4)
}
  0x55   : > { %s5520_s2 = smov 128   ;;  %s5521_s25 = smov 8  }
  0x56   : > { %4874 = dma.hbm_to_vmem [thread:$0]  (!%p5681_p12), %s5688_s11, 20480, %s5690_s23, %s5692_s15, %s5520_s2, %s5520_s2, %s5521_s25  }
  0x57   : > { %s5522_s22 = smov [#allocation4]   ;;  %s5523_s20 = smov [#allocation8]  }
  0x58   : > { %s270_s16 = sshll.u32 %s5522_s22, 4  ;;  %s294_s21 = sshll.u32 %s5523_s20, 4  ;;  %s271_s16 = int_to_ptr.vmem [resolvable:$true] %s270_s16  ;;  %s295_s21 = int_to_ptr.vmem [resolvable:$true] %s294_s21 }
  0x59   : > { %s7247_s1 = sld [smem:[#allocation53_spill]] }
  0x5f   : > { %s5340_s27 = scalar_lea.hbm %s7247_s1, 1408 }
  0x60   : > { %p5341_p7 = scmp.ne.s32.totalorder %s7247_s1, %s5340_s27  ;;  %p5347_p8 = scmp.lt.u32.totalorder %s5340_s27, %s7247_s1 }
  0x62   : > { %p5343_p3 = pnand %p5341_p7, %p5647_p10 }
  0x64   : > { %p5344_p5 = pneg %p5343_p3 }
  0x66   : > { %p5349_p9 = pnand %p5347_p8, %p5344_p5 }
  0x68   : > { %5352 = shalt.err (!%p5349_p9)
}
  0x69   : > { %s5353_s11 = scalar_lea.vmem %s271_s16, 1408  ;;  %p5361_p6 = scmp.lt.s32.totalorder %s271_s16, %s271_s16 }
  0x6a   : > { %p5354_p11 = scmp.ne.s32.totalorder %s271_s16, %s5353_s11  ;;  %p5362_p1 = scmp.lt.s32.totalorder %s5353_s11, %s5353_s11 }
  0x6c   : > { %p5356_p13 = pnand %p5354_p11, %p5647_p10  ;;  %p5363_p4 = por %p5362_p1, %p5361_p6 }
  0x6e   : > { %p5357_p2 = pneg %p5356_p13 }
  0x70   : > { %p5364_p0 = pnand %p5363_p4, %p5357_p2 }
  0x72   : > { %5367 = shalt.err (!%p5364_p0)
}
  0x73   : > { %p7248_p7 = scmp.ne.s32.totalorder %s7238_s17, 0  ;;  %s5368_s23 = scalar_lea.hbm %s7174_s3, 5120 }
  0x74   : > { %p5369_p3 = scmp.ne.s32.totalorder %s7174_s3, %s5368_s23  ;;  %p5375_p0 = scmp.lt.u32.totalorder %s5368_s23, %s7174_s3 }
  0x75   : > { %4861 = dma.hbm_to_vmem [thread:$0]  (!%p7248_p7), %s7247_s1, 1408, %s271_s16, [#allocation5], %s5520_s2, %s5520_s2, %s5521_s25  }
  0x76   : > { %p5371_p5 = pnand %p5369_p3, %p5647_p10 }
  0x78   : > { %p5372_p8 = pneg %p5371_p5 }
  0x7a   : > { %p5377_p9 = pnand %p5375_p0, %p5372_p8 }
  0x7c   : > { %5380 = shalt.err (!%p5377_p9)
}
  0x7d   : > { %s5381_s18 = scalar_lea.vmem %s295_s21, 5120  ;;  %p5389_p6 = scmp.lt.s32.totalorder %s295_s21, %s295_s21 }
  0x7e   : > { %p5382_p11 = scmp.ne.s32.totalorder %s295_s21, %s5381_s18  ;;  %p5390_p1 = scmp.lt.s32.totalorder %s5381_s18, %s5381_s18 }
  0x80   : > { %p5384_p13 = pnand %p5382_p11, %p5647_p10  ;;  %p5391_p4 = por %p5390_p1, %p5389_p6 }
  0x82   : > { %p5385_p2 = pneg %p5384_p13 }
  0x84   : > { %p5392_p12 = pnand %p5391_p4, %p5385_p2 }
  0x86   : > { %5395 = shalt.err (!%p5392_p12)
}
  0x87   : > { %s5524_s2 = smov 64   ;;  %s5525_s25 = smov 4  }
  0x88   : > { %4867 = dma.hbm_to_vmem [thread:$0]  (!%p7248_p7), %s7174_s3, 5120, %s295_s21, [#allocation7], %s5524_s2, %s5524_s2, %s5525_s25  }
  0x89   : > { %s5526_s4 = smov [#allocation12]   ;;  %s7249_s0 = sand.u32 1, %s5504_s29  }
  0x8a   : > { %s307_s8 = sshll.u32 %s5526_s4, 4  ;;  %s4207_s7 = sshll.u32 %s7249_s0, 1  ;;  %s308_s8 = int_to_ptr.vmem [resolvable:$true] %s307_s8 }
  0x8b   : > { %s5396_s20 = scalar_lea.hbm %s7177_s6, 1024 }
  0x8c   : > { %p5397_p12 = scmp.ne.s32.totalorder %s7177_s6, %s5396_s20  ;;  %p5403_p8 = scmp.lt.u32.totalorder %s5396_s20, %s7177_s6 }
  0x8e   : > { %p5399_p3 = pnand %p5397_p12, %p5647_p10 }
  0x90   : > { %p5400_p5 = pneg %p5399_p3 }
  0x92   : > { %p5405_p0 = pnand %p5403_p8, %p5400_p5 }
  0x94   : > { %5408 = shalt.err (!%p5405_p0)
}
  0x95   : > { %s5409_s21 = scalar_lea.vmem %s308_s8, 1024  ;;  %p5417_p2 = scmp.lt.s32.totalorder %s308_s8, %s308_s8 }
  0x96   : > { %p5410_p9 = scmp.ne.s32.totalorder %s308_s8, %s5409_s21  ;;  %p5418_p6 = scmp.lt.s32.totalorder %s5409_s21, %s5409_s21 }
  0x98   : > { %p5412_p11 = pnand %p5410_p9, %p5647_p10  ;;  %p5419_p1 = por %p5418_p6, %p5417_p2 }
  0x9a   : > { %p5413_p13 = pneg %p5412_p11 }
  0x9c   : > { %p5420_p4 = pnand %p5419_p1, %p5413_p13 }
  0x9e   : > { %5423 = shalt.err (!%p5420_p4)
}
  0x9f   : > { %4870 = dma.hbm_to_vmem [thread:$0]  (!%p7248_p7), %s7177_s6, 1024, %s308_s8, [#allocation13], %s5524_s2, %s5524_s2, %s5525_s25  }
  0xa0   : > { %s4598_s1 = sshll.u32 %s5512_s9, 5  ;;  %s349_s4 = scalar_lea.vmem [#allocation11], %s4207_s7 }
  0xa1   : > { %s357_s0 = sshll.u32 %s349_s4, 4  ;;  %s355_s22 = scalar_lea.hbm %s7176_s5, %s4598_s1  ;;  %s358_s0 = int_to_ptr.vmem [resolvable:$true] %s357_s0 }
  0xa2   : > { %s5424_s20 = scalar_lea.hbm %s355_s22, 32  ;;  %p7250_p12 = scmp.ne.s32.totalorder %s7245_s24, 0 }
  0xa3   : > { %p5425_p10 = scmp.ne.s32.totalorder %s355_s22, %s5424_s20  ;;  %s5429_s27 = scalar_lea.hbm %s7176_s5, 128 }
  0xa4   : > { %p7251_p3 = pneg %p7250_p12  ;;  %p5430_p7 = scmp.lt.u32.totalorder %s355_s22, %s7176_s5 }
  0xa5   : > { %p5431_p0 = scmp.lt.u32.totalorder %s5429_s27, %s5424_s20  ;;  %p5433_p11 = scmp.lt.u32.totalorder %s5424_s20, %s355_s22 }
  0xa6   : > { %p5427_p5 = pnand %p5425_p10, %p7251_p3 }
  0xa7   : > { %p5432_p9 = por %p5431_p0, %p5430_p7 }
  0xa8   : > { %p5428_p8 = pneg %p5427_p5 }
  0xa9   : > { %p5434_p13 = por %p5433_p11, %p5432_p9 }
  0xab   : > { %p5435_p2 = pnand %p5434_p13, %p5428_p8 }
  0xad   : > { %5438 = shalt.err (!%p5435_p2)
}
  0xae   : > { %s5439_s25 = scalar_lea.vmem %s358_s0, 32  ;;  %p7252_p1 = pmov %p7251_p3 }
  0xaf   : > { %p5440_p6 = scmp.ne.s32.totalorder %s358_s0, %s5439_s25  ;;  %s5527_s8 = smov [#allocation11]  }
  0xb0   : > { %s5444_s7 = sshll.u32 %s5527_s8, 4  ;;  %s5445_s7 = int_to_ptr.vmem [resolvable:$false] %s5444_s7 }
  0xb1   : > { %p5442_p4 = pnand %p5440_p6, %p7252_p1  ;;  %s5446_s21 = scalar_lea.vmem %s5445_s7, 64 }
  0xb2   : > { %p5447_p3 = scmp.lt.s32.totalorder %s358_s0, %s5445_s7  ;;  %p5448_p5 = scmp.lt.s32.totalorder %s5446_s21, %s5439_s25 }
  0xb3   : > { %p5443_p10 = pneg %p5442_p4 }
  0xb4   : > { %p5449_p0 = por %p5448_p5, %p5447_p3 }
  0xb6   : > { %p5450_p7 = pnand %p5449_p0, %p5443_p10 }
  0xb8   : > { %5453 = shalt.err (!%p5450_p7)
}
  0xb9   : > { %4877 = dma.hbm_to_vmem [thread:$0]  (!%p7250_p12), %s355_s22, 32, %s358_s0, %s5692_s15  }
  0xba   : > { %p7253_p8 = scmp.ne.s32.totalorder %s7237_s14, 0 }
  0xbc   : > { %366 = sbr.rel (%p7253_p8) target bundleno = 1865 (0x749), region = 52 }
  0xc3   : > { %p7254_p9 = scmp.ne.s32.totalorder %s7235_s12, 0 }
  0xc5   : > { %5479 = dma.done.wait (%p7254_p9), [#allocation5], 1408  }
  0xc6   : > { %5481 = vsyncadd (%p7254_p9), [#allocation5], 4294965888 }
  0xc7   : > { %5483 = dma.done.wait (%p7254_p9), [#allocation7], 5152  }
  0xc8   : > { %5485 = vsyncadd (%p7254_p9), [#allocation7], 4294962144  ;;  %s7255_s16 = sadd.s32 4294967295, %s5516_s10   ;;  %s382_s24 = sand.u32 1, %s5500_s28  }
  0xc9   : > { %s380_s15 = sand.u32 1, %s7255_s16   ;;  %s4837_s14 = smul.u32 1280, %s382_s24 }
  0xca   : > { %s381_s11 = scalar_lea.sflag [#allocation10], %s380_s15  ;;  %p7256_p12 = scmp.ne.s32.totalorder %s7236_s13, 0 }
  0xcb   : > { %s5808_s1 = scalar_lea.vmem [#allocation9], %s4837_s14 }
  0xcc   : > { %5487 = dma.done.wait (%p7256_p12), %s381_s11, 20512  }
  0xcd   : > { %5489 = vsyncadd (%p7256_p12), %s381_s11, 4294946784  ;;  %s5814_s4 = sshll.u32 %s382_s24, 1 }
  0xce   : > { %s393_s0 = scalar_lea.vmem [#allocation11], %s5814_s4 }
  0xcf   : > { %5491 = dma.done.wait (%p7254_p9), [#allocation13], 1024  }
  0xd0   : > { %5493 = vsyncadd (%p7254_p9), [#allocation13], 4294966272  ;;  %p4216_p11 = scmp.ne.s32.totalorder %s5508_s30, 0 }
  0xd1   : > { %v4947_v0 = vld [vmem:[#allocation4 + $0x4] ss:$8 sps:$4 sm:$0xff] (!%p4216_p11)   ;;  %v4949_v1 = vld [vmem:[#allocation4] ss:$8 sps:$4 sm:$0xff] (!%p4216_p11)   ;;  %v4950_v2 = vld [vmem:[#allocation4 + $0x14] ss:$8 sps:$4 sm:$0xff] (!%p4216_p11)   ;;  %v492_v43 = vlaneseq (!%p4216_p11) }
  0xd2   : > { %454 = sbr.rel (%p4216_p11) target bundleno = 476 (0x1dc), region = 80  ;;  %592 = vmatprep.subr.bf16.mxu0 (!%p4216_p11), %v4947_v0  ;;  %4663 = vmatprep.subr.bf16.mxu1 (!%p4216_p11), %v4947_v0  ;;  %v4952_v3 = vld [vmem:[#allocation4 + $0x10] ss:$8 sps:$4 sm:$0xff] (!%p4216_p11)   ;;  %v4953_v4 = vld [vmem:[#allocation4 + $0x24] ss:$8 sps:$4 sm:$0xff] (!%p4216_p11)   ;;  %v5528_v5 = vmov (!%p4216_p11), 0  }
  0xd3   : > { %593 = vmatpush1.bf16.msra.mxu0 (!%p4216_p11), %v4949_v1  ;;  %4669 = vmatpush1.bf16.msra.mxu1 (!%p4216_p11), %v4949_v1  ;;  %v4955_v6 = vld [vmem:[#allocation4 + $0x20] ss:$8 sps:$4 sm:$0xff] (!%p4216_p11)   ;;  %vm582_vm0 = vcmask (!%p4216_p11), 1041408   ;;  %v4956_v7 = vld [vmem:[#allocation4 + $0x34] ss:$8 sps:$4 sm:$0xff] (!%p4216_p11)   ;;  %vm583_vm1 = vcmask (!%p4216_p11), 1042432  }
  0xd4   : > { %594 = vmatprep.subr.bf16.mxu0 (!%p4216_p11), %v4950_v2  ;;  %4664 = vmatprep.subr.bf16.mxu1 (!%p4216_p11), %v4950_v2  ;;  %v489_v8 = vld [vmem:[#allocation4 + $0x50] sm:$0x77] (!%p4216_p11)  ;;  %v5529_v9 = vmov (!%p4216_p11), 65535   ;;  %v4959_v12 = vld [vmem:[#allocation4 + $0x44] ss:$8 sps:$4 sm:$0xff] (!%p4216_p11)   ;;  %s7257_s23 = sld [smem:[#allocation52_spill]] (!%p4216_p11) }
  0xd5   : > { %624 = vmatprep.mubr.bf16.mxu0 (!%p4216_p11), %v5528_v5  ;;  %664 = vmatprep.mubr.bf16.mxu1 (!%p4216_p11), %v5528_v5  ;;  %v584_v10 = vsel (!%p4216_p11), %vm582_vm0, 4294967295, %v5529_v9  ;;  %v4958_v11 = vld [vmem:[#allocation4 + $0x30] ss:$8 sps:$4 sm:$0xff] (!%p4216_p11)   ;;  %v4228_v13 = vcombine.high (!%p4216_p11), %v489_v8, %v489_v8  ;;  %v4961_v15 = vld [vmem:[#allocation4 + $0x40] ss:$8 sps:$4 sm:$0xff] (!%p4216_p11)   ;;  %v4227_v16 = vcombine.low (!%p4216_p11), %v489_v8, %v489_v8  ;;  %vm557_vm2 = vcmask (!%p4216_p11), 695296  }
  0xd6   : > { %v585_v14 = vsel (!%p4216_p11), %vm583_vm1, %v584_v10, 0  ;;  %v493_v44 = vshrl.u32 (!%p4216_p11), %v492_v43, 7  ;;  %v490_v46 = vld [vmem:[#allocation6] sm:$0x3] (!%p4216_p11) }
  0xd7   : > { %595 = vmatpush1.bf16.msra.mxu0 (!%p4216_p11), %v4952_v3  ;;  %4670 = vmatpush1.bf16.msra.mxu1 (!%p4216_p11), %v4952_v3  ;;  %v590_v17 = vand.u32 (!%p4216_p11), %v4228_v13, %v585_v14  ;;  %v587_v19 = vand.u32 (!%p4216_p11), %v4227_v16, %v585_v14 }
  0xd8   : > { %596 = vmatprep.subr.bf16.mxu0 (!%p4216_p11), %v4953_v4  ;;  %4665 = vmatprep.subr.bf16.mxu1 (!%p4216_p11), %v4953_v4  ;;  %v494_v45 = vsub.s32 (!%p4216_p11), 0, %v493_v44  ;;  %v498_v47 = vsub.s32 (!%p4216_p11), 1, %v493_v44 }
  0xda   : > { %v455_v18 = vld [vmem:[%s7257_s23] sm:$0xff]  ;;  %v456_v20 = vld [vmem:[%s7257_s23 + $0x8] sm:$0xff]  ;;  %v457_v25 = vld [vmem:[%s7257_s23 + $0x10] sm:$0xff]  ;;  %v5886_v48 = vrot.slane %v490_v46, %v494_v45  ;;  %v5888_v49 = vrot.slane %v490_v46, %v498_v47 }
  0xdb   : > { %597 = vmatpush1.bf16.msra.mxu0 %v4955_v6  ;;  %4671 = vmatpush1.bf16.msra.mxu1 %v4955_v6  ;;  %v463_v21 = vld [vmem:[%s7257_s23 + $0x40] sm:$0xff]  ;;  %v464_v22 = vld [vmem:[%s7257_s23 + $0x48] sm:$0xff]  ;;  %v471_v23 = vpack.c.bf16 %v456_v20, %v455_v18  ;;  %v458_v26 = vld [vmem:[%s7257_s23 + $0x18] sm:$0xff] }
  0xdc   : > { %598 = vmatprep.subr.bf16.mxu0 %v4956_v7  ;;  %4666 = vmatprep.subr.bf16.mxu1 %v4956_v7  ;;  %v475_v24 = vpack.c.bf16 %v464_v22, %v463_v21  ;;  %v465_v27 = vld [vmem:[%s7257_s23 + $0x50] sm:$0xff]  ;;  %v466_v28 = vld [vmem:[%s7257_s23 + $0x58] sm:$0xff]  ;;  %v472_v29 = vpack.c.bf16 %v458_v26, %v457_v25  ;;  %v459_v31 = vld [vmem:[%s7257_s23 + $0x20] sm:$0xff] }
  0xdd   : > { %v476_v30 = vpack.c.bf16 %v466_v28, %v465_v27  ;;  %v460_v32 = vld [vmem:[%s7257_s23 + $0x28] sm:$0xff]  ;;  %v467_v33 = vld [vmem:[%s7257_s23 + $0x60] sm:$0xff]  ;;  %v461_v37 = vld [vmem:[%s7257_s23 + $0x30] sm:$0xff] }
  0xde   : > { %v468_v34 = vld [vmem:[%s7257_s23 + $0x68] sm:$0xff]  ;;  %v473_v35 = vpack.c.bf16 %v460_v32, %v459_v31  ;;  %v462_v38 = vld [vmem:[%s7257_s23 + $0x38] sm:$0xff]  ;;  %v469_v39 = vld [vmem:[%s7257_s23 + $0x70] sm:$0xff] }
  0xdf   : > { %599 = vmatpush1.bf16.msra.mxu0 %v4958_v11  ;;  %4672 = vmatpush1.bf16.msra.mxu1 %v4958_v11  ;;  %v477_v36 = vpack.c.bf16 %v468_v34, %v467_v33  ;;  %v470_v40 = vld [vmem:[%s7257_s23 + $0x78] sm:$0xff]  ;;  %v474_v41 = vpack.c.bf16 %v462_v38, %v461_v37 }
  0xe0   : > { %600 = vmatprep.subr.bf16.mxu0 %v4959_v12  ;;  %4667 = vmatprep.subr.bf16.mxu1 %v4959_v12  ;;  %v478_v42 = vpack.c.bf16 %v470_v40, %v469_v39 }
  0xe3   : > { %601 = vmatpush1.bf16.msra.mxu0 %v4961_v15  ;;  %4673 = vmatpush1.bf16.msra.mxu1 %v4961_v15 }
  0xe4   : > { %602 = vmatprep.subr.bf16.mxu0 %v590_v17  ;;  %4668 = vmatprep.subr.bf16.mxu1 %v590_v17 }
  0xe7   : > { %603 = vmatpush1.bf16.msra.mxu0 %v587_v19  ;;  %4674 = vmatpush1.bf16.msra.mxu1 %v587_v19 }
  0xea   : > { %4229 = vmatmul.mubr.msk.bf16.vlgmr.msra.gmra.mrb[0].mxu0 %vm557_vm2, %v471_v23  ;;  %4233 = vmatmul.mubr.msk.bf16.vlgmr.msra.gmra.mrb[0].mxu1 %vm557_vm2, %v475_v24 }
  0xeb   : > { %634 = vmatprep.mubr.bf16.mxu0 %v5528_v5  ;;  %674 = vmatprep.mubr.bf16.mxu1 %v5528_v5 }
  0xf2   : > { %4230 = vmatmul.mubr.msk.bf16.gmra.mrb[4].mxu0 %vm557_vm2, %v472_v29  ;;  %4234 = vmatmul.mubr.msk.bf16.gmra.mrb[4].mxu1 %vm557_vm2, %v476_v30 }
  0xf3   : > { %644 = vmatprep.mubr.bf16.mxu0 %v5528_v5  ;;  %684 = vmatprep.mubr.bf16.mxu1 %v5528_v5 }
  0xfa   : > { %4231 = vmatmul.mubr.msk.bf16.gmra.mrb[8].mxu0 %vm557_vm2, %v473_v35  ;;  %4235 = vmatmul.mubr.msk.bf16.gmra.mrb[8].mxu1 %vm557_vm2, %v477_v36 }
  0xfb   : > { %654 = vmatprep.mubr.bf16.mxu0 %v5528_v5  ;;  %694 = vmatprep.mubr.bf16.mxu1 %v5528_v5 }
 0x102   : > { %4232 = vmatmul.mubr.msk.bf16.gmra.mrb[12].mxu0 %vm557_vm2, %v474_v41  ;;  %4236 = vmatmul.mubr.msk.bf16.gmra.mrb[12].mxu1 %vm557_vm2, %v478_v42 }
 0x1bd   : > { %v626_v50 = vpop.f32.mrb[0].mxu0  ;;  %v666_v51 = vpop.f32.mrb[0].mxu1 }
 0x1be   : > { %v627_v52 = vadd.f32 %v626_v50, %v5886_v48  ;;  %v667_v53 = vadd.f32 %v666_v51, %v5886_v48  ;;  %v628_v54 = vpop.f32.mrb[1].mxu0  ;;  %v668_v55 = vpop.f32.mrb[1].mxu1 }
 0x1bf   : > { %v629_v56 = vadd.f32 %v628_v54, %v5888_v49  ;;  %v669_v57 = vadd.f32 %v668_v55, %v5888_v49  ;;  %v630_v58 = vpop.f32.mrb[2].mxu0  ;;  %v670_v59 = vpop.f32.mrb[2].mxu1 }
 0x1c0   : > { %705 = vst [vmem:[#allocation2] sm:$0xff] %v627_v52  ;;  %721 = vst [vmem:[#allocation2 + $0x80] sm:$0xff] %v667_v53  ;;  %v631_v60 = vadd.f32 %v630_v58, %v5886_v48  ;;  %v671_v61 = vadd.f32 %v670_v59, %v5886_v48  ;;  %v632_v62 = vpop.f32.mrb[3].mxu0  ;;  %v672_v63 = vpop.f32.mrb[3].mxu1 }
 0x1c1   : > { %706 = vst [vmem:[#allocation2 + $0x8] sm:$0xff] %v629_v56  ;;  %722 = vst [vmem:[#allocation2 + $0x88] sm:$0xff] %v669_v57  ;;  %v633_v0 = vadd.f32 %v632_v62, %v5888_v49  ;;  %v673_v1 = vadd.f32 %v672_v63, %v5888_v49 }
 0x1c2   : > { %707 = vst [vmem:[#allocation2 + $0x10] sm:$0xff] %v631_v60  ;;  %723 = vst [vmem:[#allocation2 + $0x90] sm:$0xff] %v671_v61 }
 0x1c3   : > { %708 = vst [vmem:[#allocation2 + $0x18] sm:$0xff] %v633_v0  ;;  %724 = vst [vmem:[#allocation2 + $0x98] sm:$0xff] %v673_v1 }
 0x1c5   : > { %v636_v2 = vpop.f32.mrb[4].mxu0  ;;  %v676_v3 = vpop.f32.mrb[4].mxu1 }
 0x1c6   : > { %v637_v4 = vadd.f32 %v636_v2, %v5886_v48  ;;  %v677_v5 = vadd.f32 %v676_v3, %v5886_v48  ;;  %v638_v6 = vpop.f32.mrb[5].mxu0  ;;  %v678_v7 = vpop.f32.mrb[5].mxu1 }
 0x1c7   : > { %v639_v8 = vadd.f32 %v638_v6, %v5888_v49  ;;  %v679_v9 = vadd.f32 %v678_v7, %v5888_v49  ;;  %v640_v10 = vpop.f32.mrb[6].mxu0  ;;  %v680_v11 = vpop.f32.mrb[6].mxu1 }
 0x1c8   : > { %709 = vst [vmem:[#allocation2 + $0x20] sm:$0xff] %v637_v4  ;;  %725 = vst [vmem:[#allocation2 + $0xa0] sm:$0xff] %v677_v5  ;;  %v641_v12 = vadd.f32 %v640_v10, %v5886_v48  ;;  %v681_v13 = vadd.f32 %v680_v11, %v5886_v48  ;;  %v642_v14 = vpop.f32.mrb[7].mxu0  ;;  %v682_v15 = vpop.f32.mrb[7].mxu1 }
 0x1c9   : > { %710 = vst [vmem:[#allocation2 + $0x28] sm:$0xff] %v639_v8  ;;  %726 = vst [vmem:[#allocation2 + $0xa8] sm:$0xff] %v679_v9  ;;  %v643_v16 = vadd.f32 %v642_v14, %v5888_v49  ;;  %v683_v17 = vadd.f32 %v682_v15, %v5888_v49 }
 0x1ca   : > { %711 = vst [vmem:[#allocation2 + $0x30] sm:$0xff] %v641_v12  ;;  %727 = vst [vmem:[#allocation2 + $0xb0] sm:$0xff] %v681_v13 }
 0x1cb   : > { %712 = vst [vmem:[#allocation2 + $0x38] sm:$0xff] %v643_v16  ;;  %728 = vst [vmem:[#allocation2 + $0xb8] sm:$0xff] %v683_v17 }
 0x1cd   : > { %v646_v18 = vpop.f32.mrb[8].mxu0  ;;  %v686_v19 = vpop.f32.mrb[8].mxu1 }
 0x1ce   : > { %v647_v20 = vadd.f32 %v646_v18, %v5886_v48  ;;  %v687_v21 = vadd.f32 %v686_v19, %v5886_v48  ;;  %v648_v22 = vpop.f32.mrb[9].mxu0  ;;  %v688_v23 = vpop.f32.mrb[9].mxu1 }
 0x1cf   : > { %v649_v24 = vadd.f32 %v648_v22, %v5888_v49  ;;  %v689_v25 = vadd.f32 %v688_v23, %v5888_v49  ;;  %v650_v26 = vpop.f32.mrb[10].mxu0  ;;  %v690_v27 = vpop.f32.mrb[10].mxu1 }
 0x1d0   : > { %713 = vst [vmem:[#allocation2 + $0x40] sm:$0xff] %v647_v20  ;;  %729 = vst [vmem:[#allocation2 + $0xc0] sm:$0xff] %v687_v21  ;;  %v651_v28 = vadd.f32 %v650_v26, %v5886_v48  ;;  %v691_v29 = vadd.f32 %v690_v27, %v5886_v48  ;;  %v652_v30 = vpop.f32.mrb[11].mxu0  ;;  %v692_v31 = vpop.f32.mrb[11].mxu1 }
 0x1d1   : > { %714 = vst [vmem:[#allocation2 + $0x48] sm:$0xff] %v649_v24  ;;  %730 = vst [vmem:[#allocation2 + $0xc8] sm:$0xff] %v689_v25  ;;  %v653_v32 = vadd.f32 %v652_v30, %v5888_v49  ;;  %v693_v33 = vadd.f32 %v692_v31, %v5888_v49 }
 0x1d2   : > { %715 = vst [vmem:[#allocation2 + $0x50] sm:$0xff] %v651_v28  ;;  %731 = vst [vmem:[#allocation2 + $0xd0] sm:$0xff] %v691_v29 }
 0x1d3   : > { %716 = vst [vmem:[#allocation2 + $0x58] sm:$0xff] %v653_v32  ;;  %732 = vst [vmem:[#allocation2 + $0xd8] sm:$0xff] %v693_v33 }
 0x1d5   : > { %v656_v34 = vpop.f32.mrb[12].mxu0  ;;  %v696_v35 = vpop.f32.mrb[12].mxu1 }
 0x1d6   : > { %v657_v36 = vadd.f32 %v656_v34, %v5886_v48  ;;  %v697_v37 = vadd.f32 %v696_v35, %v5886_v48  ;;  %v658_v38 = vpop.f32.mrb[13].mxu0  ;;  %v698_v39 = vpop.f32.mrb[13].mxu1 }
 0x1d7   : > { %v659_v40 = vadd.f32 %v658_v38, %v5888_v49  ;;  %v699_v41 = vadd.f32 %v698_v39, %v5888_v49  ;;  %v660_v42 = vpop.f32.mrb[14].mxu0  ;;  %v700_v43 = vpop.f32.mrb[14].mxu1 }
 0x1d8   : > { %717 = vst [vmem:[#allocation2 + $0x60] sm:$0xff] %v657_v36  ;;  %733 = vst [vmem:[#allocation2 + $0xe0] sm:$0xff] %v697_v37  ;;  %v661_v44 = vadd.f32 %v660_v42, %v5886_v48  ;;  %v701_v45 = vadd.f32 %v700_v43, %v5886_v48  ;;  %v662_v46 = vpop.f32.mrb[15].mxu0  ;;  %v702_v47 = vpop.f32.mrb[15].mxu1 }
 0x1d9   : > { %718 = vst [vmem:[#allocation2 + $0x68] sm:$0xff] %v659_v40  ;;  %734 = vst [vmem:[#allocation2 + $0xe8] sm:$0xff] %v699_v41  ;;  %v663_v50 = vadd.f32 %v662_v46, %v5888_v49  ;;  %v703_v51 = vadd.f32 %v702_v47, %v5888_v49 }
 0x1da   : > { %719 = vst [vmem:[#allocation2 + $0x70] sm:$0xff] %v661_v44  ;;  %735 = vst [vmem:[#allocation2 + $0xf0] sm:$0xff] %v701_v45 }
 0x1db   : > { %720 = vst [vmem:[#allocation2 + $0x78] sm:$0xff] %v663_v50  ;;  %736 = vst [vmem:[#allocation2 + $0xf8] sm:$0xff] %v703_v51 }
 0x1dc PF: > { %v5922_v52 = vld [vmem:[#allocation2 + $0x8] sm:$0xff]  ;;  %v5924_v53 = vld [vmem:[#allocation2 + $0x18] sm:$0xff]  ;;  %v5926_v54 = vld [vmem:[#allocation2] sm:$0xff]  ;;  %v7211_v49 = vmov 0   ;;  %p3287_p13 = scmp.lt.s32.totalorder %s5508_s30, 0 }
 0x1dd   : > { %7258 = vst [vmem:[#allocation20_spill] sm:$0xff] %v5922_v52  ;;  %7259 = vst [vmem:[#allocation21_spill] sm:$0xff] %v5924_v53  ;;  %v770_v48 = vpack.c.bf16 %v5924_v53, %v5922_v52  ;;  %v5930_v55 = vld [vmem:[#allocation2 + $0x10] sm:$0xff]  ;;  %v5932_v56 = vld [vmem:[#allocation2 + $0x28] sm:$0xff]  ;;  %1137 = vmatprep.mubr.bf16.mxu0 %v7211_v49 }
 0x1de   : > { %7260 = vst [vmem:[#allocation22_spill] sm:$0xff] %v5926_v54  ;;  %7261 = vst [vmem:[#allocation23_spill] sm:$0xff] %v5930_v55  ;;  %v5934_v57 = vld [vmem:[#allocation2 + $0x38] sm:$0xff]  ;;  %v769_v58 = vpack.c.bf16 %v5930_v55, %v5926_v54  ;;  %v5941_v60 = vld [vmem:[#allocation2 + $0x20] sm:$0xff] }
 0x1df   : > { %7262 = vst [vmem:[#allocation24_spill] sm:$0xff] %v5932_v56  ;;  %7263 = vst [vmem:[#allocation25_spill] sm:$0xff] %v5934_v57  ;;  %v772_v59 = vpack.c.bf16 %v5934_v57, %v5932_v56  ;;  %v5943_v61 = vld [vmem:[#allocation2 + $0x30] sm:$0xff]  ;;  %v5945_v62 = vld [vmem:[#allocation2 + $0x48] sm:$0xff]  ;;  %1105 = vmatprep.subr.bf16.mxu0 %v770_v48 }
 0x1e0   : > { %7264 = vst [vmem:[#allocation26_spill] sm:$0xff] %v5941_v60  ;;  %7265 = vst [vmem:[#allocation27_spill] sm:$0xff] %v5943_v61  ;;  %v5947_v63 = vld [vmem:[#allocation2 + $0x58] sm:$0xff]  ;;  %1106 = vmatpush1.bf16.msra.mxu0 %v769_v58  ;;  %v771_v0 = vpack.c.bf16 %v5943_v61, %v5941_v60  ;;  %v5953_v2 = vld [vmem:[#allocation2 + $0x40] sm:$0xff] }
 0x1e1   : > { %7266 = vst [vmem:[#allocation28_spill] sm:$0xff] %v5945_v62  ;;  %7267 = vst [vmem:[#allocation29_spill] sm:$0xff] %v5947_v63  ;;  %1107 = vmatprep.subr.bf16.mxu0 %v772_v59  ;;  %v774_v1 = vpack.c.bf16 %v5947_v63, %v5945_v62  ;;  %v5955_v3 = vld [vmem:[#allocation2 + $0x50] sm:$0xff]  ;;  %v5957_v4 = vld [vmem:[#allocation2 + $0x68] sm:$0xff] }
 0x1e2   : > { %7268 = vst [vmem:[#allocation30_spill] sm:$0xff] %v5953_v2  ;;  %7269 = vst [vmem:[#allocation31_spill] sm:$0xff] %v5955_v3  ;;  %v5959_v5 = vld [vmem:[#allocation2 + $0x78] sm:$0xff]  ;;  %v773_v6 = vpack.c.bf16 %v5955_v3, %v5953_v2  ;;  %v5965_v8 = vld [vmem:[#allocation2 + $0x60] sm:$0xff] }
 0x1e3   : > { %7270 = vst [vmem:[#allocation32_spill] sm:$0xff] %v5957_v4  ;;  %7271 = vst [vmem:[#allocation33_spill] sm:$0xff] %v5959_v5  ;;  %v776_v7 = vpack.c.bf16 %v5959_v5, %v5957_v4  ;;  %v5967_v9 = vld [vmem:[#allocation2 + $0x70] sm:$0xff]  ;;  %v5969_v10 = vld [vmem:[#allocation2 + $0x88] sm:$0xff] }
 0x1e4   : > { %1108 = vmatpush1.bf16.msra.mxu0 %v771_v0  ;;  %7272 = vst [vmem:[#allocation34_spill] sm:$0xff] %v5965_v8  ;;  %7273 = vst [vmem:[#allocation35_spill] sm:$0xff] %v5967_v9  ;;  %v5971_v11 = vld [vmem:[#allocation2 + $0x98] sm:$0xff]  ;;  %v5973_v12 = vld [vmem:[#allocation2 + $0x80] sm:$0xff]  ;;  %v775_v13 = vpack.c.bf16 %v5967_v9, %v5965_v8 }
 0x1e5   : > { %1109 = vmatprep.subr.bf16.mxu0 %v774_v1  ;;  %7274 = vst [vmem:[#allocation36_spill] sm:$0xff] %v5969_v10  ;;  %7275 = vst [vmem:[#allocation37_spill] sm:$0xff] %v5971_v11  ;;  %v5977_v14 = vld [vmem:[#allocation2 + $0x90] sm:$0xff]  ;;  %v778_v15 = vpack.c.bf16 %v5971_v11, %v5969_v10  ;;  %v5981_v16 = vld [vmem:[#allocation2 + $0xa8] sm:$0xff] }
 0x1e6   : > { %7276 = vst [vmem:[#allocation38_spill] sm:$0xff] %v5973_v12  ;;  %7277 = vst [vmem:[#allocation39_spill] sm:$0xff] %v5977_v14  ;;  %v5983_v17 = vld [vmem:[#allocation2 + $0xb8] sm:$0xff]  ;;  %v5985_v18 = vld [vmem:[#allocation2 + $0xa0] sm:$0xff]  ;;  %v777_v19 = vpack.c.bf16 %v5977_v14, %v5973_v12 }
 0x1e7   : > { %7278 = vst [vmem:[#allocation40_spill] sm:$0xff] %v5981_v16  ;;  %7279 = vst [vmem:[#allocation41_spill] sm:$0xff] %v5983_v17  ;;  %v5989_v20 = vld [vmem:[#allocation2 + $0xb0] sm:$0xff]  ;;  %v780_v21 = vpack.c.bf16 %v5983_v17, %v5981_v16  ;;  %v5993_v22 = vld [vmem:[#allocation2 + $0xc8] sm:$0xff] }
 0x1e8   : > { %1110 = vmatpush1.bf16.msra.mxu0 %v773_v6  ;;  %7280 = vst [vmem:[#allocation42_spill] sm:$0xff] %v5985_v18  ;;  %7281 = vst [vmem:[#allocation43_spill] sm:$0xff] %v5989_v20  ;;  %v5995_v23 = vld [vmem:[#allocation2 + $0xd8] sm:$0xff]  ;;  %v5997_v24 = vld [vmem:[#allocation2 + $0xc0] sm:$0xff]  ;;  %v779_v25 = vpack.c.bf16 %v5989_v20, %v5985_v18 }
 0x1e9   : > { %1111 = vmatprep.subr.bf16.mxu0 %v776_v7  ;;  %7282 = vst [vmem:[#allocation44_spill] sm:$0xff] %v5993_v22  ;;  %7283 = vst [vmem:[#allocation45_spill] sm:$0xff] %v5995_v23  ;;  %v6001_v26 = vld [vmem:[#allocation2 + $0xd0] sm:$0xff]  ;;  %v782_v27 = vpack.c.bf16 %v5995_v23, %v5993_v22  ;;  %v6005_v28 = vld [vmem:[#allocation2 + $0xe8] sm:$0xff] }
 0x1ea   : > { %7284 = vst [vmem:[#allocation46_spill] sm:$0xff] %v5997_v24  ;;  %7285 = vst [vmem:[#allocation47_spill] sm:$0xff] %v6001_v26  ;;  %v6007_v29 = vld [vmem:[#allocation2 + $0xf8] sm:$0xff]  ;;  %v781_v30 = vpack.c.bf16 %v6001_v26, %v5997_v24  ;;  %v6011_v31 = vld [vmem:[#allocation2 + $0xe0] sm:$0xff] }
 0x1eb   : > { %7286 = vst [vmem:[#allocation48_spill] sm:$0xff] %v6005_v28  ;;  %7287 = vst [vmem:[#allocation49_spill] sm:$0xff] %v6007_v29  ;;  %v784_v32 = vpack.c.bf16 %v6007_v29, %v6005_v28  ;;  %v6015_v33 = vld [vmem:[#allocation2 + $0xf0] sm:$0xff]  ;;  %v4964_v35 = vld [vmem:[#allocation8] sm:$0xff]  }
 0x1ec   : > { %1112 = vmatpush1.bf16.msra.mxu0 %v775_v13  ;;  %7288 = vst [vmem:[#allocation50_spill] sm:$0xff] %v6011_v31  ;;  %7289 = vst [vmem:[#allocation51_spill] sm:$0xff] %v6015_v33  ;;  %v783_v34 = vpack.c.bf16 %v6015_v33, %v6011_v31  ;;  %v4965_v36 = vld [vmem:[#allocation8 + $0x8] sm:$0xff]   ;;  %v4966_v37 = vld [vmem:[#allocation8 + $0x10] sm:$0xff]  }
 0x1ed   : > { %1113 = vmatprep.subr.bf16.mxu0 %v778_v15  ;;  %v4967_v38 = vld [vmem:[#allocation8 + $0x18] sm:$0xff]   ;;  %v4968_v39 = vld [vmem:[#allocation8 + $0x20] sm:$0xff]   ;;  %v4969_v40 = vld [vmem:[#allocation8 + $0x28] sm:$0xff]  }
 0x1ee   : > { %v4970_v41 = vld [vmem:[#allocation8 + $0x30] sm:$0xff]   ;;  %v4971_v42 = vld [vmem:[#allocation8 + $0x38] sm:$0xff]   ;;  %v4972_v43 = vld [vmem:[#allocation8 + $0x40] sm:$0xff]  }
 0x1ef   : > { %v4973_v44 = vld [vmem:[#allocation8 + $0x48] sm:$0xff]   ;;  %v4974_v45 = vld [vmem:[#allocation8 + $0x50] sm:$0xff]   ;;  %v4975_v46 = vld [vmem:[#allocation8 + $0x58] sm:$0xff]  }
 0x1f0   : > { %1114 = vmatpush1.bf16.msra.mxu0 %v777_v19  ;;  %v4992_v47 = vld [vmem:[%s5808_s1 + $0x104] ss:$8 sps:$4 sm:$0xff]   ;;  %v4994_v50 = vld [vmem:[%s5808_s1 + $0x100] ss:$8 sps:$4 sm:$0xff]   ;;  %v4995_v48 = vld [vmem:[%s5808_s1 + $0x114] ss:$8 sps:$4 sm:$0xff]  }
 0x1f1   : > { %1115 = vmatprep.subr.bf16.mxu0 %v780_v21  ;;  %1843 = vmatprep.subr.bf16.mxu1 %v4992_v47  ;;  %v4976_v51 = vld [vmem:[#allocation8 + $0x60] sm:$0xff]   ;;  %v4997_v58 = vld [vmem:[%s5808_s1 + $0x110] ss:$8 sps:$4 sm:$0xff]   ;;  %v4977_v1 = vld [vmem:[#allocation8 + $0x68] sm:$0xff]  }
 0x1f2   : > { %1844 = vmatpush1.bf16.msra.mxu1 %v4994_v50  ;;  %v4999_v59 = vld [vmem:[%s5808_s1 + $0x124] ss:$8 sps:$4 sm:$0xff]   ;;  %v5001_v0 = vld [vmem:[%s5808_s1 + $0x120] ss:$8 sps:$4 sm:$0xff]   ;;  %v5002_v6 = vld [vmem:[%s5808_s1 + $0x134] ss:$8 sps:$4 sm:$0xff]  }
 0x1f3   : > { %1845 = vmatprep.subr.bf16.mxu1 %v4995_v48  ;;  %v5004_v7 = vld [vmem:[%s5808_s1 + $0x130] ss:$8 sps:$4 sm:$0xff]   ;;  %v5006_v13 = vld [vmem:[%s5808_s1 + $0x144] ss:$8 sps:$4 sm:$0xff]   ;;  %v5008_v15 = vld [vmem:[%s5808_s1 + $0x140] ss:$8 sps:$4 sm:$0xff]  }
 0x1f4   : > { %1116 = vmatpush1.bf16.msra.mxu0 %v779_v25  ;;  %v4978_v19 = vld [vmem:[#allocation8 + $0x70] sm:$0xff]   ;;  %v5037_v50 = vld [vmem:[%s5808_s1 + $0x1c4] ss:$8 sps:$4 sm:$0xff]   ;;  %v5092_v17 = vld [vmem:[#allocation8 + $0x118] sm:$0xff]  }
 0x1f5   : > { %1117 = vmatprep.subr.bf16.mxu0 %v782_v27  ;;  %v5009_v21 = vld [vmem:[%s5808_s1 + $0x154] ss:$8 sps:$4 sm:$0xff]   ;;  %v5011_v25 = vld [vmem:[%s5808_s1 + $0x150] ss:$8 sps:$4 sm:$0xff]   ;;  %v5013_v27 = vld [vmem:[%s5808_s1 + $0x164] ss:$8 sps:$4 sm:$0xff]  }
 0x1f6   : > { %1846 = vmatpush1.bf16.msra.mxu1 %v4997_v58  ;;  %v5035_v47 = vld [vmem:[%s5808_s1 + $0x1b0] ss:$8 sps:$4 sm:$0xff]   ;;  %v5042_v58 = vld [vmem:[%s5808_s1 + $0x414] ss:$8 sps:$4 sm:$0xff]   ;;  %v5036_v29 = vld [vmem:[#allocation8 + $0x108] sm:$0xff]  }
 0x1f7   : > { %1847 = vmatprep.subr.bf16.mxu1 %v4999_v59  ;;  %v5040_v48 = vld [vmem:[%s5808_s1 + $0x410] ss:$8 sps:$4 sm:$0xff]   ;;  %v5052_v14 = vld [vmem:[%s5808_s1] ss:$8 sps:$4 sm:$0xff]   ;;  %v5057_v12 = vld [vmem:[%s5808_s1 + $0x14] ss:$8 sps:$4 sm:$0xff]  }
 0x1f8   : > { %1118 = vmatpush1.bf16.msra.mxu0 %v781_v30  ;;  %v5015_v30 = vld [vmem:[%s5808_s1 + $0x160] ss:$8 sps:$4 sm:$0xff]   ;;  %v4982_v59 = vld [vmem:[#allocation8 + $0x90] sm:$0xff]   ;;  %v5126_v63 = vld [vmem:[#allocation8 + $0x138] sm:$0xff]  }
 0x1f9   : > { %1119 = vmatprep.subr.bf16.mxu0 %v784_v32  ;;  %v4979_v32 = vld [vmem:[#allocation8 + $0x78] sm:$0xff]   ;;  %v5085_v23 = vld [vmem:[#allocation8 + $0x110] sm:$0xff]   ;;  %v6207_v10 = vld [vmem:[%s5808_s1 + $0x480] ss:$8 sps:$4 sm:$0xff]  }
 0x1fa   : > { %1848 = vmatpush1.bf16.msra.mxu1 %v5001_v0  ;;  %v5043_v0 = vld [vmem:[%s5808_s1 + $0x1d4] ss:$8 sps:$4 sm:$0xff]   ;;  %v5064_v9 = vld [vmem:[%s5808_s1 + $0x30] ss:$8 sps:$4 sm:$0xff]   ;;  %v6271_v3 = vld [vmem:[%s5808_s1 + $0x4c0] ss:$8 sps:$4 sm:$0xff]  }
 0x1fb   : > { %1849 = vmatprep.subr.bf16.mxu1 %v5002_v6  ;;  %v5046_v6 = vld [vmem:[%s5808_s1 + $0x1e4] ss:$8 sps:$4 sm:$0xff]   ;;  %v5066_v5 = vld [vmem:[%s5808_s1 + $0x34] ss:$8 sps:$4 sm:$0xff]   ;;  %v5079_v8 = vld [vmem:[%s5808_s1 + $0x70] ss:$8 sps:$4 sm:$0xff]  }
 0x1fc   : > { %1120 = vmatpush1.bf16.msra.mxu0 %v783_v34  ;;  %v5016_v34 = vld [vmem:[%s5808_s1 + $0x174] ss:$8 sps:$4 sm:$0xff]   ;;  %v5106_v2 = vld [vmem:[%s5808_s1 + $0xe0] ss:$8 sps:$4 sm:$0xff]   ;;  %v6288_v57 = vld [vmem:[%s5808_s1 + $0x4e4] ss:$8 sps:$4 sm:$0xff]  }
 0x1fd   : > { %v6291_v61 = vld [vmem:[%s5808_s1 + $0x4e0] ss:$8 sps:$4 sm:$0xff]   ;;  %v5244_v54 = vld [vmem:[%s5808_s1 + $0x404] ss:$8 sps:$4 sm:$0xff]  }
 0x1fe   : > { %1850 = vmatpush1.bf16.msra.mxu1 %v5004_v7  ;;  %v5048_v7 = vld [vmem:[%s5808_s1 + $0x1e0] ss:$8 sps:$4 sm:$0xff]  }
 0x1ff   : > { %1138 = vmatmul.mubr.bf16.vlgmr.msra.gmra.mrb[0].mxu0 %v4964_v35  ;;  %1851 = vmatprep.subr.bf16.mxu1 %v5006_v13  ;;  %v5018_v35 = vld [vmem:[%s5808_s1 + $0x170] ss:$8 sps:$4 sm:$0xff]  }
 0x200   : > { %1147 = vmatprep.mubr.bf16.mxu0 %v7211_v49  ;;  %v4983_v13 = vld [vmem:[#allocation8 + $0x98] sm:$0xff]  }
 0x202   : > { %1852 = vmatpush1.bf16.msra.mxu1 %v5008_v15  ;;  %v5049_v15 = vld [vmem:[%s5808_s1 + $0x1f4] ss:$8 sps:$4 sm:$0xff]  }
 0x203   : > { %1853 = vmatprep.subr.bf16.mxu1 %v5009_v21  ;;  %v5054_v21 = vld [vmem:[%s5808_s1 + $0x4] ss:$8 sps:$4 sm:$0xff]  }
 0x206   : > { %1854 = vmatpush1.bf16.msra.mxu1 %v5011_v25  ;;  %v4984_v25 = vld [vmem:[#allocation8 + $0xa0] sm:$0xff]  }
 0x207   : > { %1148 = vmatmul.mubr.bf16.gmra.mrb[4].mxu0 %v4965_v36  ;;  %1855 = vmatprep.subr.bf16.mxu1 %v5013_v27  ;;  %v5019_v36 = vld [vmem:[%s5808_s1 + $0x400] ss:$8 sps:$4 sm:$0xff]  }
 0x208   : > { %1157 = vmatprep.mubr.bf16.mxu0 %v7211_v49  ;;  %v5058_v27 = vld [vmem:[%s5808_s1 + $0x420] ss:$8 sps:$4 sm:$0xff]  }
 0x20a   : > { %1856 = vmatpush1.bf16.msra.mxu1 %v5015_v30  ;;  %v5060_v30 = vld [vmem:[%s5808_s1 + $0x424] ss:$8 sps:$4 sm:$0xff]  }
 0x20b   : > { %1857 = vmatprep.subr.bf16.mxu1 %v5016_v34  ;;  %v4986_v34 = vld [vmem:[#allocation8 + $0xb0] sm:$0xff]  }
 0x20e   : > { %1858 = vmatpush1.bf16.msra.mxu1 %v5018_v35  ;;  %v5076_v35 = vld [vmem:[%s5808_s1 + $0x430] ss:$8 sps:$4 sm:$0xff]  }
 0x20f   : > { %1158 = vmatmul.mubr.bf16.gmra.mrb[8].mxu0 %v4966_v37  ;;  %v5021_v37 = vld [vmem:[%s5808_s1 + $0x404] ss:$8 sps:$4 sm:$0xff]  }
 0x210   : > { %1167 = vmatprep.mubr.bf16.mxu0 %v7211_v49  ;;  %3098 = vmatprep.subr.bf16.mxu0 %v5021_v37  ;;  %v4987_v37 = vld [vmem:[#allocation8 + $0xb8] sm:$0xff]  }
 0x211   : > { %3099 = vmatpush1.bf16.msra.mxu0 %v5019_v36  ;;  %v5078_v36 = vld [vmem:[%s5808_s1 + $0x434] ss:$8 sps:$4 sm:$0xff]  }
 0x212   : > { %3100 = vmatprep.subr.bf16.mxu0 %v5042_v58  ;;  %v5116_v58 = vld [vmem:[%s5808_s1 + $0x450] ss:$8 sps:$4 sm:$0xff]  }
 0x215   : > { %3101 = vmatpush1.bf16.msra.mxu0 %v5040_v48 }
 0x216   : > { %3102 = vmatprep.subr.bf16.mxu0 %v5060_v30  ;;  %v5029_v30 = vld [vmem:[#allocation8 + $0x100] sm:$0xff]  }
 0x217   : > { %1168 = vmatmul.mubr.bf16.gmra.mrb[12].mxu0 %v4967_v38  ;;  %v5023_v38 = vld [vmem:[%s5808_s1 + $0x184] ss:$8 sps:$4 sm:$0xff]  }
 0x218   : > { %1177 = vmatprep.mubr.bf16.mxu0 %v7211_v49  ;;  %1859 = vmatprep.subr.bf16.mxu1 %v5023_v38  ;;  %v4988_v38 = vld [vmem:[#allocation8 + $0xc0] sm:$0xff]  }
 0x219   : > { %3103 = vmatpush1.bf16.msra.mxu0 %v5058_v27 }
 0x21a   : > { %3104 = vmatprep.subr.bf16.mxu0 %v5078_v36 }
 0x21d   : > { %3105 = vmatpush1.bf16.msra.mxu0 %v5076_v35 }
 0x21f   : > { %1178 = vmatmul.mubr.bf16.gmra.mrb[16].mxu0 %v4968_v39  ;;  %v5025_v39 = vld [vmem:[%s5808_s1 + $0x180] ss:$8 sps:$4 sm:$0xff]  }
 0x220   : > { %1187 = vmatprep.mubr.bf16.mxu0 %v7211_v49  ;;  %1860 = vmatpush1.bf16.msra.mxu1 %v5025_v39  ;;  %v4989_v39 = vld [vmem:[#allocation8 + $0xc8] sm:$0xff]  }
 0x227   : > { %1188 = vmatmul.mubr.bf16.gmra.mrb[20].mxu0 %v4969_v40  ;;  %v4980_v40 = vld [vmem:[#allocation8 + $0x80] sm:$0xff]  }
 0x228   : > { %1197 = vmatprep.mubr.bf16.mxu0 %v7211_v49 }
 0x22f   : > { %1198 = vmatmul.mubr.bf16.gmra.mrb[24].mxu0 %v4970_v41  ;;  %v5026_v41 = vld [vmem:[%s5808_s1 + $0x194] ss:$8 sps:$4 sm:$0xff]  }
 0x230   : > { %1207 = vmatprep.mubr.bf16.mxu0 %v7211_v49  ;;  %1861 = vmatprep.subr.bf16.mxu1 %v5026_v41  ;;  %v5098_v41 = vld [vmem:[%s5808_s1 + $0x444] ss:$8 sps:$4 sm:$0xff]  }
 0x231   : > { %3106 = vmatprep.subr.bf16.mxu0 %v5098_v41 }
 0x237   : > { %1208 = vmatmul.mubr.bf16.gmra.mrb[28].mxu0 %v4971_v42  ;;  %v5028_v42 = vld [vmem:[%s5808_s1 + $0x190] ss:$8 sps:$4 sm:$0xff]  }
 0x238   : > { %1217 = vmatprep.mubr.bf16.mxu0 %v7211_v49  ;;  %1862 = vmatpush1.bf16.msra.mxu1 %v5028_v42  ;;  %v4990_v42 = vld [vmem:[#allocation8 + $0xd0] sm:$0xff]  }
 0x23f   : > { %1218 = vmatmul.mubr.bf16.gmra.mrb[32].mxu0 %v4972_v43  ;;  %v5030_v43 = vld [vmem:[%s5808_s1 + $0x1a4] ss:$8 sps:$4 sm:$0xff]  }
 0x240   : > { %1227 = vmatprep.mubr.bf16.mxu0 %v7211_v49  ;;  %1863 = vmatprep.subr.bf16.mxu1 %v5030_v43 }
 0x247   : > { %1228 = vmatmul.mubr.bf16.gmra.mrb[36].mxu0 %v4973_v44  ;;  %v5032_v44 = vld [vmem:[%s5808_s1 + $0x1a0] ss:$8 sps:$4 sm:$0xff]  }
 0x248   : > { %1237 = vmatprep.mubr.bf16.mxu0 %v7211_v49  ;;  %1864 = vmatpush1.bf16.msra.mxu1 %v5032_v44 }
 0x24f   : > { %1238 = vmatmul.mubr.bf16.gmra.mrb[40].mxu0 %v4974_v45  ;;  %v4981_v45 = vld [vmem:[#allocation8 + $0x88] sm:$0xff]  }
 0x250   : > { %1247 = vmatprep.mubr.bf16.mxu0 %v7211_v49 }
 0x257   : > { %1248 = vmatmul.mubr.bf16.gmra.mrb[44].mxu0 %v4975_v46  ;;  %v5033_v46 = vld [vmem:[%s5808_s1 + $0x1b4] ss:$8 sps:$4 sm:$0xff]  }
 0x258   : > { %1257 = vmatprep.mubr.bf16.mxu0 %v7211_v49  ;;  %1865 = vmatprep.subr.bf16.mxu1 %v5033_v46 }
 0x259   : > { %1866 = vmatpush1.bf16.msra.mxu1 %v5035_v47  ;;  %v6177_v47 = vld [vmem:[%s5808_s1 + $0x474] ss:$8 sps:$4 sm:$0xff]  }
 0x25a   : > { %1867 = vmatprep.subr.bf16.mxu1 %v5037_v50 }
 0x25f   : > { %1258 = vmatmul.mubr.bf16.gmra.mrb[48].mxu0 %v4976_v51  ;;  %v5039_v51 = vld [vmem:[%s5808_s1 + $0x1c0] ss:$8 sps:$4 sm:$0xff]  }
 0x260   : > { %1267 = vmatprep.mubr.bf16.mxu0 %v7211_v49  ;;  %1868 = vmatpush1.bf16.msra.mxu1 %v5039_v51 }
 0x261   : > { %1869 = vmatprep.subr.bf16.mxu1 %v5043_v0 }
 0x267   : > { %1268 = vmatmul.mubr.bf16.gmra.mrb[52].mxu0 %v4977_v1  ;;  %v5045_v1 = vld [vmem:[%s5808_s1 + $0x1d0] ss:$8 sps:$4 sm:$0xff]  }
 0x268   : > { %1277 = vmatprep.mubr.bf16.mxu0 %v7211_v49  ;;  %1870 = vmatpush1.bf16.msra.mxu1 %v5045_v1  ;;  %v4998_v1 = vld [vmem:[#allocation8 + $0xe0] sm:$0xff]  }
 0x269   : > { %1871 = vmatprep.subr.bf16.mxu1 %v5046_v6 }
 0x26c   : > { %1872 = vmatpush1.bf16.msra.mxu1 %v5048_v7  ;;  %v6210_v7 = vld [vmem:[%s5808_s1 + $0x484] ss:$8 sps:$4 sm:$0xff]  }
 0x26d   : > { %1873 = vmatprep.subr.bf16.mxu1 %v5049_v15 }
 0x26f   : > { %1278 = vmatmul.mubr.bf16.gmra.mrb[56].mxu0 %v4978_v19  ;;  %v5051_v19 = vld [vmem:[%s5808_s1 + $0x1f0] ss:$8 sps:$4 sm:$0xff]  }
 0x270   : > { %1287 = vmatprep.mubr.bf16.mxu0 %v7211_v49  ;;  %1874 = vmatpush1.bf16.msra.mxu1 %v5051_v19 }
 0x271   : > { %2116 = vmatprep.subr.bf16.mxu1 %v5054_v21 }
 0x277   : > { %1288 = vmatmul.mubr.bf16.gmra.mrb[60].mxu0 %v4979_v32  ;;  %v4985_v32 = vld [vmem:[#allocation8 + $0xa8] sm:$0xff]  }
 0x278   : > { %1297 = vmatprep.mubr.bf16.mxu0 %v7211_v49 }
 0x27f   : > { %1298 = vmatmul.mubr.bf16.gmra.mrb[64].mxu0 %v4980_v40  ;;  %v5096_v40 = vld [vmem:[%s5808_s1 + $0x440] ss:$8 sps:$4 sm:$0xff]  }
 0x280   : > { %1307 = vmatprep.mubr.bf16.mxu0 %v7211_v49  ;;  %3107 = vmatpush1.bf16.msra.mxu0 %v5096_v40 }
 0x287   : > { %1308 = vmatmul.mubr.bf16.gmra.mrb[68].mxu0 %v4981_v45  ;;  %v4991_v45 = vld [vmem:[#allocation8 + $0xd8] sm:$0xff]  }
 0x288   : > { %1317 = vmatprep.mubr.bf16.mxu0 %v7211_v49 }
 0x28f   : > { %1318 = vmatmul.mubr.bf16.gmra.mrb[72].mxu0 %v4982_v59  ;;  %v5118_v59 = vld [vmem:[%s5808_s1 + $0x454] ss:$8 sps:$4 sm:$0xff]  }
 0x290   : > { %1327 = vmatprep.mubr.bf16.mxu0 %v7211_v49  ;;  %3108 = vmatprep.subr.bf16.mxu0 %v5118_v59 }
 0x291   : > { %3109 = vmatpush1.bf16.msra.mxu0 %v5116_v58 }
 0x297   : > { %1328 = vmatmul.mubr.bf16.gmra.mrb[76].mxu0 %v4983_v13 }
 0x298   : > { %1337 = vmatprep.mubr.bf16.mxu0 %v7211_v49 }
 0x29f   : > { %1338 = vmatmul.mubr.bf16.gmra.mrb[80].mxu0 %v4984_v25  ;;  %v5005_v25 = vld [vmem:[#allocation8 + $0xe8] sm:$0xff]  }
 0x2a0   : > { %1347 = vmatprep.mubr.bf16.mxu0 %v7211_v49 }
 0x2a7   : > { %1348 = vmatmul.mubr.bf16.gmra.mrb[84].mxu0 %v4985_v32 }
 0x2a8   : > { %1357 = vmatprep.mubr.bf16.mxu0 %v7211_v49 }
 0x2af   : > { %1358 = vmatmul.mubr.bf16.gmra.mrb[88].mxu0 %v4986_v34 }
 0x2b0   : > { %1367 = vmatprep.mubr.bf16.mxu0 %v7211_v49 }
 0x2b7   : > { %1368 = vmatmul.mubr.bf16.gmra.mrb[92].mxu0 %v4987_v37  ;;  %v5012_v37 = vld [vmem:[#allocation8 + $0xf0] sm:$0xff]  }
 0x2b8   : > { %1377 = vmatprep.mubr.bf16.mxu0 %v7211_v49 }
 0x2bf   : > { %1378 = vmatmul.mubr.bf16.gmra.mrb[96].mxu0 %v4988_v38 }
 0x2c0   : > { %1387 = vmatprep.mubr.bf16.mxu0 %v7211_v49 }
 0x2c7   : > { %1388 = vmatmul.mubr.bf16.gmra.mrb[100].mxu0 %v4989_v39 }
 0x2c8   : > { %1397 = vmatprep.mubr.bf16.mxu0 %v7211_v49 }
 0x2cf   : > { %1398 = vmatmul.mubr.bf16.gmra.mrb[104].mxu0 %v4990_v42  ;;  %v5136_v42 = vld [vmem:[%s5808_s1 + $0x460] ss:$8 sps:$4 sm:$0xff]  }
 0x2d0   : > { %1407 = vmatprep.mubr.bf16.mxu0 %v7211_v49 }
 0x2d2   : > { %v6089_v43 = vpop.f32.mrb[0].mxu0 }
 0x2d3   : > { %v6091_v44 = vpop.f32.mrb[1].mxu0 }
 0x2d4   : > { %v6093_v46 = vpop.f32.mrb[2].mxu0 }
 0x2d5   : > { %v6097_v50 = vpop.f32.mrb[3].mxu0  ;;  %v7292_v56 = vpack.c.bf16 %v6093_v46, %v6089_v43  ;;  %v5123_v46 = vld [vmem:[%s5808_s1 + $0x220] ss:$8 sps:$4 sm:$0xff]   ;;  %v5132_v43 = vld [vmem:[%s5808_s1 + $0x244] ss:$8 sps:$4 sm:$0xff]  }
 0x2d7   : > { %1408 = vmatmul.mubr.bf16.gmra.mrb[108].mxu0 %v4991_v45  ;;  %v5138_v45 = vld [vmem:[%s5808_s1 + $0x464] ss:$8 sps:$4 sm:$0xff]  }
 0x2d8   : > { %1417 = vmatprep.mubr.bf16.mxu0 %v7211_v49  ;;  %3110 = vmatprep.subr.bf16.mxu0 %v5138_v45 }
 0x2d9   : > { %3111 = vmatpush1.bf16.msra.mxu0 %v5136_v42 }
 0x2da   : > { %v6102_v48 = vpop.f32.mrb[4].mxu0  ;;  %3112 = vmatprep.subr.bf16.mxu0 %v6177_v47 }
 0x2db   : > { %v6106_v0 = vpop.f32.mrb[5].mxu0 }
 0x2dc   : > { %v6108_v6 = vpop.f32.mrb[6].mxu0 }
 0x2dd   : > { %v6112_v13 = vpop.f32.mrb[7].mxu0 }
 0x2df   : > { %1418 = vmatmul.mubr.bf16.gmra.mrb[112].mxu0 %v4998_v1  ;;  %v5022_v1 = vld [vmem:[#allocation8 + $0xf8] sm:$0xff]  }
 0x2e0   : > { %1427 = vmatprep.mubr.bf16.mxu0 %v7211_v49 }
 0x2e2   : > { %v6117_v19 = vpop.f32.mrb[8].mxu0 }
 0x2e3   : > { %v6119_v21 = vpop.f32.mrb[9].mxu0 }
 0x2e4   : > { %v6121_v27 = vpop.f32.mrb[10].mxu0 }
 0x2e5   : > { %v6125_v32 = vpop.f32.mrb[11].mxu0 }
 0x2e7   : > { %1428 = vmatmul.mubr.bf16.gmra.mrb[116].mxu0 %v5005_v25 }
 0x2e8   : > { %1437 = vmatprep.mubr.bf16.mxu0 %v7211_v49 }
 0x2ea   : > { %v6130_v35 = vpop.f32.mrb[12].mxu0 }
 0x2eb   : > { %v6132_v36 = vpop.f32.mrb[13].mxu0 }
 0x2ec   : > { %v6134_v38 = vpop.f32.mrb[14].mxu0 }
 0x2ed   : > { %v6138_v40 = vpop.f32.mrb[15].mxu0 }
 0x2ef   : > { %1438 = vmatmul.mubr.bf16.gmra.mrb[120].mxu0 %v5012_v37  ;;  %v6174_v37 = vld [vmem:[%s5808_s1 + $0x470] ss:$8 sps:$4 sm:$0xff]  }
 0x2f0   : > { %1447 = vmatprep.mubr.bf16.mxu0 %v7211_v49  ;;  %3113 = vmatpush1.bf16.msra.mxu0 %v6174_v37 }
 0x2f1   : > { %3114 = vmatprep.subr.bf16.mxu0 %v6210_v7 }
 0x2f2   : > { %v6145_v58 = vpop.f32.mrb[16].mxu0 }
 0x2f3   : > { %v6147_v59 = vpop.f32.mrb[17].mxu0 }
 0x2f4   : > { %v6149_v25 = vpop.f32.mrb[18].mxu0  ;;  %3115 = vmatpush1.bf16.msra.mxu0 %v6207_v10 }
 0x2f5   : > { %v6153_v41 = vpop.f32.mrb[19].mxu0 }
 0x2f7   : > { %1448 = vmatmul.mubr.bf16.gmra.mrb[124].mxu0 %v5022_v1 }
 0x2f8   : > { %1457 = vmatprep.mubr.bf16.mxu0 %v7211_v49 }
 0x2fa   : > { %v6158_v42 = vpop.f32.mrb[20].mxu0 }
 0x2fb   : > { %v6160_v45 = vpop.f32.mrb[21].mxu0 }
 0x2fc   : > { %v6162_v34 = vpop.f32.mrb[22].mxu0 }
 0x2fd   : > { %v6166_v39 = vpop.f32.mrb[23].mxu0 }
 0x2ff   : > { %1458 = vmatmul.mubr.bf16.gmra.mrb[128].mxu0 %v5029_v30 }
 0x300   : > { %1467 = vmatprep.mubr.bf16.mxu0 %v7211_v49 }
 0x302   : > { %v6171_v1 = vpop.f32.mrb[24].mxu0 }
 0x303   : > { %v6179_v51 = vpop.f32.mrb[25].mxu0 }
 0x304   : > { %v6181_v33 = vpop.f32.mrb[26].mxu0 }
 0x305   : > { %v6186_v15 = vpop.f32.mrb[27].mxu0 }
 0x307   : > { %1468 = vmatmul.mubr.bf16.gmra.mrb[132].mxu0 %v5036_v29 }
 0x308   : > { %1477 = vmatprep.mubr.bf16.mxu0 %v7211_v49 }
 0x30a   : > { %v6192_v28 = vpop.f32.mrb[28].mxu0 }
 0x30b   : > { %v6194_v31 = vpop.f32.mrb[29].mxu0 }
 0x30c   : > { %v6196_v26 = vpop.f32.mrb[30].mxu0 }
 0x30d   : > { %v6200_v22 = vpop.f32.mrb[31].mxu0 }
 0x30f   : > { %1478 = vmatmul.mubr.bf16.gmra.mrb[136].mxu0 %v5085_v23  ;;  %v5055_v23 = vld [vmem:[%s5808_s1 + $0x10] ss:$8 sps:$4 sm:$0xff]  }
 0x310   : > { %1487 = vmatprep.mubr.bf16.mxu0 %v7211_v49 }
 0x312   : > { %v1219_v30 = vpop.f32.mrb[32].mxu0 }
 0x313   : > { %v1221_v24 = vpop.f32.mrb[33].mxu0 }
 0x314   : > { %v1223_v20 = vpop.f32.mrb[34].mxu0 }
 0x315   : > { %v1554_v16 = vpack.c.bf16 %v1223_v20, %v1219_v30  ;;  %v1225_v18 = vpop.f32.mrb[35].mxu0  ;;  %v5102_v30 = vld [vmem:[#allocation8 + $0x120] sm:$0xff]  }
 0x316   : > { %v1555_v11 = vpack.c.bf16 %v1225_v18, %v1221_v24  ;;  %v5063_v24 = vld [vmem:[%s5808_s1 + $0x24] ss:$8 sps:$4 sm:$0xff]  }
 0x317   : > { %1488 = vmatmul.mubr.bf16.gmra.mrb[140].mxu0 %v5092_v17 }
 0x318   : > { %1875 = vmatprep.mubr.bf16.mxu1 %v1555_v11  ;;  %1497 = vmatprep.mubr.bf16.mxu0 %v7211_v49 }
 0x319   : > { %1876 = vmatmul.mubr.bf16.vlgmr.msra.gmra.mrb[0].mxu1 %v1554_v16  ;;  %v5061_v16 = vld [vmem:[%s5808_s1 + $0x20] ss:$8 sps:$4 sm:$0xff]  }
 0x31a   : > { %2117 = vmatpush1.bf16.msra.mxu1 %v5052_v14  ;;  %v1229_v20 = vpop.f32.mrb[36].mxu0  ;;  %v7290_v14 = vmov 0  }
 0x31b   : > { %v1231_v18 = vpop.f32.mrb[37].mxu0  ;;  %2118 = vmatprep.subr.bf16.mxu1 %v5057_v12 }
 0x31c   : > { %v1233_v29 = vpop.f32.mrb[38].mxu0 }
 0x31d   : > { %v1556_v17 = vpack.c.bf16 %v1233_v29, %v1229_v20  ;;  %v1235_v11 = vpop.f32.mrb[39].mxu0  ;;  %v5069_v29 = vld [vmem:[%s5808_s1 + $0x44] ss:$8 sps:$4 sm:$0xff]  }
 0x31e   : > { %v1557_v49 = vpack.c.bf16 %v1235_v11, %v1231_v18  ;;  %2119 = vmatpush1.bf16.msra.mxu1 %v5055_v23  ;;  %v5109_v20 = vld [vmem:[#allocation8 + $0x128] sm:$0xff]   ;;  %v5072_v11 = vld [vmem:[%s5808_s1 + $0x54] ss:$8 sps:$4 sm:$0xff]  }
 0x31f   : > { %2120 = vmatprep.subr.bf16.mxu1 %v5063_v24  ;;  %1498 = vmatmul.mubr.bf16.gmra.mrb[144].mxu0 %v5102_v30 }
 0x320   : > { %1885 = vmatprep.mubr.bf16.mxu1 %v1557_v49  ;;  %1507 = vmatprep.mubr.bf16.mxu0 %v7290_v14  ;;  %v5067_v49 = vld [vmem:[%s5808_s1 + $0x40] ss:$8 sps:$4 sm:$0xff]  }
 0x321   : > { %1886 = vmatmul.mubr.bf16.gmra.mrb[4].mxu1 %v1556_v17  ;;  %v5070_v17 = vld [vmem:[%s5808_s1 + $0x50] ss:$8 sps:$4 sm:$0xff]  }
 0x322   : > { %2121 = vmatpush1.bf16.msra.mxu1 %v5061_v16  ;;  %v1239_v12 = vpop.f32.mrb[40].mxu0  ;;  %v6228_v16 = vld [vmem:[%s5808_s1 + $0x490] ss:$8 sps:$4 sm:$0xff]  }
 0x323   : > { %v1241_v4 = vpop.f32.mrb[41].mxu0  ;;  %2122 = vmatprep.subr.bf16.mxu1 %v5066_v5 }
 0x324   : > { %v1243_v23 = vpop.f32.mrb[42].mxu0 }
 0x325   : > { %v1558_v18 = vpack.c.bf16 %v1243_v23, %v1239_v12  ;;  %v1245_v24 = vpop.f32.mrb[43].mxu0  ;;  %v6231_v12 = vld [vmem:[%s5808_s1 + $0x494] ss:$8 sps:$4 sm:$0xff]  }
 0x326   : > { %v1559_v30 = vpack.c.bf16 %v1245_v24, %v1241_v4  ;;  %2123 = vmatpush1.bf16.msra.mxu1 %v5064_v9  ;;  %v5075_v9 = vld [vmem:[%s5808_s1 + $0x64] ss:$8 sps:$4 sm:$0xff]   ;;  %v5119_v23 = vld [vmem:[#allocation8 + $0x130] sm:$0xff]   ;;  %3116 = vmatprep.subr.bf16.mxu0 %v6231_v12 }
 0x327   : > { %2124 = vmatprep.subr.bf16.mxu1 %v5069_v29  ;;  %1508 = vmatmul.mubr.bf16.gmra.mrb[148].mxu0 %v5109_v20 }
 0x328   : > { %1895 = vmatprep.mubr.bf16.mxu1 %v1559_v30  ;;  %1517 = vmatprep.mubr.bf16.mxu0 %v7290_v14  ;;  %v5073_v30 = vld [vmem:[%s5808_s1 + $0x60] ss:$8 sps:$4 sm:$0xff]  }
 0x329   : > { %1896 = vmatmul.mubr.bf16.gmra.mrb[8].mxu1 %v1558_v18  ;;  %3117 = vmatpush1.bf16.msra.mxu0 %v6228_v16 }
 0x32a   : > { %2125 = vmatpush1.bf16.msra.mxu1 %v5067_v49  ;;  %v1249_v5 = vpop.f32.mrb[44].mxu0  ;;  %v5081_v49 = vld [vmem:[%s5808_s1 + $0x74] ss:$8 sps:$4 sm:$0xff]  }
 0x32b   : > { %v1251_v4 = vpop.f32.mrb[45].mxu0  ;;  %2126 = vmatprep.subr.bf16.mxu1 %v5072_v11 }
 0x32c   : > { %v1253_v29 = vpop.f32.mrb[46].mxu0 }
 0x32d   : > { %v1560_v20 = vpack.c.bf16 %v1253_v29, %v1249_v5  ;;  %v1255_v24 = vpop.f32.mrb[47].mxu0  ;;  %v5084_v29 = vld [vmem:[%s5808_s1 + $0x84] ss:$8 sps:$4 sm:$0xff]  }
 0x32e   : > { %v1561_v18 = vpack.c.bf16 %v1255_v24, %v1251_v4  ;;  %2127 = vmatpush1.bf16.msra.mxu1 %v5070_v17 }
 0x32f   : > { %2128 = vmatprep.subr.bf16.mxu1 %v5075_v9  ;;  %1518 = vmatmul.mubr.bf16.gmra.mrb[152].mxu0 %v5119_v23  ;;  %v5082_v23 = vld [vmem:[%s5808_s1 + $0x80] ss:$8 sps:$4 sm:$0xff]  }
 0x330   : > { %1905 = vmatprep.mubr.bf16.mxu1 %v1561_v18  ;;  %1527 = vmatprep.mubr.bf16.mxu0 %v7290_v14  ;;  %v5088_v14 = vld [vmem:[%s5808_s1 + $0x94] ss:$8 sps:$4 sm:$0xff]   ;;  %v5086_v18 = vld [vmem:[%s5808_s1 + $0x90] ss:$8 sps:$4 sm:$0xff]  }
 0x331   : > { %1906 = vmatmul.mubr.bf16.gmra.mrb[12].mxu1 %v1560_v20 }
 0x332   : > { %2129 = vmatpush1.bf16.msra.mxu1 %v5073_v30  ;;  %v1259_v11 = vpop.f32.mrb[48].mxu0 }
 0x333   : > { %v1261_v5 = vpop.f32.mrb[49].mxu0  ;;  %2130 = vmatprep.subr.bf16.mxu1 %v5081_v49  ;;  %v5091_v49 = vld [vmem:[%s5808_s1 + $0xa4] ss:$8 sps:$4 sm:$0xff]  }
 0x334   : > { %v1263_v4 = vpop.f32.mrb[50].mxu0 }
 0x335   : > { %v1562_v17 = vpack.c.bf16 %v1263_v4, %v1259_v11  ;;  %v1265_v9 = vpop.f32.mrb[51].mxu0 }
 0x336   : > { %v1563_v24 = vpack.c.bf16 %v1265_v9, %v1261_v5  ;;  %2131 = vmatpush1.bf16.msra.mxu1 %v5079_v8  ;;  %v5095_v9 = vld [vmem:[%s5808_s1 + $0xb4] ss:$8 sps:$4 sm:$0xff]  }
 0x337   : > { %2132 = vmatprep.subr.bf16.mxu1 %v5084_v29  ;;  %1528 = vmatmul.mubr.bf16.gmra.mrb[156].mxu0 %v5126_v63  ;;  %v5089_v29 = vld [vmem:[%s5808_s1 + $0xa0] ss:$8 sps:$4 sm:$0xff]  }
 0x338   : > { %1915 = vmatprep.mubr.bf16.mxu1 %v1563_v24  ;;  %v6247_v63 = vld [vmem:[%s5808_s1 + $0x4a0] ss:$8 sps:$4 sm:$0xff]  }
 0x339   : > { %1916 = vmatmul.mubr.bf16.gmra.mrb[16].mxu1 %v1562_v17  ;;  %v6250_v17 = vld [vmem:[%s5808_s1 + $0x4a4] ss:$8 sps:$4 sm:$0xff]  }
 0x33a   : > { %2133 = vmatpush1.bf16.msra.mxu1 %v5082_v23  ;;  %v1269_v20 = vpop.f32.mrb[52].mxu0  ;;  %3118 = vmatprep.subr.bf16.mxu0 %v6250_v17  ;;  %v5093_v23 = vld [vmem:[%s5808_s1 + $0xb0] ss:$8 sps:$4 sm:$0xff]  }
 0x33b   : > { %v1271_v30 = vpop.f32.mrb[53].mxu0  ;;  %2134 = vmatprep.subr.bf16.mxu1 %v5088_v14  ;;  %3119 = vmatpush1.bf16.msra.mxu0 %v6247_v63 }
 0x33c   : > { %v1273_v11 = vpop.f32.mrb[54].mxu0 }
 0x33d   : > { %v1564_v5 = vpack.c.bf16 %v1273_v11, %v1269_v20  ;;  %v1275_v8 = vpop.f32.mrb[55].mxu0  ;;  %v5101_v20 = vld [vmem:[%s5808_s1 + $0xc4] ss:$8 sps:$4 sm:$0xff]  }
 0x33e   : > { %v1565_v4 = vpack.c.bf16 %v1275_v8, %v1271_v30  ;;  %2135 = vmatpush1.bf16.msra.mxu1 %v5086_v18  ;;  %v6258_v18 = vld [vmem:[%s5808_s1 + $0x4b4] ss:$8 sps:$4 sm:$0xff]  }
 0x33f   : > { %2136 = vmatprep.subr.bf16.mxu1 %v5091_v49  ;;  %v6261_v49 = vld [vmem:[%s5808_s1 + $0x4b0] ss:$8 sps:$4 sm:$0xff]   ;;  %3120 = vmatprep.subr.bf16.mxu0 %v6258_v18 }
 0x340   : > { %1925 = vmatprep.mubr.bf16.mxu1 %v1565_v4  ;;  %v5099_v4 = vld [vmem:[%s5808_s1 + $0xc0] ss:$8 sps:$4 sm:$0xff]   ;;  %3121 = vmatpush1.bf16.msra.mxu0 %v6261_v49 }
 0x341   : > { %1926 = vmatmul.mubr.bf16.gmra.mrb[20].mxu1 %v1564_v5 }
 0x342   : > { %2137 = vmatpush1.bf16.msra.mxu1 %v5089_v29  ;;  %v1279_v24 = vpop.f32.mrb[56].mxu0  ;;  %v5105_v29 = vld [vmem:[%s5808_s1 + $0xd4] ss:$8 sps:$4 sm:$0xff]  }
 0x343   : > { %v1281_v14 = vpop.f32.mrb[57].mxu0  ;;  %2138 = vmatprep.subr.bf16.mxu1 %v5095_v9  ;;  %v6268_v9 = vld [vmem:[%s5808_s1 + $0x4c4] ss:$8 sps:$4 sm:$0xff]  }
 0x344   : > { %v1283_v30 = vpop.f32.mrb[58].mxu0  ;;  %3122 = vmatprep.subr.bf16.mxu0 %v6268_v9 }
 0x345   : > { %v1566_v11 = vpack.c.bf16 %v1283_v30, %v1279_v24  ;;  %v1285_v5 = vpop.f32.mrb[59].mxu0  ;;  %3123 = vmatpush1.bf16.msra.mxu0 %v6271_v3  ;;  %v6278_v30 = vld [vmem:[%s5808_s1 + $0x4d4] ss:$8 sps:$4 sm:$0xff]  }
 0x346   : > { %v1567_v8 = vpack.c.bf16 %v1285_v5, %v1281_v14  ;;  %2139 = vmatpush1.bf16.msra.mxu1 %v5093_v23  ;;  %v5103_v23 = vld [vmem:[%s5808_s1 + $0xd0] ss:$8 sps:$4 sm:$0xff]   ;;  %3124 = vmatprep.subr.bf16.mxu0 %v6278_v30 }
 0x347   : > { %2140 = vmatprep.subr.bf16.mxu1 %v5101_v20  ;;  %v5108_v20 = vld [vmem:[%s5808_s1 + $0xe4] ss:$8 sps:$4 sm:$0xff]  }
 0x348   : > { %1935 = vmatprep.mubr.bf16.mxu1 %v1567_v8  ;;  %v6281_v8 = vld [vmem:[%s5808_s1 + $0x4d0] ss:$8 sps:$4 sm:$0xff]  }
 0x349   : > { %1936 = vmatmul.mubr.bf16.gmra.mrb[24].mxu1 %v1566_v11  ;;  %3125 = vmatpush1.bf16.msra.mxu0 %v6281_v8 }
 0x34a   : > { %2141 = vmatpush1.bf16.msra.mxu1 %v5099_v4  ;;  %v1289_v24 = vpop.f32.mrb[60].mxu0  ;;  %3126 = vmatprep.subr.bf16.mxu0 %v6288_v57 }
 0x34b   : > { %v1291_v14 = vpop.f32.mrb[61].mxu0  ;;  %2142 = vmatprep.subr.bf16.mxu1 %v5105_v29  ;;  %v5112_v29 = vld [vmem:[%s5808_s1 + $0xf4] ss:$8 sps:$4 sm:$0xff]  }
 0x34c   : > { %v1293_v5 = vpop.f32.mrb[62].mxu0 }
 0x34d   : > { %v1568_v11 = vpack.c.bf16 %v1293_v5, %v1289_v24  ;;  %v1295_v62 = vpop.f32.mrb[63].mxu0  ;;  %v5110_v24 = vld [vmem:[%s5808_s1 + $0xf0] ss:$8 sps:$4 sm:$0xff]   ;;  %3127 = vmatpush1.bf16.msra.mxu0 %v6291_v61  ;;  %v6305_v5 = vld [vmem:[%s5808_s1 + $0x4f4] ss:$8 sps:$4 sm:$0xff]  }
 0x34e   : > { %v1569_v4 = vpack.c.bf16 %v1295_v62, %v1291_v14  ;;  %2143 = vmatpush1.bf16.msra.mxu1 %v5103_v23  ;;  %v7291_v62 = vpack.c.bf16 %v6097_v50, %v6091_v44  ;;  %v5115_v14 = vld [vmem:[%s5808_s1 + $0x204] ss:$8 sps:$4 sm:$0xff]   ;;  %3128 = vmatprep.subr.bf16.mxu0 %v6305_v5  ;;  %v7293_v44 = vpack.c.bf16 %v6112_v13, %v6106_v0  ;;  %v5129_v13 = vld [vmem:[%s5808_s1 + $0x234] ss:$8 sps:$4 sm:$0xff]  }
 0x34f   : > { %2144 = vmatprep.subr.bf16.mxu1 %v5108_v20 }
 0x350   : > { %1945 = vmatprep.mubr.bf16.mxu1 %v1569_v4  ;;  %v5113_v4 = vld [vmem:[%s5808_s1 + $0x200] ss:$8 sps:$4 sm:$0xff]  }
 0x351   : > { %1946 = vmatmul.mubr.bf16.gmra.mrb[28].mxu1 %v1568_v11 }
 0x352   : > { %2145 = vmatpush1.bf16.msra.mxu1 %v5106_v2  ;;  %2148 = vmatprep.mubr.bf16.mxu1 %v7291_v62  ;;  %v6298_v23 = vpop.f32.mrb[64].mxu0  ;;  %v6310_v2 = vld [vmem:[%s5808_s1 + $0x4f0] ss:$8 sps:$4 sm:$0xff]   ;;  %v5122_v62 = vld [vmem:[%s5808_s1 + $0x214] ss:$8 sps:$4 sm:$0xff]  }
 0x353   : > { %2146 = vmatprep.subr.bf16.mxu1 %v5112_v29  ;;  %v6301_v20 = vpop.f32.mrb[65].mxu0  ;;  %3129 = vmatpush1.bf16.msra.mxu0 %v6310_v2  ;;  %v5125_v29 = vld [vmem:[%s5808_s1 + $0x224] ss:$8 sps:$4 sm:$0xff]  }
 0x354   : > { %v6307_v11 = vpop.f32.mrb[66].mxu0 }
 0x355   : > { %v6314_v50 = vpop.f32.mrb[67].mxu0 }
 0x356   : > { %2147 = vmatpush1.bf16.msra.mxu1 %v5110_v24  ;;  %v5120_v24 = vld [vmem:[%s5808_s1 + $0x210] ss:$8 sps:$4 sm:$0xff]  }
 0x357   : > { %2422 = vmatprep.subr.bf16.mxu1 %v5115_v14 }
 0x359   : > { %2149 = vmatmul.mubr.bf16.vlgmr.msra.gmra.mrb[0].mxu1 %v7292_v56 }
 0x35a   : > { %2423 = vmatpush1.bf16.msra.mxu1 %v5113_v4  ;;  %2158 = vmatprep.mubr.bf16.mxu1 %v7293_v44  ;;  %v6329_v60 = vpop.f32.mrb[68].mxu0  ;;  %v7294_v44 = vpack.c.bf16 %v6108_v6, %v6102_v48  ;;  %v7295_v4 = vpack.c.bf16 %v6125_v32, %v6119_v21  ;;  %v5135_v32 = vld [vmem:[%s5808_s1 + $0x254] ss:$8 sps:$4 sm:$0xff]   ;;  %v5141_v48 = vld [vmem:[%s5808_s1 + $0x264] ss:$8 sps:$4 sm:$0xff]  }
 0x35b   : > { %2424 = vmatprep.subr.bf16.mxu1 %v5122_v62  ;;  %v6332_v14 = vpop.f32.mrb[69].mxu0  ;;  %v5127_v62 = vld [vmem:[%s5808_s1 + $0x230] ss:$8 sps:$4 sm:$0xff]  }
 0x35c   : > { %v6334_v53 = vpop.f32.mrb[70].mxu0 }
 0x35d   : > { %v6338_v56 = vpop.f32.mrb[71].mxu0 }
 0x35e   : > { %2425 = vmatpush1.bf16.msra.mxu1 %v5120_v24 }
 0x35f   : > { %2426 = vmatprep.subr.bf16.mxu1 %v5125_v29 }
 0x361   : > { %2159 = vmatmul.mubr.bf16.gmra.mrb[4].mxu1 %v7294_v44  ;;  %v7297_v44 = vpack.c.bf16 %v6138_v40, %v6132_v36  ;;  %v5144_v40 = vld [vmem:[%s5808_s1 + $0x274] ss:$8 sps:$4 sm:$0xff]  }
 0x362   : > { %2427 = vmatpush1.bf16.msra.mxu1 %v5123_v46  ;;  %2168 = vmatprep.mubr.bf16.mxu1 %v7295_v4  ;;  %v6351_v24 = vpop.f32.mrb[72].mxu0  ;;  %v5130_v46 = vld [vmem:[%s5808_s1 + $0x240] ss:$8 sps:$4 sm:$0xff]   ;;  %v5133_v4 = vld [vmem:[%s5808_s1 + $0x250] ss:$8 sps:$4 sm:$0xff]  }
 0x363   : > { %2428 = vmatprep.subr.bf16.mxu1 %v5129_v13  ;;  %v6354_v0 = vpop.f32.mrb[73].mxu0  ;;  %v7296_v13 = vpack.c.bf16 %v6121_v27, %v6117_v19  ;;  %v5147_v19 = vld [vmem:[%s5808_s1 + $0x284] ss:$8 sps:$4 sm:$0xff]  }
 0x364   : > { %v6356_v29 = vpop.f32.mrb[74].mxu0 }
 0x365   : > { %v6360_v6 = vpop.f32.mrb[75].mxu0 }
 0x366   : > { %2429 = vmatpush1.bf16.msra.mxu1 %v5127_v62 }
 0x367   : > { %2430 = vmatprep.subr.bf16.mxu1 %v5132_v43 }
 0x369   : > { %2169 = vmatmul.mubr.bf16.gmra.mrb[8].mxu1 %v7296_v13  ;;  %v7299_v13 = vpack.c.bf16 %v6153_v41, %v6147_v59  ;;  %v5150_v59 = vld [vmem:[%s5808_s1 + $0x294] ss:$8 sps:$4 sm:$0xff]  }
 0x36a   : > { %2431 = vmatpush1.bf16.msra.mxu1 %v5130_v46  ;;  %2178 = vmatprep.mubr.bf16.mxu1 %v7297_v44  ;;  %v6373_v62 = vpop.f32.mrb[76].mxu0  ;;  %v5139_v46 = vld [vmem:[%s5808_s1 + $0x260] ss:$8 sps:$4 sm:$0xff]   ;;  %v5142_v44 = vld [vmem:[%s5808_s1 + $0x270] ss:$8 sps:$4 sm:$0xff]  }
 0x36b   : > { %2432 = vmatprep.subr.bf16.mxu1 %v5135_v32  ;;  %v6376_v21 = vpop.f32.mrb[77].mxu0  ;;  %v7298_v32 = vpack.c.bf16 %v6134_v38, %v6130_v35  ;;  %v5153_v35 = vld [vmem:[%s5808_s1 + $0x2a4] ss:$8 sps:$4 sm:$0xff]  }
 0x36c   : > { %v6378_v43 = vpop.f32.mrb[78].mxu0 }
 0x36d   : > { %v6382_v27 = vpop.f32.mrb[79].mxu0 }
 0x36e   : > { %2433 = vmatpush1.bf16.msra.mxu1 %v5133_v4 }
 0x36f   : > { %2434 = vmatprep.subr.bf16.mxu1 %v5141_v48 }
 0x371   : > { %2179 = vmatmul.mubr.bf16.gmra.mrb[12].mxu1 %v7298_v32  ;;  %v7301_v32 = vpack.c.bf16 %v6166_v39, %v6160_v45  ;;  %v5159_v45 = vld [vmem:[%s5808_s1 + $0x2b4] ss:$8 sps:$4 sm:$0xff]  }
 0x372   : > { %2435 = vmatpush1.bf16.msra.mxu1 %v5139_v46  ;;  %2188 = vmatprep.mubr.bf16.mxu1 %v7299_v13  ;;  %v6395_v4 = vpop.f32.mrb[80].mxu0  ;;  %v5145_v46 = vld [vmem:[%s5808_s1 + $0x280] ss:$8 sps:$4 sm:$0xff]   ;;  %v5148_v13 = vld [vmem:[%s5808_s1 + $0x290] ss:$8 sps:$4 sm:$0xff]  }
 0x373   : > { %2436 = vmatprep.subr.bf16.mxu1 %v5144_v40  ;;  %v6398_v36 = vpop.f32.mrb[81].mxu0  ;;  %v7300_v40 = vpack.c.bf16 %v6149_v25, %v6145_v58  ;;  %v5162_v58 = vld [vmem:[%s5808_s1 + $0x2c4] ss:$8 sps:$4 sm:$0xff]  }
 0x374   : > { %v6400_v48 = vpop.f32.mrb[82].mxu0 }
 0x375   : > { %v6404_v38 = vpop.f32.mrb[83].mxu0 }
 0x376   : > { %2437 = vmatpush1.bf16.msra.mxu1 %v5142_v44 }
 0x377   : > { %2438 = vmatprep.subr.bf16.mxu1 %v5147_v19 }
 0x379   : > { %2189 = vmatmul.mubr.bf16.gmra.mrb[16].mxu1 %v7300_v40  ;;  %v7303_v40 = vpack.c.bf16 %v6186_v15, %v6179_v51  ;;  %v5165_v15 = vld [vmem:[%s5808_s1 + $0x2d4] ss:$8 sps:$4 sm:$0xff]  }
 0x37a   : > { %2439 = vmatpush1.bf16.msra.mxu1 %v5145_v46  ;;  %2198 = vmatprep.mubr.bf16.mxu1 %v7301_v32  ;;  %v6417_v44 = vpop.f32.mrb[84].mxu0  ;;  %v5151_v46 = vld [vmem:[%s5808_s1 + $0x2a0] ss:$8 sps:$4 sm:$0xff]   ;;  %v5157_v32 = vld [vmem:[%s5808_s1 + $0x2b0] ss:$8 sps:$4 sm:$0xff]  }
 0x37b   : > { %2440 = vmatprep.subr.bf16.mxu1 %v5150_v59  ;;  %v6420_v41 = vpop.f32.mrb[85].mxu0  ;;  %v7302_v59 = vpack.c.bf16 %v6162_v34, %v6158_v42  ;;  %v5168_v34 = vld [vmem:[%s5808_s1 + $0x2e4] ss:$8 sps:$4 sm:$0xff]  }
 0x37c   : > { %v6422_v19 = vpop.f32.mrb[86].mxu0 }
 0x37d   : > { %v6426_v25 = vpop.f32.mrb[87].mxu0 }
 0x37e   : > { %2441 = vmatpush1.bf16.msra.mxu1 %v5148_v13 }
 0x37f   : > { %2442 = vmatprep.subr.bf16.mxu1 %v5153_v35 }
 0x381   : > { %2199 = vmatmul.mubr.bf16.gmra.mrb[20].mxu1 %v7302_v59  ;;  %v7305_v59 = vpack.c.bf16 %v6200_v22, %v6194_v31  ;;  %v5171_v31 = vld [vmem:[%s5808_s1 + $0x2f4] ss:$8 sps:$4 sm:$0xff]  }
 0x382   : > { %2443 = vmatpush1.bf16.msra.mxu1 %v5151_v46  ;;  %2208 = vmatprep.mubr.bf16.mxu1 %v7303_v40  ;;  %v6439_v13 = vpop.f32.mrb[88].mxu0  ;;  %v5160_v46 = vld [vmem:[%s5808_s1 + $0x2c0] ss:$8 sps:$4 sm:$0xff]   ;;  %v5163_v40 = vld [vmem:[%s5808_s1 + $0x2d0] ss:$8 sps:$4 sm:$0xff]  }
 0x383   : > { %2444 = vmatprep.subr.bf16.mxu1 %v5159_v45  ;;  %v6442_v39 = vpop.f32.mrb[89].mxu0  ;;  %v7304_v45 = vpack.c.bf16 %v6181_v33, %v6171_v1  ;;  %v5177_v33 = vld [vmem:[%s5808_s1 + $0x304] ss:$8 sps:$4 sm:$0xff]  }
 0x384   : > { %v6444_v35 = vpop.f32.mrb[90].mxu0 }
 0x385   : > { %v6448_v42 = vpop.f32.mrb[91].mxu0 }
 0x386   : > { %2445 = vmatpush1.bf16.msra.mxu1 %v5157_v32 }
 0x387   : > { %2446 = vmatprep.subr.bf16.mxu1 %v5162_v58 }
 0x389   : > { %2209 = vmatmul.mubr.bf16.gmra.mrb[24].mxu1 %v7304_v45  ;;  %v7307_v45 = vpack.c.bf16 %v6314_v50, %v6301_v20  ;;  %v5180_v50 = vld [vmem:[%s5808_s1 + $0x314] ss:$8 sps:$4 sm:$0xff]  }
 0x38a   : > { %2447 = vmatpush1.bf16.msra.mxu1 %v5160_v46  ;;  %2218 = vmatprep.mubr.bf16.mxu1 %v7305_v59  ;;  %v6461_v32 = vpop.f32.mrb[92].mxu0  ;;  %v5166_v46 = vld [vmem:[%s5808_s1 + $0x2e0] ss:$8 sps:$4 sm:$0xff]   ;;  %v5169_v59 = vld [vmem:[%s5808_s1 + $0x2f0] ss:$8 sps:$4 sm:$0xff]  }
 0x38b   : > { %2448 = vmatprep.subr.bf16.mxu1 %v5165_v15  ;;  %v6464_v51 = vpop.f32.mrb[93].mxu0  ;;  %v7306_v15 = vpack.c.bf16 %v6196_v26, %v6192_v28  ;;  %v5183_v26 = vld [vmem:[%s5808_s1 + $0x324] ss:$8 sps:$4 sm:$0xff]  }
 0x38c   : > { %v6466_v58 = vpop.f32.mrb[94].mxu0 }
 0x38d   : > { %v6470_v1 = vpop.f32.mrb[95].mxu0 }
 0x38e   : > { %2449 = vmatpush1.bf16.msra.mxu1 %v5163_v40 }
 0x38f   : > { %2450 = vmatprep.subr.bf16.mxu1 %v5168_v34 }
 0x391   : > { %2219 = vmatmul.mubr.bf16.gmra.mrb[28].mxu1 %v7306_v15  ;;  %v7309_v15 = vpack.c.bf16 %v6338_v56, %v6332_v14  ;;  %v5186_v56 = vld [vmem:[%s5808_s1 + $0x334] ss:$8 sps:$4 sm:$0xff]  }
 0x392   : > { %2451 = vmatpush1.bf16.msra.mxu1 %v5166_v46  ;;  %2454 = vmatprep.mubr.bf16.mxu1 %v7307_v45  ;;  %v6483_v40 = vpop.f32.mrb[96].mxu0  ;;  %v5175_v46 = vld [vmem:[%s5808_s1 + $0x300] ss:$8 sps:$4 sm:$0xff]   ;;  %v5178_v45 = vld [vmem:[%s5808_s1 + $0x310] ss:$8 sps:$4 sm:$0xff]  }
 0x393   : > { %2452 = vmatprep.subr.bf16.mxu1 %v5171_v31  ;;  %v6486_v22 = vpop.f32.mrb[97].mxu0  ;;  %v7308_v31 = vpack.c.bf16 %v6307_v11, %v6298_v23  ;;  %v5189_v23 = vld [vmem:[%s5808_s1 + $0x344] ss:$8 sps:$4 sm:$0xff]  }
 0x394   : > { %v6488_v34 = vpop.f32.mrb[98].mxu0 }
 0x395   : > { %v6492_v28 = vpop.f32.mrb[99].mxu0 }
 0x396   : > { %2453 = vmatpush1.bf16.msra.mxu1 %v5169_v59 }
 0x397   : > { %2760 = vmatprep.subr.bf16.mxu1 %v5177_v33 }
 0x399   : > { %2455 = vmatmul.mubr.bf16.vlgmr.msra.gmra.mrb[0].mxu1 %v7308_v31  ;;  %v7311_v31 = vpack.c.bf16 %v6360_v6, %v6354_v0  ;;  %v5195_v6 = vld [vmem:[%s5808_s1 + $0x354] ss:$8 sps:$4 sm:$0xff]  }
 0x39a   : > { %2761 = vmatpush1.bf16.msra.mxu1 %v5175_v46  ;;  %2464 = vmatprep.mubr.bf16.mxu1 %v7309_v15  ;;  %v6505_v59 = vpop.f32.mrb[100].mxu0  ;;  %v5181_v46 = vld [vmem:[%s5808_s1 + $0x320] ss:$8 sps:$4 sm:$0xff]   ;;  %v5184_v15 = vld [vmem:[%s5808_s1 + $0x330] ss:$8 sps:$4 sm:$0xff]  }
 0x39b   : > { %2762 = vmatprep.subr.bf16.mxu1 %v5180_v50  ;;  %v6508_v20 = vpop.f32.mrb[101].mxu0  ;;  %v7310_v50 = vpack.c.bf16 %v6334_v53, %v6329_v60  ;;  %v5198_v53 = vld [vmem:[%s5808_s1 + $0x364] ss:$8 sps:$4 sm:$0xff]  }
 0x39c   : > { %v6510_v33 = vpop.f32.mrb[102].mxu0 }
 0x39d   : > { %v6514_v11 = vpop.f32.mrb[103].mxu0 }
 0x39e   : > { %2763 = vmatpush1.bf16.msra.mxu1 %v5178_v45 }
 0x39f   : > { %2764 = vmatprep.subr.bf16.mxu1 %v5183_v26 }
 0x3a1   : > { %2465 = vmatmul.mubr.bf16.gmra.mrb[4].mxu1 %v7310_v50  ;;  %v7313_v50 = vpack.c.bf16 %v6382_v27, %v6376_v21  ;;  %v5201_v27 = vld [vmem:[%s5808_s1 + $0x374] ss:$8 sps:$4 sm:$0xff]  }
 0x3a2   : > { %2765 = vmatpush1.bf16.msra.mxu1 %v5181_v46  ;;  %2474 = vmatprep.mubr.bf16.mxu1 %v7311_v31  ;;  %v6527_v45 = vpop.f32.mrb[104].mxu0  ;;  %v5187_v46 = vld [vmem:[%s5808_s1 + $0x340] ss:$8 sps:$4 sm:$0xff]   ;;  %v5193_v31 = vld [vmem:[%s5808_s1 + $0x350] ss:$8 sps:$4 sm:$0xff]  }
 0x3a3   : > { %2766 = vmatprep.subr.bf16.mxu1 %v5186_v56  ;;  %v6530_v14 = vpop.f32.mrb[105].mxu0  ;;  %v7312_v56 = vpack.c.bf16 %v6356_v29, %v6351_v24  ;;  %v5204_v24 = vld [vmem:[%s5808_s1 + $0x384] ss:$8 sps:$4 sm:$0xff]  }
 0x3a4   : > { %v6532_v26 = vpop.f32.mrb[106].mxu0 }
 0x3a5   : > { %v6536_v60 = vpop.f32.mrb[107].mxu0 }
 0x3a6   : > { %2767 = vmatpush1.bf16.msra.mxu1 %v5184_v15 }
 0x3a7   : > { %2768 = vmatprep.subr.bf16.mxu1 %v5189_v23 }
 0x3a9   : > { %2475 = vmatmul.mubr.bf16.gmra.mrb[8].mxu1 %v7312_v56  ;;  %v7315_v56 = vpack.c.bf16 %v6404_v38, %v6398_v36  ;;  %v5207_v38 = vld [vmem:[%s5808_s1 + $0x394] ss:$8 sps:$4 sm:$0xff]  }
 0x3aa   : > { %2769 = vmatpush1.bf16.msra.mxu1 %v5187_v46  ;;  %2484 = vmatprep.mubr.bf16.mxu1 %v7313_v50  ;;  %v6549_v15 = vpop.f32.mrb[108].mxu0  ;;  %v5196_v46 = vld [vmem:[%s5808_s1 + $0x360] ss:$8 sps:$4 sm:$0xff]   ;;  %v5199_v50 = vld [vmem:[%s5808_s1 + $0x370] ss:$8 sps:$4 sm:$0xff]  }
 0x3ab   : > { %2770 = vmatprep.subr.bf16.mxu1 %v5195_v6  ;;  %v6552_v0 = vpop.f32.mrb[109].mxu0  ;;  %v7314_v6 = vpack.c.bf16 %v6378_v43, %v6373_v62  ;;  %v5213_v62 = vld [vmem:[%s5808_s1 + $0x3a4] ss:$8 sps:$4 sm:$0xff]  }
 0x3ac   : > { %v6554_v23 = vpop.f32.mrb[110].mxu0 }
 0x3ad   : > { %v6558_v29 = vpop.f32.mrb[111].mxu0 }
 0x3ae   : > { %2771 = vmatpush1.bf16.msra.mxu1 %v5193_v31 }
 0x3af   : > { %2772 = vmatprep.subr.bf16.mxu1 %v5198_v53 }
 0x3b1   : > { %2485 = vmatmul.mubr.bf16.gmra.mrb[12].mxu1 %v7314_v6  ;;  %v7317_v6 = vpack.c.bf16 %v6426_v25, %v6420_v41  ;;  %v5216_v25 = vld [vmem:[%s5808_s1 + $0x3b4] ss:$8 sps:$4 sm:$0xff]  }
 0x3b2   : > { %2773 = vmatpush1.bf16.msra.mxu1 %v5196_v46  ;;  %2494 = vmatprep.mubr.bf16.mxu1 %v7315_v56  ;;  %v6571_v31 = vpop.f32.mrb[112].mxu0  ;;  %v5202_v46 = vld [vmem:[%s5808_s1 + $0x380] ss:$8 sps:$4 sm:$0xff]   ;;  %v5205_v56 = vld [vmem:[%s5808_s1 + $0x390] ss:$8 sps:$4 sm:$0xff]  }
 0x3b3   : > { %2774 = vmatprep.subr.bf16.mxu1 %v5201_v27  ;;  %v6574_v21 = vpop.f32.mrb[113].mxu0  ;;  %v7316_v27 = vpack.c.bf16 %v6400_v48, %v6395_v4  ;;  %v5222_v4 = vld [vmem:[%s5808_s1 + $0x3c4] ss:$8 sps:$4 sm:$0xff]  }
 0x3b4   : > { %v6576_v53 = vpop.f32.mrb[114].mxu0 }
 0x3b5   : > { %v6580_v43 = vpop.f32.mrb[115].mxu0 }
 0x3b6   : > { %2775 = vmatpush1.bf16.msra.mxu1 %v5199_v50 }
 0x3b7   : > { %2776 = vmatprep.subr.bf16.mxu1 %v5204_v24 }
 0x3b9   : > { %2495 = vmatmul.mubr.bf16.gmra.mrb[16].mxu1 %v7316_v27  ;;  %v7319_v27 = vpack.c.bf16 %v6448_v42, %v6442_v39  ;;  %v5228_v42 = vld [vmem:[%s5808_s1 + $0x3d4] ss:$8 sps:$4 sm:$0xff]   ;;  %v5234_v39 = vld [vmem:[%s5808_s1 + $0x3e4] ss:$8 sps:$4 sm:$0xff]  }
 0x3ba   : > { %2777 = vmatpush1.bf16.msra.mxu1 %v5202_v46  ;;  %2504 = vmatprep.mubr.bf16.mxu1 %v7317_v6  ;;  %v6593_v50 = vpop.f32.mrb[116].mxu0  ;;  %v5211_v46 = vld [vmem:[%s5808_s1 + $0x3a0] ss:$8 sps:$4 sm:$0xff]   ;;  %v5214_v6 = vld [vmem:[%s5808_s1 + $0x3b0] ss:$8 sps:$4 sm:$0xff]  }
 0x3bb   : > { %2778 = vmatprep.subr.bf16.mxu1 %v5207_v38  ;;  %v6596_v36 = vpop.f32.mrb[117].mxu0  ;;  %v7318_v38 = vpack.c.bf16 %v6422_v19, %v6417_v44 }
 0x3bc   : > { %v6598_v24 = vpop.f32.mrb[118].mxu0 }
 0x3bd   : > { %v6602_v48 = vpop.f32.mrb[119].mxu0 }
 0x3be   : > { %2779 = vmatpush1.bf16.msra.mxu1 %v5205_v56 }
 0x3bf   : > { %2780 = vmatprep.subr.bf16.mxu1 %v5213_v62 }
 0x3c1   : > { %2505 = vmatmul.mubr.bf16.gmra.mrb[20].mxu1 %v7318_v38  ;;  %v7321_v38 = vpack.c.bf16 %v6470_v1, %v6464_v51  ;;  %v5240_v1 = vld [vmem:[%s5808_s1 + $0x3f4] ss:$8 sps:$4 sm:$0xff]  }
 0x3c2   : > { %2781 = vmatpush1.bf16.msra.mxu1 %v5211_v46  ;;  %2514 = vmatprep.mubr.bf16.mxu1 %v7319_v27  ;;  %v6615_v56 = vpop.f32.mrb[120].mxu0  ;;  %v5220_v46 = vld [vmem:[%s5808_s1 + $0x3c0] ss:$8 sps:$4 sm:$0xff]   ;;  %v5226_v27 = vld [vmem:[%s5808_s1 + $0x3d0] ss:$8 sps:$4 sm:$0xff]  }
 0x3c3   : > { %2782 = vmatprep.subr.bf16.mxu1 %v5216_v25  ;;  %v6618_v55 = vpop.f32.mrb[121].mxu0  ;;  %v7320_v25 = vpack.c.bf16 %v6444_v35, %v6439_v13  ;;  %v5238_v13 = vld [vmem:[%s5808_s1 + $0x3f0] ss:$8 sps:$4 sm:$0xff]  }
 0x3c4   : > { %v6620_v62 = vpop.f32.mrb[122].mxu0 }
 0x3c5   : > { %v6624_v19 = vpop.f32.mrb[123].mxu0 }
 0x3c6   : > { %2783 = vmatpush1.bf16.msra.mxu1 %v5214_v6 }
 0x3c7   : > { %2784 = vmatprep.subr.bf16.mxu1 %v5222_v4 }
 0x3c9   : > { %2515 = vmatmul.mubr.bf16.gmra.mrb[24].mxu1 %v7320_v25 }
 0x3ca   : > { %2785 = vmatpush1.bf16.msra.mxu1 %v5220_v46  ;;  %2524 = vmatprep.mubr.bf16.mxu1 %v7321_v38  ;;  %v6637_v44 = vpop.f32.mrb[124].mxu0  ;;  %v5232_v46 = vld [vmem:[%s5808_s1 + $0x3e0] ss:$8 sps:$4 sm:$0xff]   ;;  %v7323_v38 = vpack.c.bf16 %v6492_v28, %v6486_v22  ;;  %v7325_v28 = vpack.c.bf16 %v6514_v11, %v6508_v20  ;;  %v7327_v11 = vpack.c.bf16 %v6536_v60, %v6530_v14  ;;  %v5252_v60 = vld [vmem:[%s5808_s1 + $0x444] ss:$8 sps:$4 sm:$0xff]  }
 0x3cb   : > { %2786 = vmatprep.subr.bf16.mxu1 %v5228_v42  ;;  %v6639_v6 = vpop.f32.mrb[125].mxu0  ;;  %v7322_v42 = vpack.c.bf16 %v6466_v58, %v6461_v32  ;;  %v7324_v32 = vpack.c.bf16 %v6488_v34, %v6483_v40  ;;  %v5245_v58 = vld [vmem:[%s5808_s1 + $0x400] ss:$8 sps:$4 sm:$0xff]   ;;  %v5247_v40 = vld [vmem:[%s5808_s1 + $0x410] ss:$8 sps:$4 sm:$0xff]   ;;  %v7326_v34 = vpack.c.bf16 %v6510_v33, %v6505_v59 }
 0x3cc   : > { %v6642_v4 = vpop.f32.mrb[126].mxu0  ;;  %v5249_v20 = vld [vmem:[%s5808_s1 + $0x420] ss:$8 sps:$4 sm:$0xff]  }
 0x3cd   : > { %v6646_v35 = vpop.f32.mrb[127].mxu0 }
 0x3ce   : > { %2787 = vmatpush1.bf16.msra.mxu1 %v5226_v27 }
 0x3cf   : > { %2788 = vmatprep.subr.bf16.mxu1 %v5234_v39 }
 0x3d1   : > { %2525 = vmatmul.mubr.bf16.gmra.mrb[28].mxu1 %v7322_v42 }
 0x3d2   : > { %2789 = vmatpush1.bf16.msra.mxu1 %v5232_v46  ;;  %v1459_v25 = vpop.f32.mrb[128].mxu0  ;;  %2792 = vmatprep.mubr.bf16.mxu1 %v7323_v38 }
 0x3d3   : > { %v1461_v27 = vpop.f32.mrb[129].mxu0  ;;  %2790 = vmatprep.subr.bf16.mxu1 %v5240_v1 }
 0x3d4   : > { %v1463_v41 = vpop.f32.mrb[130].mxu0 }
 0x3d5   : > { %v1602_v52 = vpack.c.bf16 %v1463_v41, %v1459_v25  ;;  %v1465_v51 = vpop.f32.mrb[131].mxu0  ;;  %v5250_v25 = vld [vmem:[%s5808_s1 + $0x434] ss:$8 sps:$4 sm:$0xff]  }
 0x3d6   : > { %v1603_v39 = vpack.c.bf16 %v1465_v51, %v1461_v27  ;;  %2791 = vmatpush1.bf16.msra.mxu1 %v5238_v13  ;;  %v5246_v13 = vld [vmem:[%s5808_s1 + $0x414] ss:$8 sps:$4 sm:$0xff]  }
 0x3d7   : > { %4675 = vmatprep.subr.bf16.mxu1 %v5244_v54 }
 0x3d8   : > { %3130 = vmatprep.mubr.bf16.mxu0 %v1603_v39  ;;  %v5251_v39 = vld [vmem:[%s5808_s1 + $0x430] ss:$8 sps:$4 sm:$0xff]  }
 0x3d9   : > { %2793 = vmatmul.mubr.bf16.vlgmr.msra.gmra.mrb[0].mxu1 %v7324_v32  ;;  %3131 = vmatmul.mubr.bf16.vlgmr.msra.gmra.mrb[160].mxu0 %v1602_v52  ;;  %v5248_v52 = vld [vmem:[%s5808_s1 + $0x424] ss:$8 sps:$4 sm:$0xff]   ;;  %v7328_v32 = vpack.c.bf16 %v6532_v26, %v6527_v45  ;;  %v5255_v26 = vld [vmem:[%s5808_s1 + $0x450] ss:$8 sps:$4 sm:$0xff]  }
 0x3da   : > { %4691 = vmatpush1.bf16.msra.mxu1 %v5245_v58  ;;  %v1469_v22 = vpop.f32.mrb[132].mxu0  ;;  %2802 = vmatprep.mubr.bf16.mxu1 %v7325_v28  ;;  %v5253_v58 = vld [vmem:[%s5808_s1 + $0x440] ss:$8 sps:$4 sm:$0xff]  }
 0x3db   : > { %v1471_v41 = vpop.f32.mrb[133].mxu0  ;;  %4676 = vmatprep.subr.bf16.mxu1 %v5246_v13 }
 0x3dc   : > { %v1473_v54 = vpop.f32.mrb[134].mxu0 }
 0x3dd   : > { %v1604_v46 = vpack.c.bf16 %v1473_v54, %v1469_v22  ;;  %v1475_v51 = vpop.f32.mrb[135].mxu0  ;;  %v7329_v22 = vpack.c.bf16 %v6558_v29, %v6552_v0  ;;  %v7330_v0 = vpack.c.bf16 %v6554_v23, %v6549_v15  ;;  %v5257_v29 = vld [vmem:[%s5808_s1 + $0x460] ss:$8 sps:$4 sm:$0xff]   ;;  %v7332_v15 = vpack.c.bf16 %v6576_v53, %v6571_v31 }
 0x3de   : > { %v1605_v1 = vpack.c.bf16 %v1475_v51, %v1471_v41  ;;  %4692 = vmatpush1.bf16.msra.mxu1 %v5247_v40  ;;  %v5254_v41 = vld [vmem:[%s5808_s1 + $0x454] ss:$8 sps:$4 sm:$0xff]   ;;  %v7331_v40 = vpack.c.bf16 %v6580_v43, %v6574_v21  ;;  %v7333_v23 = vpack.c.bf16 %v6602_v48, %v6596_v36  ;;  %v7334_v31 = vpack.c.bf16 %v6598_v24, %v6593_v50 }
 0x3df   : > { %4677 = vmatprep.subr.bf16.mxu1 %v5248_v52  ;;  %v7336_v50 = vpack.c.bf16 %v6620_v62, %v6615_v56  ;;  %v7338_v56 = vpack.c.bf16 %v6642_v4, %v6637_v44 }
 0x3e0   : > { %3140 = vmatprep.mubr.bf16.mxu0 %v1605_v1  ;;  %v5256_v1 = vld [vmem:[%s5808_s1 + $0x464] ss:$8 sps:$4 sm:$0xff]   ;;  %s3288_s1 = ssub.s32 0, %s5508_s30 }
 0x3e1   : > { %2803 = vmatmul.mubr.bf16.gmra.mrb[4].mxu1 %v7326_v34  ;;  %3141 = vmatmul.mubr.bf16.gmra.mrb[164].mxu0 %v1604_v46  ;;  %s4565_s21 = smin.u32 %s5508_s30, %s3288_s1 }
 0x3e2   : > { %4693 = vmatpush1.bf16.msra.mxu1 %v5249_v20  ;;  %2812 = vmatprep.mubr.bf16.mxu1 %v7327_v11  ;;  %v6677_v42 = vpop.f32.mrb[136].mxu0  ;;  %s3290_s16 = sand.u32 1, %s4565_s21  }
 0x3e3   : > { %4678 = vmatprep.subr.bf16.mxu1 %v5250_v25  ;;  %v6680_v38 = vpop.f32.mrb[137].mxu0  ;;  %s3291_s15 = ssub.s32 0, %s3290_s16 }
 0x3e4   : > { %v6682_v27 = vpop.f32.mrb[138].mxu0  ;;  %s7383_s15 = smov (!%p3287_p13, %s3291_s15), %s3290_s16 }
 0x3e5   : > { %v1606_v59 = vpack.c.bf16 %v6682_v27, %v6677_v42  ;;  %v6686_v33 = vpop.f32.mrb[139].mxu0  ;;  %p4567_p2 = scmp.lt.s32.totalorder %s7383_s15, 0  ;;  %s3297_s24 = sadd.s32 2, %s7383_s15 }
 0x3e6   : > { %4694 = vmatpush1.bf16.msra.mxu1 %v5251_v39  ;;  %v1607_v14 = vpack.c.bf16 %v6686_v33, %v6680_v38 }
 0x3e7   : > { %4679 = vmatprep.subr.bf16.mxu1 %v5252_v60  ;;  %s7385_s24 = smov (!%p4567_p2, %s3297_s24), %s7383_s15 }
 0x3e8   : > { %p4568_p6 = scmp.ne.s32.totalorder %s7385_s24, 0 }
 0x3e9   : > { %2813 = vmatmul.mubr.bf16.gmra.mrb[8].mxu1 %v7328_v32 }
 0x3ea   : > { %4695 = vmatpush1.bf16.msra.mxu1 %v5253_v58  ;;  %2822 = vmatprep.mubr.bf16.mxu1 %v7329_v22  ;;  %v6699_v28 = vpop.f32.mrb[140].mxu0 }
 0x3eb   : > { %4680 = vmatprep.subr.bf16.mxu1 %v5254_v41  ;;  %v6702_v13 = vpop.f32.mrb[141].mxu0 }
 0x3ec   : > { %v6704_v54 = vpop.f32.mrb[142].mxu0 }
 0x3ed   : > { %v1608_v46 = vpack.c.bf16 %v6704_v54, %v6699_v28  ;;  %v1495_v45 = vpop.f32.mrb[143].mxu0 }
 0x3ee   : > { %4696 = vmatpush1.bf16.msra.mxu1 %v5255_v26  ;;  %v1609_v51 = vpack.c.bf16 %v1495_v45, %v6702_v13 }
 0x3ef   : > { %4681 = vmatprep.subr.bf16.mxu1 %v5256_v1 }
 0x3f1   : > { %2823 = vmatmul.mubr.bf16.gmra.mrb[12].mxu1 %v7330_v0 }
 0x3f2   : > { %4697 = vmatpush1.bf16.msra.mxu1 %v5257_v29  ;;  %2832 = vmatprep.mubr.bf16.mxu1 %v7331_v40  ;;  %v1499_v52 = vpop.f32.mrb[144].mxu0 }
 0x3f3   : > { %4682 = vmatprep.subr.bf16.mxu1 %v6177_v47  ;;  %v1501_v34 = vpop.f32.mrb[145].mxu0 }
 0x3f4   : > { %v1503_v20 = vpop.f32.mrb[146].mxu0 }
 0x3f5   : > { %v1610_v11 = vpack.c.bf16 %v1503_v20, %v1499_v52  ;;  %v1505_v25 = vpop.f32.mrb[147].mxu0 }
 0x3f6   : > { %4698 = vmatpush1.bf16.msra.mxu1 %v6174_v37  ;;  %v1611_v39 = vpack.c.bf16 %v1505_v25, %v1501_v34 }
 0x3f7   : > { %4683 = vmatprep.subr.bf16.mxu1 %v6210_v7 }
 0x3f9   : > { %2833 = vmatmul.mubr.bf16.gmra.mrb[16].mxu1 %v7332_v15 }
 0x3fa   : > { %4699 = vmatpush1.bf16.msra.mxu1 %v6207_v10  ;;  %2842 = vmatprep.mubr.bf16.mxu1 %v7333_v23  ;;  %v1509_v47 = vpop.f32.mrb[148].mxu0  ;;  %v7335_v10 = vpack.c.bf16 %v6624_v19, %v6618_v55  ;;  %v7337_v55 = vpack.c.bf16 %v6646_v35, %v6639_v6 }
 0x3fb   : > { %4684 = vmatprep.subr.bf16.mxu1 %v6231_v12  ;;  %v1511_v21 = vpop.f32.mrb[149].mxu0 }
 0x3fc   : > { %v1513_v43 = vpop.f32.mrb[150].mxu0 }
 0x3fd   : > { %v1612_v60 = vpack.c.bf16 %v1513_v43, %v1509_v47  ;;  %v1515_v37 = vpop.f32.mrb[151].mxu0 }
 0x3fe   : > { %4700 = vmatpush1.bf16.msra.mxu1 %v6228_v16  ;;  %v1613_v7 = vpack.c.bf16 %v1515_v37, %v1511_v21 }
 0x3ff   : > { %4685 = vmatprep.subr.bf16.mxu1 %v6250_v17 }
 0x401   : > { %2843 = vmatmul.mubr.bf16.gmra.mrb[20].mxu1 %v7334_v31 }
 0x402   : > { %4701 = vmatpush1.bf16.msra.mxu1 %v6247_v63  ;;  %2852 = vmatprep.mubr.bf16.mxu1 %v7335_v10  ;;  %v1519_v12 = vpop.f32.mrb[152].mxu0 }
 0x403   : > { %4686 = vmatprep.subr.bf16.mxu1 %v6258_v18  ;;  %v1521_v53 = vpop.f32.mrb[153].mxu0 }
 0x404   : > { %v1523_v36 = vpop.f32.mrb[154].mxu0 }
 0x405   : > { %v1614_v48 = vpack.c.bf16 %v1523_v36, %v1519_v12  ;;  %v1525_v16 = vpop.f32.mrb[155].mxu0 }
 0x406   : > { %4702 = vmatpush1.bf16.msra.mxu1 %v6261_v49  ;;  %v1615_v17 = vpack.c.bf16 %v1525_v16, %v1521_v53 }
 0x407   : > { %4687 = vmatprep.subr.bf16.mxu1 %v6268_v9 }
 0x409   : > { %2853 = vmatmul.mubr.bf16.gmra.mrb[24].mxu1 %v7336_v50 }
 0x40a   : > { %4703 = vmatpush1.bf16.msra.mxu1 %v6271_v3  ;;  %2862 = vmatprep.mubr.bf16.mxu1 %v7337_v55  ;;  %v1529_v63 = vpop.f32.mrb[156].mxu0 }
 0x40b   : > { %4688 = vmatprep.subr.bf16.mxu1 %v6278_v30  ;;  %v1531_v18 = vpop.f32.mrb[157].mxu0  ;;  %v3243_v30 = vld [vmem:[%s393_s0] sm:$0x3] }
 0x40c   : > { %v1533_v24 = vpop.f32.mrb[158].mxu0 }
 0x40d   : > { %v1616_v19 = vpack.c.bf16 %v1533_v24, %v1529_v63  ;;  %v1535_v49 = vpop.f32.mrb[159].mxu0 }
 0x40e   : > { %4704 = vmatpush1.bf16.msra.mxu1 %v6281_v8  ;;  %v1617_v9 = vpack.c.bf16 %v1535_v49, %v1531_v18 }
 0x40f   : > { %4689 = vmatprep.subr.bf16.mxu1 %v6288_v57  ;;  %v3245_v57 = vlaneseq }
 0x411   : > { %2863 = vmatmul.mubr.bf16.gmra.mrb[28].mxu1 %v7338_v56 }
 0x412   : > { %4705 = vmatpush1.bf16.msra.mxu1 %v6291_v61  ;;  %3150 = vmatprep.mubr.bf16.mxu1 %v1607_v14  ;;  %v3246_v61 = vshrl.u32 %v3245_v57, 7 }
 0x413   : > { %4690 = vmatprep.subr.bf16.mxu1 %v6305_v5 }
 0x414   : > { %v3247_v3 = vsub.s32 0, %v3246_v61  ;;  %v3251_v8 = vsub.s32 1, %v3246_v61 }
 0x416   : > { %4706 = vmatpush1.bf16.msra.mxu1 %v6310_v2  ;;  %v6770_v5 = vrot.slane %v3243_v30, %v3247_v3  ;;  %v6772_v44 = vrot.slane %v3243_v30, %v3251_v8 }
 0x419   : > { %3151 = vmatmul.mubr.bf16.vlgmr.msra.gmra.mrb[8].mxu1 %v1606_v59 }
 0x41a   : > { %3160 = vmatprep.mubr.bf16.mxu1 %v1609_v51 }
 0x421   : > { %3161 = vmatmul.mubr.bf16.gmra.mrb[12].mxu1 %v1608_v46 }
 0x422   : > { %3170 = vmatprep.mubr.bf16.mxu1 %v1611_v39 }
 0x429   : > { %3171 = vmatmul.mubr.bf16.gmra.mrb[16].mxu1 %v1610_v11 }
 0x42a   : > { %3180 = vmatprep.mubr.bf16.mxu1 %v1613_v7 }
 0x431   : > { %3181 = vmatmul.mubr.bf16.gmra.mrb[20].mxu1 %v1612_v60 }
 0x432   : > { %3190 = vmatprep.mubr.bf16.mxu1 %v1615_v17 }
 0x439   : > { %3191 = vmatmul.mubr.bf16.gmra.mrb[24].mxu1 %v1614_v48 }
 0x43a   : > { %3200 = vmatprep.mubr.bf16.mxu1 %v1617_v9 }
 0x441   : > { %3201 = vmatmul.mubr.bf16.gmra.mrb[28].mxu1 %v1616_v19 }
 0x4ac   : > { %v2794_v2 = vpop.f32.mrb[0].mxu1  ;;  %v3132_v62 = vpop.f32.mrb[160].mxu0 }
 0x4ad   : > { %v4707_v6 = vadd.f32 %v3132_v62, %v2794_v2  ;;  %v2796_v4 = vpop.f32.mrb[1].mxu1  ;;  %v3134_v35 = vpop.f32.mrb[161].mxu0 }
 0x4ae   : > { %v4708_v42 = vadd.f32 %v3134_v35, %v2796_v4  ;;  %v2798_v38 = vpop.f32.mrb[2].mxu1  ;;  %v3136_v27 = vpop.f32.mrb[162].mxu0 }
 0x4af   : > { %v6775_v59 = vadd.f32 %v4707_v6, %v6770_v5  ;;  %v4709_v33 = vadd.f32 %v3136_v27, %v2798_v38  ;;  %v2800_v14 = vpop.f32.mrb[3].mxu1  ;;  %v3138_v32 = vpop.f32.mrb[163].mxu0 }
 0x4b0   : > { %v6778_v58 = vadd.f32 %v4708_v42, %v6772_v44  ;;  %v4710_v22 = vadd.f32 %v3138_v32, %v2800_v14 }
 0x4b1   : > { %v6781_v28 = vadd.f32 %v4709_v33, %v6770_v5  ;;  %vm3335_vm3 = vcmp.gt.f32.partialorder (!%p4568_p6), %v6775_v59, 0.0 }
 0x4b2   : > { %v6784_v41 = vadd.f32 %v4710_v22, %v6772_v44  ;;  %vm3336_vm4 = vcmp.gt.f32.partialorder (!%p4568_p6), %v6778_v58, 0.0 }
 0x4b3   : > { %vm3337_vm5 = vcmp.gt.f32.partialorder (!%p4568_p6), %v6781_v28, 0.0 }
 0x4b4   : > { %v2804_v13 = vpop.f32.mrb[4].mxu1  ;;  %v3142_v54 = vpop.f32.mrb[164].mxu0  ;;  %vm3338_vm6 = vcmp.gt.f32.partialorder (!%p4568_p6), %v6784_v41, 0.0 }
 0x4b5   : > { %v4711_v46 = vadd.f32 %v3142_v54, %v2804_v13  ;;  %v2806_v45 = vpop.f32.mrb[5].mxu1  ;;  %v3144_v26 = vpop.f32.mrb[165].mxu0 }
 0x4b6   : > { %v4712_v51 = vadd.f32 %v3144_v26, %v2806_v45  ;;  %v2808_v1 = vpop.f32.mrb[6].mxu1  ;;  %v3146_v0 = vpop.f32.mrb[166].mxu0 }
 0x4b7   : > { %v6787_v29 = vadd.f32 %v4711_v46, %v6770_v5  ;;  %v4713_v40 = vadd.f32 %v3146_v0, %v2808_v1  ;;  %v2810_v52 = vpop.f32.mrb[7].mxu1  ;;  %v3148_v34 = vpop.f32.mrb[167].mxu0  ;;  %v7339_v1 = vld [vmem:[#allocation22_spill] sm:$0xff] (!%p4568_p6)  ;;  %v7340_v0 = vld [vmem:[#allocation20_spill] sm:$0xff] (!%p4568_p6) }
 0x4b8   : > { %v6790_v20 = vadd.f32 %v4712_v51, %v6772_v44  ;;  %v4714_v11 = vadd.f32 %v3148_v34, %v2810_v52  ;;  %3303 = vst [vmem:[#allocation3] sm:$0xff] (!%p4568_p6), %v7339_v1  ;;  %3304 = vst [vmem:[#allocation3 + $0x8] sm:$0xff] (!%p4568_p6), %v7340_v0  ;;  %v7342_v52 = vld [vmem:[#allocation21_spill] sm:$0xff] (!%p4568_p6)  ;;  %v7343_v34 = vld [vmem:[#allocation26_spill] sm:$0xff] (!%p4568_p6)  ;;  %v3367_v1 = vmul.f32 (!%p4568_p6), 0.01, %v6775_v59 }
 0x4b9   : > { %v6793_v25 = vadd.f32 %v4713_v40, %v6770_v5  ;;  %v7341_v40 = vld [vmem:[#allocation23_spill] sm:$0xff] (!%p4568_p6)  ;;  %3306 = vst [vmem:[#allocation3 + $0x18] sm:$0xff] (!%p4568_p6), %v7342_v52  ;;  %3307 = vst [vmem:[#allocation3 + $0x20] sm:$0xff] (!%p4568_p6), %v7343_v34  ;;  %v3368_v0 = vmul.f32 (!%p4568_p6), 0.01, %v6778_v58  ;;  %vm3339_vm7 = vcmp.gt.f32.partialorder (!%p4568_p6), %v6787_v29, 0.0 }
 0x4ba   : > { %v6796_v39 = vadd.f32 %v4714_v11, %v6772_v44  ;;  %3305 = vst [vmem:[#allocation3 + $0x10] sm:$0xff] (!%p4568_p6), %v7341_v40  ;;  %v7344_v11 = vld [vmem:[#allocation24_spill] sm:$0xff] (!%p4568_p6)  ;;  %v3369_v40 = vmul.f32 (!%p4568_p6), 0.01, %v6781_v28  ;;  %v3370_v52 = vmul.f32 (!%p4568_p6), 0.01, %v6784_v41  ;;  %v3399_v34 = vsel (!%p4568_p6), %vm3335_vm3, %v6775_v59, %v3367_v1 }
 0x4bb   : > { %3308 = vst [vmem:[#allocation3 + $0x28] sm:$0xff] (!%p4568_p6), %v7344_v11  ;;  %v3400_v11 = vsel (!%p4568_p6), %vm3336_vm4, %v6778_v58, %v3368_v0  ;;  %3431 = vst [vmem:[#allocation2] sm:$0xff] (!%p4568_p6), %v3399_v34  ;;  %vm3340_vm8 = vcmp.gt.f32.partialorder (!%p4568_p6), %v6790_v20, 0.0  ;;  %vm3341_vm9 = vcmp.gt.f32.partialorder (!%p4568_p6), %v6793_v25, 0.0 }
 0x4bc   : > { %3432 = vst [vmem:[#allocation2 + $0x8] sm:$0xff] (!%p4568_p6), %v3400_v11  ;;  %vm3342_vm10 = vcmp.gt.f32.partialorder (!%p4568_p6), %v6796_v39, 0.0 }
 0x4ec   : > { %v3152_v15 = vpop.f32.mrb[8].mxu1 }
 0x4ed   : > { %v6799_v23 = vadd.f32 %v6770_v5, %v3152_v15  ;;  %v3154_v47 = vpop.f32.mrb[9].mxu1  ;;  %v7346_v15 = vld [vmem:[#allocation25_spill] sm:$0xff] (!%p4568_p6) }
 0x4ee   : > { %v6802_v21 = vadd.f32 %v6772_v44, %v3154_v47  ;;  %v3156_v43 = vpop.f32.mrb[10].mxu1  ;;  %3310 = vst [vmem:[#allocation3 + $0x38] sm:$0xff] (!%p4568_p6), %v7346_v15  ;;  %v7348_v47 = vld [vmem:[#allocation28_spill] sm:$0xff] (!%p4568_p6)  ;;  %v3401_v15 = vsel (!%p4568_p6), %vm3337_vm5, %v6781_v28, %v3369_v40 }
 0x4ef   : > { %v6805_v60 = vadd.f32 %v6770_v5, %v3156_v43  ;;  %v3158_v37 = vpop.f32.mrb[11].mxu1  ;;  %3312 = vst [vmem:[#allocation3 + $0x48] sm:$0xff] (!%p4568_p6), %v7348_v47  ;;  %v7349_v43 = vld [vmem:[#allocation31_spill] sm:$0xff] (!%p4568_p6)  ;;  %v3372_v47 = vmul.f32 (!%p4568_p6), 0.01, %v6790_v20  ;;  %3433 = vst [vmem:[#allocation2 + $0x10] sm:$0xff] (!%p4568_p6), %v3401_v15 }
 0x4f0   : > { %v6808_v7 = vadd.f32 %v6772_v44, %v3158_v37  ;;  %3313 = vst [vmem:[#allocation3 + $0x50] sm:$0xff] (!%p4568_p6), %v7349_v43  ;;  %v7350_v37 = vld [vmem:[#allocation29_spill] sm:$0xff] (!%p4568_p6)  ;;  %vm3343_vm11 = vcmp.gt.f32.partialorder (!%p4568_p6), %v6799_v23, 0.0  ;;  %vm3344_vm12 = vcmp.gt.f32.partialorder (!%p4568_p6), %v6802_v21, 0.0 }
 0x4f1   : > { %3314 = vst [vmem:[#allocation3 + $0x58] sm:$0xff] (!%p4568_p6), %v7350_v37  ;;  %v3373_v37 = vmul.f32 (!%p4568_p6), 0.01, %v6793_v25  ;;  %vm3345_vm13 = vcmp.gt.f32.partialorder (!%p4568_p6), %v6805_v60, 0.0 }
 0x4f2   : > { %vm3346_vm14 = vcmp.gt.f32.partialorder (!%p4568_p6), %v6808_v7, 0.0 }
 0x4f4   : > { %v3162_v31 = vpop.f32.mrb[12].mxu1 }
 0x4f5   : > { %v6811_v10 = vadd.f32 %v6770_v5, %v3162_v31  ;;  %v3164_v12 = vpop.f32.mrb[13].mxu1  ;;  %v7351_v31 = vld [vmem:[#allocation34_spill] sm:$0xff] (!%p4568_p6) }
 0x4f6   : > { %v6814_v53 = vadd.f32 %v6772_v44, %v3164_v12  ;;  %v3166_v36 = vpop.f32.mrb[14].mxu1  ;;  %3315 = vst [vmem:[#allocation3 + $0x60] sm:$0xff] (!%p4568_p6), %v7351_v31  ;;  %v7352_v12 = vld [vmem:[#allocation32_spill] sm:$0xff] (!%p4568_p6)  ;;  %v3404_v31 = vsel (!%p4568_p6), %vm3340_vm8, %v6790_v20, %v3372_v47 }
 0x4f7   : > { %v6817_v48 = vadd.f32 %v6770_v5, %v3166_v36  ;;  %v3168_v16 = vpop.f32.mrb[15].mxu1  ;;  %3316 = vst [vmem:[#allocation3 + $0x68] sm:$0xff] (!%p4568_p6), %v7352_v12  ;;  %v7353_v36 = vld [vmem:[#allocation35_spill] sm:$0xff] (!%p4568_p6)  ;;  %v3374_v12 = vmul.f32 (!%p4568_p6), 0.01, %v6796_v39  ;;  %3436 = vst [vmem:[#allocation2 + $0x28] sm:$0xff] (!%p4568_p6), %v3404_v31 }
 0x4f8   : > { %v6820_v17 = vadd.f32 %v6772_v44, %v3168_v16  ;;  %3317 = vst [vmem:[#allocation3 + $0x70] sm:$0xff] (!%p4568_p6), %v7353_v36  ;;  %v7354_v16 = vld [vmem:[#allocation33_spill] sm:$0xff] (!%p4568_p6)  ;;  %v3375_v36 = vmul.f32 (!%p4568_p6), 0.01, %v6799_v23  ;;  %vm3347_vm15 = vcmp.gt.f32.partialorder (!%p4568_p6), %v6811_v10, 0.0  ;;  %vm3348_vm0 = vcmp.gt.f32.partialorder (!%p4568_p6), %v6814_v53, 0.0 }
 0x4f9   : > { %3318 = vst [vmem:[#allocation3 + $0x78] sm:$0xff] (!%p4568_p6), %v7354_v16  ;;  %v3405_v16 = vsel (!%p4568_p6), %vm3341_vm9, %v6793_v25, %v3373_v37  ;;  %vm3349_vm1 = vcmp.gt.f32.partialorder (!%p4568_p6), %v6817_v48, 0.0 }
 0x4fa   : > { %3437 = vst [vmem:[#allocation2 + $0x30] sm:$0xff] (!%p4568_p6), %v3405_v16  ;;  %vm3350_vm2 = vcmp.gt.f32.partialorder (!%p4568_p6), %v6820_v17, 0.0 }
 0x4fc   : > { %v3172_v50 = vpop.f32.mrb[16].mxu1 }
 0x4fd   : > { %v6823_v55 = vadd.f32 %v6770_v5, %v3172_v50  ;;  %v3174_v63 = vpop.f32.mrb[17].mxu1  ;;  %v7355_v50 = vld [vmem:[#allocation38_spill] sm:$0xff] (!%p4568_p6) }
 0x4fe   : > { %v6826_v18 = vadd.f32 %v6772_v44, %v3174_v63  ;;  %v3176_v24 = vpop.f32.mrb[18].mxu1  ;;  %3319 = vst [vmem:[#allocation3 + $0x80] sm:$0xff] (!%p4568_p6), %v7355_v50  ;;  %v7356_v63 = vld [vmem:[#allocation36_spill] sm:$0xff] (!%p4568_p6)  ;;  %v3376_v50 = vmul.f32 (!%p4568_p6), 0.01, %v6802_v21 }
 0x4ff   : > { %v6829_v19 = vadd.f32 %v6770_v5, %v3176_v24  ;;  %v3178_v49 = vpop.f32.mrb[19].mxu1  ;;  %3320 = vst [vmem:[#allocation3 + $0x88] sm:$0xff] (!%p4568_p6), %v7356_v63  ;;  %v7357_v24 = vld [vmem:[#allocation39_spill] sm:$0xff] (!%p4568_p6)  ;;  %v3406_v63 = vsel (!%p4568_p6), %vm3342_vm10, %v6796_v39, %v3374_v12  ;;  %vm3351_vm3 = vcmp.gt.f32.partialorder (!%p4568_p6), %v6823_v55, 0.0 }
 0x500   : > { %v6832_v9 = vadd.f32 %v6772_v44, %v3178_v49  ;;  %3321 = vst [vmem:[#allocation3 + $0x90] sm:$0xff] (!%p4568_p6), %v7357_v24  ;;  %v7358_v49 = vld [vmem:[#allocation37_spill] sm:$0xff] (!%p4568_p6)  ;;  %v3407_v24 = vsel (!%p4568_p6), %vm3343_vm11, %v6799_v23, %v3375_v36  ;;  %3438 = vst [vmem:[#allocation2 + $0x38] sm:$0xff] (!%p4568_p6), %v3406_v63  ;;  %vm3352_vm4 = vcmp.gt.f32.partialorder (!%p4568_p6), %v6826_v18, 0.0  ;;  %v3384_v1 = vmul.f32 (!%p4568_p6), 0.01, %v6826_v18 }
 0x501   : > { %3322 = vst [vmem:[#allocation3 + $0x98] sm:$0xff] (!%p4568_p6), %v7358_v49  ;;  %v3377_v49 = vmul.f32 (!%p4568_p6), 0.01, %v6805_v60  ;;  %3439 = vst [vmem:[#allocation2 + $0x40] sm:$0xff] (!%p4568_p6), %v3407_v24  ;;  %vm3353_vm5 = vcmp.gt.f32.partialorder (!%p4568_p6), %v6829_v19, 0.0 }
 0x502   : > { %v3416_v34 = vsel (!%p4568_p6), %vm3352_vm4, %v6826_v18, %v3384_v1  ;;  %v3386_v11 = vmul.f32 (!%p4568_p6), 0.01, %v6832_v9 }
 0x503   : > { %3448 = vst [vmem:[#allocation2 + $0x88] sm:$0xff] (!%p4568_p6), %v3416_v34 }
 0x504   : > { %v3182_v56 = vpop.f32.mrb[20].mxu1 }
 0x505   : > { %v6835_v57 = vadd.f32 %v6770_v5, %v3182_v56  ;;  %v3184_v61 = vpop.f32.mrb[21].mxu1  ;;  %v7359_v56 = vld [vmem:[#allocation42_spill] sm:$0xff] (!%p4568_p6) }
 0x506   : > { %v6838_v3 = vadd.f32 %v6772_v44, %v3184_v61  ;;  %v3186_v30 = vpop.f32.mrb[22].mxu1  ;;  %3323 = vst [vmem:[#allocation3 + $0xa0] sm:$0xff] (!%p4568_p6), %v7359_v56  ;;  %v7360_v61 = vld [vmem:[#allocation40_spill] sm:$0xff] (!%p4568_p6)  ;;  %v3408_v56 = vsel (!%p4568_p6), %vm3344_vm12, %v6802_v21, %v3376_v50 }
 0x507   : > { %v6841_v8 = vadd.f32 %v6770_v5, %v3186_v30  ;;  %v3188_v2 = vpop.f32.mrb[23].mxu1  ;;  %3324 = vst [vmem:[#allocation3 + $0xa8] sm:$0xff] (!%p4568_p6), %v7360_v61  ;;  %v7361_v30 = vld [vmem:[#allocation43_spill] sm:$0xff] (!%p4568_p6)  ;;  %v3378_v61 = vmul.f32 (!%p4568_p6), 0.01, %v6808_v7  ;;  %3440 = vst [vmem:[#allocation2 + $0x48] sm:$0xff] (!%p4568_p6), %v3408_v56 }
 0x508   : > { %v6844_v62 = vadd.f32 %v6772_v44, %v3188_v2  ;;  %3325 = vst [vmem:[#allocation3 + $0xb0] sm:$0xff] (!%p4568_p6), %v7361_v30  ;;  %v7362_v2 = vld [vmem:[#allocation41_spill] sm:$0xff] (!%p4568_p6)  ;;  %v3379_v30 = vmul.f32 (!%p4568_p6), 0.01, %v6811_v10  ;;  %vm3356_vm8 = vcmp.gt.f32.partialorder (!%p4568_p6), %v6838_v3, 0.0 }
 0x509   : > { %3326 = vst [vmem:[#allocation3 + $0xb8] sm:$0xff] (!%p4568_p6), %v7362_v2  ;;  %v3409_v2 = vsel (!%p4568_p6), %vm3345_vm13, %v6805_v60, %v3377_v49  ;;  %vm3357_vm9 = vcmp.gt.f32.partialorder (!%p4568_p6), %v6841_v8, 0.0  ;;  %v3389_v37 = vmul.f32 (!%p4568_p6), 0.01, %v6841_v8 }
 0x50a   : > { %3441 = vst [vmem:[#allocation2 + $0x50] sm:$0xff] (!%p4568_p6), %v3409_v2  ;;  %vm3358_vm10 = vcmp.gt.f32.partialorder (!%p4568_p6), %v6844_v62, 0.0  ;;  %v3390_v12 = vmul.f32 (!%p4568_p6), 0.01, %v6844_v62 }
 0x50b   : > { %v3421_v16 = vsel (!%p4568_p6), %vm3357_vm9, %v6841_v8, %v3389_v37 }
 0x50c   : > { %v3192_v6 = vpop.f32.mrb[24].mxu1  ;;  %3453 = vst [vmem:[#allocation2 + $0xb0] sm:$0xff] (!%p4568_p6), %v3421_v16  ;;  %v3422_v63 = vsel (!%p4568_p6), %vm3358_vm10, %v6844_v62, %v3390_v12 }
 0x50d   : > { %v6847_v4 = vadd.f32 %v6770_v5, %v3192_v6  ;;  %v3194_v35 = vpop.f32.mrb[25].mxu1  ;;  %v7363_v6 = vld [vmem:[#allocation46_spill] sm:$0xff] (!%p4568_p6)  ;;  %3454 = vst [vmem:[#allocation2 + $0xb8] sm:$0xff] (!%p4568_p6), %v3422_v63 }
 0x50e   : > { %v6850_v42 = vadd.f32 %v6772_v44, %v3194_v35  ;;  %v3196_v38 = vpop.f32.mrb[26].mxu1  ;;  %3327 = vst [vmem:[#allocation3 + $0xc0] sm:$0xff] (!%p4568_p6), %v7363_v6  ;;  %v7364_v35 = vld [vmem:[#allocation44_spill] sm:$0xff] (!%p4568_p6)  ;;  %v3380_v6 = vmul.f32 (!%p4568_p6), 0.01, %v6814_v53 }
 0x50f   : > { %v6853_v27 = vadd.f32 %v6770_v5, %v3196_v38  ;;  %v3198_v33 = vpop.f32.mrb[27].mxu1  ;;  %3328 = vst [vmem:[#allocation3 + $0xc8] sm:$0xff] (!%p4568_p6), %v7364_v35  ;;  %v7365_v38 = vld [vmem:[#allocation47_spill] sm:$0xff] (!%p4568_p6)  ;;  %v3410_v35 = vsel (!%p4568_p6), %vm3346_vm14, %v6808_v7, %v3378_v61  ;;  %vm3359_vm11 = vcmp.gt.f32.partialorder (!%p4568_p6), %v6847_v4, 0.0  ;;  %v3391_v36 = vmul.f32 (!%p4568_p6), 0.01, %v6847_v4 }
 0x510   : > { %v6856_v14 = vadd.f32 %v6772_v44, %v3198_v33  ;;  %3329 = vst [vmem:[#allocation3 + $0xd0] sm:$0xff] (!%p4568_p6), %v7365_v38  ;;  %v7366_v33 = vld [vmem:[#allocation45_spill] sm:$0xff] (!%p4568_p6)  ;;  %v3411_v38 = vsel (!%p4568_p6), %vm3347_vm15, %v6811_v10, %v3379_v30  ;;  %3442 = vst [vmem:[#allocation2 + $0x58] sm:$0xff] (!%p4568_p6), %v3410_v35  ;;  %vm3360_vm12 = vcmp.gt.f32.partialorder (!%p4568_p6), %v6850_v42, 0.0  ;;  %v3392_v50 = vmul.f32 (!%p4568_p6), 0.01, %v6850_v42 }
 0x511   : > { %3330 = vst [vmem:[#allocation3 + $0xd8] sm:$0xff] (!%p4568_p6), %v7366_v33  ;;  %v3381_v33 = vmul.f32 (!%p4568_p6), 0.01, %v6817_v48  ;;  %3443 = vst [vmem:[#allocation2 + $0x60] sm:$0xff] (!%p4568_p6), %v3411_v38  ;;  %vm3361_vm13 = vcmp.gt.f32.partialorder (!%p4568_p6), %v6853_v27, 0.0  ;;  %v3423_v24 = vsel (!%p4568_p6), %vm3359_vm11, %v6847_v4, %v3391_v36 }
 0x512   : > { %3302 = sbr.rel (%p4568_p6) target bundleno = 1315 (0x523), region = 84  ;;  %v3393_v49 = vmul.f32 (!%p4568_p6), 0.01, %v6853_v27  ;;  %vm3362_vm14 = vcmp.gt.f32.partialorder (!%p4568_p6), %v6856_v14, 0.0  ;;  %3455 = vst [vmem:[#allocation2 + $0xc0] sm:$0xff] (!%p4568_p6), %v3423_v24  ;;  %v3424_v56 = vsel (!%p4568_p6), %vm3360_vm12, %v6850_v42, %v3392_v50 }
 0x513   : > { %v3394_v61 = vmul.f32 (!%p4568_p6), 0.01, %v6856_v14  ;;  %3456 = vst [vmem:[#allocation2 + $0xc8] sm:$0xff] (!%p4568_p6), %v3424_v56 }
 0x514   : > { %v3202_v32 = vpop.f32.mrb[28].mxu1  ;;  %v3425_v2 = vsel (!%p4568_p6), %vm3361_vm13, %v6853_v27, %v3393_v49 }
 0x515   : > { %v6859_v22 = vadd.f32 %v6770_v5, %v3202_v32  ;;  %v3204_v13 = vpop.f32.mrb[29].mxu1  ;;  %v7367_v32 = vld [vmem:[#allocation50_spill] sm:$0xff] (!%p4568_p6)  ;;  %3457 = vst [vmem:[#allocation2 + $0xd0] sm:$0xff] (!%p4568_p6), %v3425_v2  ;;  %v3426_v35 = vsel (!%p4568_p6), %vm3362_vm14, %v6856_v14, %v3394_v61 }
 0x516   : > { %v6862_v54 = vadd.f32 %v6772_v44, %v3204_v13  ;;  %v3206_v46 = vpop.f32.mrb[30].mxu1  ;;  %3331 = vst [vmem:[#allocation3 + $0xe0] sm:$0xff] (!%p4568_p6), %v7367_v32  ;;  %v7368_v13 = vld [vmem:[#allocation48_spill] sm:$0xff] (!%p4568_p6)  ;;  %v3412_v32 = vsel (!%p4568_p6), %vm3348_vm0, %v6814_v53, %v3380_v6  ;;  %3458 = vst [vmem:[#allocation2 + $0xd8] sm:$0xff] (!%p4568_p6), %v3426_v35 }
 0x517   : > { %v6865_v45 = vadd.f32 %v6770_v5, %v3206_v46  ;;  %v3208_v26 = vpop.f32.mrb[31].mxu1  ;;  %v7345_v5 = vld [vmem:[#allocation27_spill] sm:$0xff] (!%p4568_p6)  ;;  %3332 = vst [vmem:[#allocation3 + $0xe8] sm:$0xff] (!%p4568_p6), %v7368_v13  ;;  %v3382_v13 = vmul.f32 (!%p4568_p6), 0.01, %v6820_v17  ;;  %3444 = vst [vmem:[#allocation2 + $0x68] sm:$0xff] (!%p4568_p6), %v3412_v32 }
 0x518   : > { %v6868_v51 = vadd.f32 %v6772_v44, %v3208_v26  ;;  %3309 = vst [vmem:[#allocation3 + $0x30] sm:$0xff] (!%p4568_p6), %v7345_v5  ;;  %v7347_v44 = vld [vmem:[#allocation30_spill] sm:$0xff] (!%p4568_p6)  ;;  %v7369_v46 = vld [vmem:[#allocation51_spill] sm:$0xff] (!%p4568_p6)  ;;  %v7370_v26 = vld [vmem:[#allocation49_spill] sm:$0xff] (!%p4568_p6)  ;;  %v3371_v5 = vmul.f32 (!%p4568_p6), 0.01, %v6787_v29 }
 0x519   : > { %3311 = vst [vmem:[#allocation3 + $0x40] sm:$0xff] %v7347_v44  ;;  %3333 = vst [vmem:[#allocation3 + $0xf0] sm:$0xff] %v7369_v46  ;;  %v3402_v44 = vsel %vm3338_vm6, %v6784_v41, %v3370_v52  ;;  %v3383_v46 = vmul.f32 0.01, %v6823_v55  ;;  %v3414_v0 = vsel %vm3350_vm2, %v6820_v17, %v3382_v13  ;;  %v3385_v52 = vmul.f32 0.01, %v6829_v19 }
 0x51a   : > { %3334 = vst [vmem:[#allocation3 + $0xf8] sm:$0xff] %v7370_v26  ;;  %3434 = vst [vmem:[#allocation2 + $0x18] sm:$0xff] %v3402_v44  ;;  %v3403_v43 = vsel %vm3339_vm7, %v6787_v29, %v3371_v5  ;;  %v3413_v26 = vsel %vm3349_vm1, %v6817_v48, %v3381_v33  ;;  %vm3354_vm6 = vcmp.gt.f32.partialorder %v6832_v9, 0.0  ;;  %vm3355_vm7 = vcmp.gt.f32.partialorder %v6835_v57, 0.0 }
 0x51b   : > { %3435 = vst [vmem:[#allocation2 + $0x20] sm:$0xff] %v3403_v43  ;;  %3445 = vst [vmem:[#allocation2 + $0x70] sm:$0xff] %v3413_v26  ;;  %v3415_v40 = vsel %vm3351_vm3, %v6823_v55, %v3383_v46  ;;  %v3387_v5 = vmul.f32 0.01, %v6835_v57  ;;  %v3417_v15 = vsel %vm3353_vm5, %v6829_v19, %v3385_v52  ;;  %v3388_v44 = vmul.f32 0.01, %v6838_v3 }
 0x51c   : > { %3446 = vst [vmem:[#allocation2 + $0x78] sm:$0xff] %v3414_v0  ;;  %3447 = vst [vmem:[#allocation2 + $0x80] sm:$0xff] %v3415_v40  ;;  %v3418_v47 = vsel %vm3354_vm6, %v6832_v9, %v3386_v11  ;;  %vm3363_vm15 = vcmp.gt.f32.partialorder %v6859_v22, 0.0  ;;  %v3395_v30 = vmul.f32 0.01, %v6859_v22  ;;  %vm3364_vm0 = vcmp.gt.f32.partialorder %v6862_v54, 0.0 }
 0x51d   : > { %3449 = vst [vmem:[#allocation2 + $0x90] sm:$0xff] %v3417_v15  ;;  %v3419_v43 = vsel %vm3355_vm7, %v6835_v57, %v3387_v5  ;;  %3450 = vst [vmem:[#allocation2 + $0x98] sm:$0xff] %v3418_v47  ;;  %v3420_v31 = vsel %vm3356_vm8, %v6838_v3, %v3388_v44  ;;  %v3396_v6 = vmul.f32 0.01, %v6862_v54  ;;  %vm3365_vm1 = vcmp.gt.f32.partialorder %v6865_v45, 0.0 }
 0x51e   : > { %3451 = vst [vmem:[#allocation2 + $0xa0] sm:$0xff] %v3419_v43  ;;  %3452 = vst [vmem:[#allocation2 + $0xa8] sm:$0xff] %v3420_v31  ;;  %v3427_v38 = vsel %vm3363_vm15, %v6859_v22, %v3395_v30  ;;  %v3397_v33 = vmul.f32 0.01, %v6865_v45  ;;  %vm3366_vm2 = vcmp.gt.f32.partialorder %v6868_v51, 0.0 }
 0x51f   : > { %3459 = vst [vmem:[#allocation2 + $0xe0] sm:$0xff] %v3427_v38  ;;  %v3428_v32 = vsel %vm3364_vm0, %v6862_v54, %v3396_v6  ;;  %v3398_v13 = vmul.f32 0.01, %v6868_v51 }
 0x520   : > { %3460 = vst [vmem:[#allocation2 + $0xe8] sm:$0xff] %v3428_v32  ;;  %v3429_v46 = vsel %vm3365_vm1, %v6865_v45, %v3397_v33 }
 0x521   : > { %3461 = vst [vmem:[#allocation2 + $0xf0] sm:$0xff] %v3429_v46  ;;  %v3430_v26 = vsel %vm3366_vm2, %v6868_v51, %v3398_v13 }
 0x522   : > { %3462 = vst [vmem:[#allocation2 + $0xf8] sm:$0xff] %v3430_v26 }
 0x523 PF: > { %p4569_p1 = scmp.eq.s32.totalorder %s7385_s24, 0 }
 0x524   : > { %v3467_v1 = vld [vmem:[#allocation3] sm:$0xff] (!%p4569_p1)  ;;  %v3468_v0 = vld [vmem:[#allocation3 + $0x8] sm:$0xff] (!%p4569_p1)  ;;  %v3469_v40 = vld [vmem:[#allocation3 + $0x10] sm:$0xff] (!%p4569_p1) }
 0x525   : > { %3466 = sbr.rel (%p4569_p1) target bundleno = 1335 (0x537), region = 88  ;;  %v3499_v52 = vadd.f32 (!%p4569_p1), %v3467_v1, %v6775_v59  ;;  %v3500_v34 = vadd.f32 (!%p4569_p1), %v3468_v0, %v6778_v58  ;;  %v3501_v11 = vadd.f32 (!%p4569_p1), %v3469_v40, %v6781_v28  ;;  %v3470_v5 = vld [vmem:[#allocation3 + $0x18] sm:$0xff] (!%p4569_p1)  ;;  %v3471_v15 = vld [vmem:[#allocation3 + $0x20] sm:$0xff] (!%p4569_p1)  ;;  %v3472_v44 = vld [vmem:[#allocation3 + $0x28] sm:$0xff] (!%p4569_p1) }
 0x526   : > { %v3502_v47 = vadd.f32 (!%p4569_p1), %v3470_v5, %v6784_v41  ;;  %v3503_v43 = vadd.f32 (!%p4569_p1), %v3471_v15, %v6787_v29  ;;  %v3504_v37 = vadd.f32 (!%p4569_p1), %v3472_v44, %v6790_v20  ;;  %v3474_v12 = vld [vmem:[#allocation3 + $0x38] sm:$0xff] (!%p4569_p1)  ;;  %v3476_v16 = vld [vmem:[#allocation3 + $0x48] sm:$0xff] (!%p4569_p1)  ;;  %v3477_v50 = vld [vmem:[#allocation3 + $0x50] sm:$0xff] (!%p4569_p1) }
 0x527   : > { %3531 = vst [vmem:[#allocation2] sm:$0xff] (!%p4569_p1), %v3499_v52  ;;  %3532 = vst [vmem:[#allocation2 + $0x8] sm:$0xff] (!%p4569_p1), %v3500_v34  ;;  %v3506_v58 = vadd.f32 (!%p4569_p1), %v3474_v12, %v6796_v39  ;;  %v3478_v63 = vld [vmem:[#allocation3 + $0x58] sm:$0xff] (!%p4569_p1)  ;;  %v3508_v41 = vadd.f32 (!%p4569_p1), %v3476_v16, %v6802_v21  ;;  %v3509_v29 = vadd.f32 (!%p4569_p1), %v3477_v50, %v6805_v60  ;;  %v3479_v24 = vld [vmem:[#allocation3 + $0x60] sm:$0xff] (!%p4569_p1) }
 0x528   : > { %3533 = vst [vmem:[#allocation2 + $0x10] sm:$0xff] (!%p4569_p1), %v3501_v11  ;;  %3534 = vst [vmem:[#allocation2 + $0x18] sm:$0xff] (!%p4569_p1), %v3502_v47  ;;  %v3510_v20 = vadd.f32 (!%p4569_p1), %v3478_v63, %v6808_v7  ;;  %v3480_v49 = vld [vmem:[#allocation3 + $0x68] sm:$0xff] (!%p4569_p1)  ;;  %v3481_v56 = vld [vmem:[#allocation3 + $0x70] sm:$0xff] (!%p4569_p1) }
 0x529   : > { %v3473_v31 = vld [vmem:[#allocation3 + $0x30] sm:$0xff] (!%p4569_p1)  ;;  %3535 = vst [vmem:[#allocation2 + $0x20] sm:$0xff] (!%p4569_p1), %v3503_v43  ;;  %3536 = vst [vmem:[#allocation2 + $0x28] sm:$0xff] (!%p4569_p1), %v3504_v37  ;;  %v3512_v39 = vadd.f32 (!%p4569_p1), %v3480_v49, %v6814_v53  ;;  %v3482_v61 = vld [vmem:[#allocation3 + $0x78] sm:$0xff] (!%p4569_p1) }
 0x52a   : > { %v3475_v36 = vld [vmem:[#allocation3 + $0x40] sm:$0xff] (!%p4569_p1)  ;;  %v3505_v59 = vadd.f32 (!%p4569_p1), %v3473_v31, %v6793_v25  ;;  %3538 = vst [vmem:[#allocation2 + $0x38] sm:$0xff] (!%p4569_p1), %v3506_v58  ;;  %v3511_v25 = vadd.f32 (!%p4569_p1), %v3479_v24, %v6811_v10  ;;  %v3484_v2 = vld [vmem:[#allocation3 + $0x88] sm:$0xff] (!%p4569_p1)  ;;  %3540 = vst [vmem:[#allocation2 + $0x48] sm:$0xff] (!%p4569_p1), %v3508_v41  ;;  %v3514_v21 = vadd.f32 (!%p4569_p1), %v3482_v61, %v6820_v17 }
 0x52b   : > { %v3507_v28 = vadd.f32 (!%p4569_p1), %v3475_v36, %v6799_v23  ;;  %v3513_v23 = vadd.f32 (!%p4569_p1), %v3481_v56, %v6817_v48  ;;  %v3483_v30 = vld [vmem:[#allocation3 + $0x80] sm:$0xff] (!%p4569_p1)  ;;  %3541 = vst [vmem:[#allocation2 + $0x50] sm:$0xff] (!%p4569_p1), %v3509_v29  ;;  %3542 = vst [vmem:[#allocation2 + $0x58] sm:$0xff] (!%p4569_p1), %v3510_v20  ;;  %v3516_v7 = vadd.f32 (!%p4569_p1), %v3484_v2, %v6826_v18  ;;  %v3485_v6 = vld [vmem:[#allocation3 + $0x90] sm:$0xff] (!%p4569_p1) }
 0x52c   : > { %3537 = vst [vmem:[#allocation2 + $0x30] sm:$0xff] %v3505_v59  ;;  %v3515_v60 = vadd.f32 %v3483_v30, %v6823_v55  ;;  %v3486_v35 = vld [vmem:[#allocation3 + $0x98] sm:$0xff]  ;;  %v3487_v38 = vld [vmem:[#allocation3 + $0xa0] sm:$0xff]  ;;  %3543 = vst [vmem:[#allocation2 + $0x60] sm:$0xff] %v3511_v25  ;;  %v3517_v10 = vadd.f32 %v3485_v6, %v6829_v19 }
 0x52d   : > { %3539 = vst [vmem:[#allocation2 + $0x40] sm:$0xff] %v3507_v28  ;;  %3544 = vst [vmem:[#allocation2 + $0x68] sm:$0xff] %v3512_v39  ;;  %v3518_v53 = vadd.f32 %v3486_v35, %v6832_v9  ;;  %v3519_v48 = vadd.f32 %v3487_v38, %v6835_v57  ;;  %v3488_v33 = vld [vmem:[#allocation3 + $0xa8] sm:$0xff]  ;;  %v3489_v32 = vld [vmem:[#allocation3 + $0xb0] sm:$0xff] }
 0x52e   : > { %3545 = vst [vmem:[#allocation2 + $0x70] sm:$0xff] %v3513_v23  ;;  %v3490_v13 = vld [vmem:[#allocation3 + $0xb8] sm:$0xff]  ;;  %3546 = vst [vmem:[#allocation2 + $0x78] sm:$0xff] %v3514_v21  ;;  %v3520_v17 = vadd.f32 %v3488_v33, %v6838_v3  ;;  %v3521_v55 = vadd.f32 %v3489_v32, %v6841_v8  ;;  %v3491_v46 = vld [vmem:[#allocation3 + $0xc0] sm:$0xff] }
 0x52f   : > { %3547 = vst [vmem:[#allocation2 + $0x80] sm:$0xff] %v3515_v60  ;;  %3548 = vst [vmem:[#allocation2 + $0x88] sm:$0xff] %v3516_v7  ;;  %v3522_v18 = vadd.f32 %v3490_v13, %v6844_v62  ;;  %v3492_v26 = vld [vmem:[#allocation3 + $0xc8] sm:$0xff]  ;;  %v3493_v1 = vld [vmem:[#allocation3 + $0xd0] sm:$0xff]  ;;  %v3523_v19 = vadd.f32 %v3491_v46, %v6847_v4 }
 0x530   : > { %3549 = vst [vmem:[#allocation2 + $0x90] sm:$0xff] %v3517_v10  ;;  %3550 = vst [vmem:[#allocation2 + $0x98] sm:$0xff] %v3518_v53  ;;  %v3524_v9 = vadd.f32 %v3492_v26, %v6850_v42  ;;  %v3525_v57 = vadd.f32 %v3493_v1, %v6853_v27  ;;  %v3494_v0 = vld [vmem:[#allocation3 + $0xd8] sm:$0xff]  ;;  %v3495_v40 = vld [vmem:[#allocation3 + $0xe0] sm:$0xff] }
 0x531   : > { %3551 = vst [vmem:[#allocation2 + $0xa0] sm:$0xff] %v3519_v48  ;;  %v3496_v52 = vld [vmem:[#allocation3 + $0xe8] sm:$0xff]  ;;  %3552 = vst [vmem:[#allocation2 + $0xa8] sm:$0xff] %v3520_v17  ;;  %v3526_v3 = vadd.f32 %v3494_v0, %v6856_v14  ;;  %v3527_v8 = vadd.f32 %v3495_v40, %v6859_v22  ;;  %v3497_v34 = vld [vmem:[#allocation3 + $0xf0] sm:$0xff] }
 0x532   : > { %3553 = vst [vmem:[#allocation2 + $0xb0] sm:$0xff] %v3521_v55  ;;  %3554 = vst [vmem:[#allocation2 + $0xb8] sm:$0xff] %v3522_v18  ;;  %v3528_v62 = vadd.f32 %v3496_v52, %v6862_v54  ;;  %v3498_v11 = vld [vmem:[#allocation3 + $0xf8] sm:$0xff]  ;;  %v3529_v4 = vadd.f32 %v3497_v34, %v6865_v45 }
 0x533   : > { %3555 = vst [vmem:[#allocation2 + $0xc0] sm:$0xff] %v3523_v19  ;;  %3556 = vst [vmem:[#allocation2 + $0xc8] sm:$0xff] %v3524_v9  ;;  %v3530_v42 = vadd.f32 %v3498_v11, %v6868_v51 }
 0x534   : > { %3557 = vst [vmem:[#allocation2 + $0xd0] sm:$0xff] %v3525_v57  ;;  %3558 = vst [vmem:[#allocation2 + $0xd8] sm:$0xff] %v3526_v3 }
 0x535   : > { %3559 = vst [vmem:[#allocation2 + $0xe0] sm:$0xff] %v3527_v8  ;;  %3560 = vst [vmem:[#allocation2 + $0xe8] sm:$0xff] %v3528_v62 }
 0x536   : > { %3561 = vst [vmem:[#allocation2 + $0xf0] sm:$0xff] %v3529_v4  ;;  %3562 = vst [vmem:[#allocation2 + $0xf8] sm:$0xff] %v3530_v42 }
 0x537 PF: > { %p4570_p4 = scmp.ne.s32.totalorder %s5508_s30, 3 }
 0x538   : > { %v5531_v47 = vmov (!%p4570_p4), 0   ;;  %v3575_v58 = vld [vmem:[#allocation2 + $0x40] sm:$0xff] (!%p4570_p4)  ;;  %v3580_v16 = vld [vmem:[#allocation2 + $0x68] sm:$0xff] (!%p4570_p4)  ;;  %v3582_v50 = vld [vmem:[#allocation2 + $0x78] sm:$0xff] (!%p4570_p4)  ;;  %s7371_s0 = sld [smem:[#allocation56_spill]] (!%p4570_p4)  ;;  %vm4033_vm3 = vcmask (!%p4570_p4), 31744  }
 0x539   : > { %3566 = sbr.rel (%p4570_p4) target bundleno = 1865 (0x749), region = 92  ;;  %v3568_v27 = vld [vmem:[#allocation2 + $0x8] sm:$0xff] (!%p4570_p4)  ;;  %v3567_v22 = vld [vmem:[#allocation2] sm:$0xff] (!%p4570_p4)  ;;  %3711 = vmatprep.mubr.bf16.mxu0 (!%p4570_p4), %v5531_v47  ;;  %v3606_v41 = vpack.c.bf16 (!%p4570_p4), %v3582_v50, %v3580_v16  ;;  %v3581_v20 = vld [vmem:[#allocation2 + $0x70] sm:$0xff] (!%p4570_p4)  ;;  %s7372_s18 = sld [smem:[#allocation57_spill]] (!%p4570_p4) }
 0x53a   : > { %v3570_v14 = vld [vmem:[#allocation2 + $0x18] sm:$0xff] (!%p4570_p4)  ;;  %v3569_v5 = vld [vmem:[#allocation2 + $0x10] sm:$0xff] (!%p4570_p4)  ;;  %v3584_v24 = vld [vmem:[#allocation2 + $0x88] sm:$0xff] (!%p4570_p4) }
 0x53b   : > { %v3600_v54 = vpack.c.bf16 (!%p4570_p4), %v3570_v14, %v3568_v27  ;;  %v3572_v15 = vld [vmem:[#allocation2 + $0x28] sm:$0xff] (!%p4570_p4)  ;;  %v3599_v45 = vpack.c.bf16 (!%p4570_p4), %v3569_v5, %v3567_v22  ;;  %v3571_v43 = vld [vmem:[#allocation2 + $0x20] sm:$0xff] (!%p4570_p4)  ;;  %v3586_v49 = vld [vmem:[#allocation2 + $0x98] sm:$0xff] (!%p4570_p4) }
 0x53c   : > { %v3574_v44 = vld [vmem:[#allocation2 + $0x38] sm:$0xff] (!%p4570_p4)  ;;  %v3576_v31 = vld [vmem:[#allocation2 + $0x48] sm:$0xff] (!%p4570_p4)  ;;  %v3583_v56 = vld [vmem:[#allocation2 + $0x80] sm:$0xff] (!%p4570_p4)  ;;  %v3608_v23 = vpack.c.bf16 (!%p4570_p4), %v3586_v49, %v3584_v24 }
 0x53d   : > { %v3602_v51 = vpack.c.bf16 (!%p4570_p4), %v3574_v44, %v3572_v15  ;;  %3679 = vmatprep.subr.bf16.mxu0 (!%p4570_p4), %v3600_v54  ;;  %v3578_v12 = vld [vmem:[#allocation2 + $0x58] sm:$0xff] (!%p4570_p4)  ;;  %v3577_v28 = vld [vmem:[#allocation2 + $0x50] sm:$0xff] (!%p4570_p4)  ;;  %v3588_v61 = vld [vmem:[#allocation2 + $0xa8] sm:$0xff] (!%p4570_p4) }
 0x53e   : > { %v3573_v37 = vld [vmem:[#allocation2 + $0x30] sm:$0xff] (!%p4570_p4)  ;;  %3680 = vmatpush1.bf16.msra.mxu0 (!%p4570_p4), %v3599_v45  ;;  %v3604_v59 = vpack.c.bf16 (!%p4570_p4), %v3578_v12, %v3576_v31  ;;  %v3603_v63 = vpack.c.bf16 (!%p4570_p4), %v3577_v28, %v3575_v58  ;;  %v3579_v29 = vld [vmem:[#allocation2 + $0x60] sm:$0xff] (!%p4570_p4)  ;;  %v3590_v30 = vld [vmem:[#allocation2 + $0xb8] sm:$0xff] (!%p4570_p4) }
 0x53f   : > { %v3601_v36 = vpack.c.bf16 (!%p4570_p4), %v3573_v37, %v3571_v43  ;;  %3681 = vmatprep.subr.bf16.mxu0 (!%p4570_p4), %v3602_v51  ;;  %v3605_v25 = vpack.c.bf16 (!%p4570_p4), %v3581_v20, %v3579_v29  ;;  %v3585_v39 = vld [vmem:[#allocation2 + $0x90] sm:$0xff] (!%p4570_p4)  ;;  %v3587_v2 = vld [vmem:[#allocation2 + $0xa0] sm:$0xff] (!%p4570_p4)  ;;  %v3610_v7 = vpack.c.bf16 (!%p4570_p4), %v3590_v30, %v3588_v61  ;;  %v3592_v6 = vld [vmem:[#allocation2 + $0xc8] sm:$0xff] (!%p4570_p4) }
 0x540   : > { %v3607_v21 = vpack.c.bf16 %v3585_v39, %v3583_v56  ;;  %v3589_v60 = vld [vmem:[#allocation2 + $0xb0] sm:$0xff]  ;;  %v3594_v35 = vld [vmem:[#allocation2 + $0xd8] sm:$0xff]  ;;  %v3591_v38 = vld [vmem:[#allocation2 + $0xc0] sm:$0xff] }
 0x541   : > { %v3593_v10 = vld [vmem:[#allocation2 + $0xd0] sm:$0xff]  ;;  %v5266_v53 = vld [vmem:[%s7371_s0 + $0x40] sm:$0xff]   ;;  %v3609_v48 = vpack.c.bf16 %v3589_v60, %v3587_v2  ;;  %v3596_v33 = vld [vmem:[#allocation2 + $0xe8] sm:$0xff]  ;;  %v3612_v17 = vpack.c.bf16 %v3594_v35, %v3592_v6 }
 0x542   : > { %3682 = vmatpush1.bf16.msra.mxu0 %v3601_v36  ;;  %v3598_v32 = vld [vmem:[#allocation2 + $0xf8] sm:$0xff]  ;;  %v5267_v13 = vld [vmem:[%s7371_s0] sm:$0xff]   ;;  %4599 = vmatprep.subr.bf16.mxu1 %v5266_v53  ;;  %v5268_v55 = vld [vmem:[%s7371_s0 + $0x48] sm:$0xff]   ;;  %v3611_v26 = vpack.c.bf16 %v3593_v10, %v3591_v38 }
 0x543   : > { %3683 = vmatprep.subr.bf16.mxu0 %v3604_v59  ;;  %4600 = vmatpush3.bf16.msra.mxu1 %v5267_v13  ;;  %v5269_v18 = vld [vmem:[%s7371_s0 + $0x8] sm:$0xff]   ;;  %v5270_v46 = vld [vmem:[%s7371_s0 + $0x50] sm:$0xff]   ;;  %v3595_v1 = vld [vmem:[#allocation2 + $0xe0] sm:$0xff]  ;;  %v3614_v19 = vpack.c.bf16 %v3598_v32, %v3596_v33 }
 0x544   : > { %4601 = vmatprep.subr.bf16.mxu1 %v5268_v55  ;;  %v3597_v9 = vld [vmem:[#allocation2 + $0xf0] sm:$0xff]  ;;  %v5272_v0 = vld [vmem:[%s7371_s0 + $0x58] sm:$0xff]   ;;  %v5274_v8 = vld [vmem:[%s7371_s0 + $0x60] sm:$0xff]  }
 0x545   : > { %v5271_v57 = vld [vmem:[%s7371_s0 + $0x10] sm:$0xff]   ;;  %v3613_v40 = vpack.c.bf16 %v3597_v9, %v3595_v1  ;;  %v5258_v52 = vld [vmem:[#allocation12] sm:$0xff]   ;;  %v5276_v34 = vld [vmem:[%s7371_s0 + $0x68] sm:$0xff]  }
 0x546   : > { %3684 = vmatpush1.bf16.msra.mxu0 %v3603_v63  ;;  %v5273_v3 = vld [vmem:[%s7371_s0 + $0x18] sm:$0xff]   ;;  %v5275_v62 = vld [vmem:[%s7371_s0 + $0x20] sm:$0xff]   ;;  %v5277_v11 = vld [vmem:[%s7371_s0 + $0x28] sm:$0xff]  }
 0x547   : > { %3685 = vmatprep.subr.bf16.mxu0 %v3606_v41  ;;  %4602 = vmatpush3.bf16.msra.mxu1 %v5269_v18  ;;  %v5259_v4 = vld [vmem:[#allocation12 + $0x8] sm:$0xff]   ;;  %v5278_v42 = vld [vmem:[%s7371_s0 + $0x70] sm:$0xff]   ;;  %v5262_v22 = vld [vmem:[#allocation12 + $0x20] sm:$0xff]  }
 0x548   : > { %4603 = vmatprep.subr.bf16.mxu1 %v5270_v46  ;;  %v5260_v27 = vld [vmem:[#allocation12 + $0x10] sm:$0xff]   ;;  %v5261_v14 = vld [vmem:[#allocation12 + $0x18] sm:$0xff]   ;;  %v5263_v54 = vld [vmem:[#allocation12 + $0x28] sm:$0xff]  }
 0x549   : > { %v5264_v5 = vld [vmem:[#allocation12 + $0x30] sm:$0xff]   ;;  %v5265_v15 = vld [vmem:[#allocation12 + $0x38] sm:$0xff]  }
 0x54a   : > { %3686 = vmatpush1.bf16.msra.mxu0 %v3605_v25  ;;  %v5279_v44 = vld [vmem:[%s7371_s0 + $0x30] sm:$0xff]   ;;  %v5280_v45 = vld [vmem:[%s7371_s0 + $0x78] sm:$0xff]  }
 0x54b   : > { %3687 = vmatprep.subr.bf16.mxu0 %v3608_v23  ;;  %4604 = vmatpush3.bf16.msra.mxu1 %v5271_v57  ;;  %v5281_v51 = vld [vmem:[%s7371_s0 + $0x38] sm:$0xff]  }
 0x54c   : > { %4605 = vmatprep.subr.bf16.mxu1 %v5272_v0 }
 0x54e   : > { %3688 = vmatpush1.bf16.msra.mxu0 %v3607_v21 }
 0x54f   : > { %3689 = vmatprep.subr.bf16.mxu0 %v3610_v7  ;;  %4606 = vmatpush3.bf16.msra.mxu1 %v5273_v3 }
 0x550   : > { %4607 = vmatprep.subr.bf16.mxu1 %v5274_v8 }
 0x552   : > { %3690 = vmatpush1.bf16.msra.mxu0 %v3609_v48 }
 0x553   : > { %3691 = vmatprep.subr.bf16.mxu0 %v3612_v17  ;;  %4608 = vmatpush3.bf16.msra.mxu1 %v5275_v62 }
 0x554   : > { %4609 = vmatprep.subr.bf16.mxu1 %v5276_v34 }
 0x556   : > { %3692 = vmatpush1.bf16.msra.mxu0 %v3611_v26 }
 0x557   : > { %3693 = vmatprep.subr.bf16.mxu0 %v3614_v19  ;;  %4610 = vmatpush3.bf16.msra.mxu1 %v5277_v11 }
 0x558   : > { %4611 = vmatprep.subr.bf16.mxu1 %v5278_v42 }
 0x55a   : > { %3694 = vmatpush1.bf16.msra.mxu0 %v3613_v40 }
 0x55b   : > { %4612 = vmatpush3.bf16.msra.mxu1 %v5279_v44 }
 0x55c   : > { %4613 = vmatprep.subr.bf16.mxu1 %v5280_v45 }
 0x55d   : > { %3712 = vmatmul.mubr.bf16.vlgmr.msra.gmra.mrb[0].mxu0 %v5258_v52 }
 0x55e   : > { %3721 = vmatprep.mubr.bf16.mxu0 %v5531_v47 }
 0x55f   : > { %4614 = vmatpush3.bf16.msra.mxu1 %v5281_v51 }
 0x565   : > { %3722 = vmatmul.mubr.bf16.gmra.mrb[4].mxu0 %v5259_v4 }
 0x566   : > { %3731 = vmatprep.mubr.bf16.mxu0 %v5531_v47 }
 0x56d   : > { %3732 = vmatmul.mubr.bf16.gmra.mrb[8].mxu0 %v5260_v27 }
 0x56e   : > { %3741 = vmatprep.mubr.bf16.mxu0 %v5531_v47 }
 0x575   : > { %3742 = vmatmul.mubr.bf16.gmra.mrb[12].mxu0 %v5261_v14 }
 0x576   : > { %3751 = vmatprep.mubr.bf16.mxu0 %v5531_v47 }
 0x57d   : > { %3752 = vmatmul.mubr.bf16.gmra.mrb[16].mxu0 %v5262_v22 }
 0x57e   : > { %3761 = vmatprep.mubr.bf16.mxu0 %v5531_v47 }
 0x585   : > { %3762 = vmatmul.mubr.bf16.gmra.mrb[20].mxu0 %v5263_v54 }
 0x586   : > { %3771 = vmatprep.mubr.bf16.mxu0 %v5531_v47 }
 0x58d   : > { %3772 = vmatmul.mubr.bf16.gmra.mrb[24].mxu0 %v5264_v5 }
 0x58e   : > { %3781 = vmatprep.mubr.bf16.mxu0 %v5531_v47 }
 0x595   : > { %3782 = vmatmul.mubr.bf16.gmra.mrb[28].mxu0 %v5265_v15 }
 0x630   : > { %v3713_v43 = vpop.f32.mrb[0].mxu0 }
 0x631   : > { %v3715_v37 = vpop.f32.mrb[1].mxu0 }
 0x632   : > { %v3717_v47 = vpop.f32.mrb[2].mxu0 }
 0x633   : > { %v3792_v31 = vpack.c.bf16 %v3717_v47, %v3713_v43  ;;  %v3719_v12 = vpop.f32.mrb[3].mxu0 }
 0x634   : > { %v3793_v36 = vpack.c.bf16 %v3719_v12, %v3715_v37 }
 0x636   : > { %3968 = vmatprep.mubr.bf16.mxu1 %v3793_v36 }
 0x637   : > { %3969 = vmatmul.mubr.bf16.vlgmr.msra.gmra.mrb[0].mxu1 %v3792_v31 }
 0x638   : > { %v3723_v59 = vpop.f32.mrb[4].mxu0 }
 0x639   : > { %v3725_v58 = vpop.f32.mrb[5].mxu0 }
 0x63a   : > { %v3727_v28 = vpop.f32.mrb[6].mxu0 }
 0x63b   : > { %v3794_v16 = vpack.c.bf16 %v3727_v28, %v3723_v59  ;;  %v3729_v50 = vpop.f32.mrb[7].mxu0 }
 0x63c   : > { %v3795_v63 = vpack.c.bf16 %v3729_v50, %v3725_v58 }
 0x63e   : > { %3976 = vmatprep.mubr.bf16.mxu1 %v3795_v63 }
 0x63f   : > { %3977 = vmatmul.mubr.bf16.gmra.mrb[4].mxu1 %v3794_v16 }
 0x640   : > { %v3733_v41 = vpop.f32.mrb[8].mxu0 }
 0x641   : > { %v3735_v29 = vpop.f32.mrb[9].mxu0 }
 0x642   : > { %v3737_v20 = vpop.f32.mrb[10].mxu0 }
 0x643   : > { %v3796_v24 = vpack.c.bf16 %v3737_v20, %v3733_v41  ;;  %v3739_v49 = vpop.f32.mrb[11].mxu0 }
 0x644   : > { %v3797_v56 = vpack.c.bf16 %v3739_v49, %v3735_v29 }
 0x646   : > { %3984 = vmatprep.mubr.bf16.mxu1 %v3797_v56 }
 0x647   : > { %3985 = vmatmul.mubr.bf16.gmra.mrb[8].mxu1 %v3796_v24 }
 0x648   : > { %v3743_v25 = vpop.f32.mrb[12].mxu0 }
 0x649   : > { %v3745_v39 = vpop.f32.mrb[13].mxu0 }
 0x64a   : > { %v3747_v23 = vpop.f32.mrb[14].mxu0 }
 0x64b   : > { %v3798_v61 = vpack.c.bf16 %v3747_v23, %v3743_v25  ;;  %v3749_v30 = vpop.f32.mrb[15].mxu0 }
 0x64c   : > { %v3799_v2 = vpack.c.bf16 %v3749_v30, %v3745_v39 }
 0x64e   : > { %3992 = vmatprep.mubr.bf16.mxu1 %v3799_v2 }
 0x64f   : > { %3993 = vmatmul.mubr.bf16.gmra.mrb[12].mxu1 %v3798_v61 }
 0x650   : > { %v3753_v21 = vpop.f32.mrb[16].mxu0 }
 0x651   : > { %v3755_v60 = vpop.f32.mrb[17].mxu0 }
 0x652   : > { %v3757_v7 = vpop.f32.mrb[18].mxu0 }
 0x653   : > { %v3800_v6 = vpack.c.bf16 %v3757_v7, %v3753_v21  ;;  %v3759_v35 = vpop.f32.mrb[19].mxu0 }
 0x654   : > { %v3801_v38 = vpack.c.bf16 %v3759_v35, %v3755_v60 }
 0x656   : > { %4000 = vmatprep.mubr.bf16.mxu1 %v3801_v38 }
 0x657   : > { %4001 = vmatmul.mubr.bf16.gmra.mrb[16].mxu1 %v3800_v6 }
 0x658   : > { %v3763_v10 = vpop.f32.mrb[20].mxu0 }
 0x659   : > { %v3765_v53 = vpop.f32.mrb[21].mxu0 }
 0x65a   : > { %v3767_v48 = vpop.f32.mrb[22].mxu0 }
 0x65b   : > { %v3802_v33 = vpack.c.bf16 %v3767_v48, %v3763_v10  ;;  %v3769_v32 = vpop.f32.mrb[23].mxu0 }
 0x65c   : > { %v3803_v13 = vpack.c.bf16 %v3769_v32, %v3765_v53 }
 0x65e   : > { %4008 = vmatprep.mubr.bf16.mxu1 %v3803_v13 }
 0x65f   : > { %4009 = vmatmul.mubr.bf16.gmra.mrb[20].mxu1 %v3802_v33 }
 0x660   : > { %v3773_v17 = vpop.f32.mrb[24].mxu0 }
 0x661   : > { %v3775_v55 = vpop.f32.mrb[25].mxu0 }
 0x662   : > { %v3777_v18 = vpop.f32.mrb[26].mxu0 }
 0x663   : > { %v3804_v46 = vpack.c.bf16 %v3777_v18, %v3773_v17  ;;  %v3779_v26 = vpop.f32.mrb[27].mxu0 }
 0x664   : > { %v3805_v1 = vpack.c.bf16 %v3779_v26, %v3775_v55 }
 0x666   : > { %4016 = vmatprep.mubr.bf16.mxu1 %v3805_v1 }
 0x667   : > { %4017 = vmatmul.mubr.bf16.gmra.mrb[24].mxu1 %v3804_v46 }
 0x668   : > { %v3783_v19 = vpop.f32.mrb[28].mxu0 }
 0x669   : > { %v3785_v9 = vpop.f32.mrb[29].mxu0 }
 0x66a   : > { %v3787_v57 = vpop.f32.mrb[30].mxu0 }
 0x66b   : > { %v3806_v0 = vpack.c.bf16 %v3787_v57, %v3783_v19  ;;  %v3789_v40 = vpop.f32.mrb[31].mxu0 }
 0x66c   : > { %v3807_v52 = vpack.c.bf16 %v3789_v40, %v3785_v9 }
 0x66e   : > { %4024 = vmatprep.mubr.bf16.mxu1 %v3807_v52 }
 0x66f   : > { %4025 = vmatmul.mubr.bf16.gmra.mrb[28].mxu1 %v3806_v0 }
 0x70a   : > { %v4615_v3 = vpop.f32.mrb[0].mxu1 }
 0x70b   : > { %v4616_v8 = vpop.f32.mrb[1].mxu1 }
 0x70c   : > { %v4617_v62 = vadd.f32 %v4616_v8, %v4615_v3  ;;  %v4618_v34 = vpop.f32.mrb[2].mxu1 }
 0x70d   : > { %v4619_v11 = vpop.f32.mrb[3].mxu1 }
 0x70e   : > { %4034 = vst.msk [vmem:[%s7372_s18] sm:$0xff] %vm4033_vm3, %v4617_v62  ;;  %v4620_v4 = vadd.f32 %v4619_v11, %v4618_v34 }
 0x710   : > { %4035 = vst.msk [vmem:[%s7372_s18 + $0x8] sm:$0xff] %vm4033_vm3, %v4620_v4 }
 0x712   : > { %v4621_v42 = vpop.f32.mrb[4].mxu1 }
 0x713   : > { %v4622_v27 = vpop.f32.mrb[5].mxu1 }
 0x714   : > { %v4623_v14 = vadd.f32 %v4622_v27, %v4621_v42  ;;  %v4624_v22 = vpop.f32.mrb[6].mxu1 }
 0x715   : > { %v4625_v54 = vpop.f32.mrb[7].mxu1 }
 0x716   : > { %4036 = vst.msk [vmem:[%s7372_s18 + $0x10] sm:$0xff] %vm4033_vm3, %v4623_v14  ;;  %v4626_v5 = vadd.f32 %v4625_v54, %v4624_v22 }
 0x718   : > { %4037 = vst.msk [vmem:[%s7372_s18 + $0x18] sm:$0xff] %vm4033_vm3, %v4626_v5 }
 0x71a   : > { %v4627_v15 = vpop.f32.mrb[8].mxu1 }
 0x71b   : > { %v4628_v44 = vpop.f32.mrb[9].mxu1 }
 0x71c   : > { %v4629_v45 = vadd.f32 %v4628_v44, %v4627_v15  ;;  %v4630_v51 = vpop.f32.mrb[10].mxu1 }
 0x71d   : > { %v4631_v43 = vpop.f32.mrb[11].mxu1 }
 0x71e   : > { %4038 = vst.msk [vmem:[%s7372_s18 + $0x20] sm:$0xff] %vm4033_vm3, %v4629_v45  ;;  %v4632_v37 = vadd.f32 %v4631_v43, %v4630_v51 }
 0x720   : > { %4039 = vst.msk [vmem:[%s7372_s18 + $0x28] sm:$0xff] %vm4033_vm3, %v4632_v37 }
 0x722   : > { %v4633_v47 = vpop.f32.mrb[12].mxu1 }
 0x723   : > { %v4634_v31 = vpop.f32.mrb[13].mxu1 }
 0x724   : > { %v4635_v12 = vadd.f32 %v4634_v31, %v4633_v47  ;;  %v4636_v36 = vpop.f32.mrb[14].mxu1 }
 0x725   : > { %v4637_v59 = vpop.f32.mrb[15].mxu1 }
 0x726   : > { %4040 = vst.msk [vmem:[%s7372_s18 + $0x30] sm:$0xff] %vm4033_vm3, %v4635_v12  ;;  %v4638_v58 = vadd.f32 %v4637_v59, %v4636_v36 }
 0x728   : > { %4041 = vst.msk [vmem:[%s7372_s18 + $0x38] sm:$0xff] %vm4033_vm3, %v4638_v58 }
 0x72a   : > { %v4639_v28 = vpop.f32.mrb[16].mxu1 }
 0x72b   : > { %v4640_v16 = vpop.f32.mrb[17].mxu1 }
 0x72c   : > { %v4641_v50 = vadd.f32 %v4640_v16, %v4639_v28  ;;  %v4642_v63 = vpop.f32.mrb[18].mxu1 }
 0x72d   : > { %v4643_v41 = vpop.f32.mrb[19].mxu1 }
 0x72e   : > { %4042 = vst.msk [vmem:[%s7372_s18 + $0x40] sm:$0xff] %vm4033_vm3, %v4641_v50  ;;  %v4644_v29 = vadd.f32 %v4643_v41, %v4642_v63 }
 0x730   : > { %4043 = vst.msk [vmem:[%s7372_s18 + $0x48] sm:$0xff] %vm4033_vm3, %v4644_v29 }
 0x732   : > { %v4645_v20 = vpop.f32.mrb[20].mxu1 }
 0x733   : > { %v4646_v24 = vpop.f32.mrb[21].mxu1 }
 0x734   : > { %v4647_v49 = vadd.f32 %v4646_v24, %v4645_v20  ;;  %v4648_v56 = vpop.f32.mrb[22].mxu1 }
 0x735   : > { %v4649_v25 = vpop.f32.mrb[23].mxu1 }
 0x736   : > { %4044 = vst.msk [vmem:[%s7372_s18 + $0x50] sm:$0xff] %vm4033_vm3, %v4647_v49  ;;  %v4650_v39 = vadd.f32 %v4649_v25, %v4648_v56 }
 0x738   : > { %4045 = vst.msk [vmem:[%s7372_s18 + $0x58] sm:$0xff] %vm4033_vm3, %v4650_v39 }
 0x73a   : > { %v4651_v23 = vpop.f32.mrb[24].mxu1 }
 0x73b   : > { %v4652_v61 = vpop.f32.mrb[25].mxu1 }
 0x73c   : > { %v4653_v30 = vadd.f32 %v4652_v61, %v4651_v23  ;;  %v4654_v2 = vpop.f32.mrb[26].mxu1 }
 0x73d   : > { %v4655_v21 = vpop.f32.mrb[27].mxu1 }
 0x73e   : > { %4046 = vst.msk [vmem:[%s7372_s18 + $0x60] sm:$0xff] %vm4033_vm3, %v4653_v30  ;;  %v4656_v60 = vadd.f32 %v4655_v21, %v4654_v2 }
 0x740   : > { %4047 = vst.msk [vmem:[%s7372_s18 + $0x68] sm:$0xff] %vm4033_vm3, %v4656_v60 }
 0x742   : > { %v4657_v7 = vpop.f32.mrb[28].mxu1 }
 0x743   : > { %v4658_v6 = vpop.f32.mrb[29].mxu1 }
 0x744   : > { %v4659_v35 = vadd.f32 %v4658_v6, %v4657_v7  ;;  %v4660_v38 = vpop.f32.mrb[30].mxu1 }
 0x745   : > { %v4661_v10 = vpop.f32.mrb[31].mxu1 }
 0x746   : > { %4048 = vst.msk [vmem:[%s7372_s18 + $0x70] sm:$0xff] %vm4033_vm3, %v4659_v35  ;;  %v4662_v53 = vadd.f32 %v4661_v10, %v4660_v38 }
 0x748   : > { %4049 = vst.msk [vmem:[%s7372_s18 + $0x78] sm:$0xff] %vm4033_vm3, %v4662_v53 }
 0x749 PF: > { %s24_s10 = sadd.s32 1, %s5516_s10   ;;  %s7373_s30 = sld [smem:[#allocation19_spill]] }
 0x74a   : > { %p21_p10 = scmp.ge.s32.totalorder %s24_s10, 6   ;;  %s7374_s4 = sld [smem:[#allocation18_spill]] }
 0x74b   : > { %s7375_s27 = smov %s5500_s28  ;;  %s7376_s28 = smov %s5504_s29 }
 0x74c   :  { %23 = sbr.rel (!%p21_p10) target bundleno = 14 (0xe), region = 143 }
 0x74f   : > { %s7377_s29 = smov %s7373_s30  ;;  %s7378_s30 = smov %s5512_s9 }
 0x750   : > { %s7379_s9 = smov %s7374_s4 }
 0x753   :  { %4071 = vsyncpa [#allocation5], 1 }
 0x754   :  { %4073 = vsyncpa [#allocation5 + $0x1], 1 }
 0x755   :  { %4074 = vsyncpa [#allocation7], 1 }
 0x756   :  { %4075 = vsyncpa [#allocation10], 1 }
 0x757   :  { %4077 = vsyncpa [#allocation10 + $0x1], 1 }
 0x758   :  { %4078 = vsyncpa [#allocation13], 1 }

</bundles_post_ra>
